<compile_context>
chip_gen: v7x
topology: tpu7x:2x2x1
jax: 0.10.0
libtpu: 0.0.40
codegen_flags: <defaults>
</compile_context>

<pallas_src>
import functools

import numpy as np
import jax
import jax.numpy as jnp
from jax import lax
from jax.experimental import pallas as pl
from jax.experimental.pallas import tpu as pltpu

_LANE = 128
_SUB = 8


def _round_up(x, m):
    return ((x + m - 1) // m) * m


def _entropy_kernel(act_ref, lab_ref, *rest, num_scales, spans, n_pixels,
                    tile_n, c_sub, cpad, sanitize):
    # act_ref : (1, tile_n, P)      activations (f32 / bf16)
    # lab_ref : (1, 1, tile_n)      int32 labels - 1  (< 0 = ignore)
    # rest    : S weight slabs (P_s, cpad) f32 0/1, coef (S, cpad) f32,
    #           dsel (c_sub, cpad) f32, then the output accumulator
    #           sum_ref (1, S, cpad) f32.
    w_refs = rest[:num_scales]
    coef_ref = rest[num_scales]
    dsel_ref = rest[num_scales + 1]
    sum_ref = rest[num_scales + 2]

    @pl.when(pl.program_id(2) == 0)
    def _():
        sum_ref[...] = jnp.zeros_like(sum_ref)

    # Transposed label one-hot: classes on sublanes, pixels on lanes.  Built
    # straight from the lane-dense label row (no relayout / transpose).
    lab = lab_ref[0]                                               # (1, tile_n)
    row_cls = lax.broadcasted_iota(jnp.int32, (c_sub, tile_n), 0)
    valid = row_cls == lab
    if sanitize:
        # Ragged last tile: pixels past N hold garbage -> mask them out.
        tile_idx = pl.program_id(1) * pl.num_programs(2) + pl.program_id(2)
        pix = lax.broadcasted_iota(jnp.int32, (c_sub, tile_n), 1) + tile_idx * tile_n
        valid = valid & (pix < n_pixels)
    onehot_t = jnp.where(valid, 1.0, 0.0).astype(jnp.float32)      # (c_sub, tile_n)

    dsel = dsel_ref[...]                                            # (c_sub, cpad)
    coef = coef_ref[...]                                            # (S, cpad)

    upd_rows = []
    for s in range(num_scales):
        lo, hi = spans[s]
        if hi <= lo:                       # scale owns no prototypes at all
            upd_rows.append(jnp.zeros((1, cpad), jnp.float32))
            continue
        a = act_ref[0, :, lo:hi].astype(jnp.float32)                # (tile_n, P_s)
        if sanitize:
            # out-of-bounds rows may hold non-finite garbage; keep math finite
            a = jnp.where(jnp.isfinite(a), a, 0.0)
        # Per-scale max shift.  Every (class, scale) group lies inside this
        # scale span, so this is a constant shift within each group and the
        # entropy below is mathematically exact.
        # TODO(synk): PyTorch shifts by the per-(class, scale) group max; results
        # only differ if the within-scale activation spread exceeds ~80 in f32.
        am = a - jnp.max(a, axis=-1, keepdims=True)                 # <= 0
        e = jnp.exp(am)
        w = w_refs[s][...]                                          # (P_s, cpad)
        z = jnp.dot(e, w, preferred_element_type=jnp.float32)       # (tile_n, cpad)
        sm = jnp.dot(e * am, w, preferred_element_type=jnp.float32)
        z = jnp.maximum(z, 1e-30)          # empty-group / underflow guard
        rz = pl.reciprocal(z, approx=True)                          # EUP slot
        rz = rz * (2.0 - z * rz)           # one Newton step -> ~f32 accurate
        # normalized entropy; coef zeroes empty / singleton / padding groups so
        # no NaN/Inf ever reaches the accumulator (gradients stay finite).
        ent = (jnp.log(z) - sm * rz) * coef[s:s + 1, :]
        ent = jnp.clip(ent, 0.0, 1.0)
        # Label-masked pixel sum via MXU:
        #   ms[r, c] = sum_n onehot_t[r, n] * ent[n, c];  dsel keeps r == c.
        ms = jnp.dot(onehot_t, ent, preferred_element_type=jnp.float32)
        upd_rows.append(jnp.sum(ms * dsel, axis=0, keepdims=True))  # (1, cpad)

    sum_ref[0] = sum_ref[0] + jnp.concatenate(upd_rows, axis=0)     # (S, cpad)


def _build_tables(identity, num_scales, scale_num_prototypes):
    """Static (trace-time) per-(scale, class) group tables."""
    identity = np.asarray(identity)
    P, C = identity.shape
    cpad = _round_up(C, _LANE)
    c_sub = max(_SUB, _round_up(C, _SUB))

    w_slabs = []
    spans = []
    coef = np.zeros((num_scales, cpad), np.float32)
    group_valid = np.zeros((num_scales, C), bool)
    for s in range(num_scales):
        lo, hi = scale_num_prototypes[s]
        lo, hi = int(lo), int(hi)
        spans.append((lo, hi))
        p_s = max(hi - lo, 0)
        w = np.zeros((max(p_s, _SUB), cpad), np.float32)
        if p_s > 0:
            w[:p_s, :C] = (identity[lo:hi, :] != 0).astype(np.float32)
        k = w[:, :C].sum(axis=0)
        for c in range(C):
            if k[c] >= 2:
                coef[s, c] = 1.0 / np.log(k[c])
                group_valid[s, c] = True
            # TODO(synk): k == 1 yields 0/0 (NaN) in the PyTorch code; singleton
            # groups are dropped here (coef = 0, excluded from the final mean).
        w_slabs.append(w if p_s > 0 else w)
    dsel = np.zeros((c_sub, cpad), np.float32)
    for c in range(C):
        dsel[c, c] = 1.0
    return w_slabs, coef, dsel, group_valid, spans, cpad, c_sub


def entropy_sampl_loss(prototype_activations, target_labels,
                       prototype_class_identity, num_scales,
                       scale_num_prototypes, max_tile_rows=None):
    identity = np.asarray(prototype_class_identity)
    P, C = identity.shape
    B = int(target_labels.shape[0])

    acts = jnp.asarray(prototype_activations).reshape(B, -1, P)
    if acts.dtype not in (np.dtype(jnp.bfloat16), np.dtype(np.float32)):
        acts = acts.astype(jnp.float32)      # keep bf16 inputs bf16 end-to-end
    labels = jnp.asarray(target_labels).reshape(B, -1).astype(jnp.int32) - 1
    N = int(acts.shape[1])
    itemsize = acts.dtype.itemsize

    (w_slabs, coef_np, dsel_np, group_valid_np, spans,
     cpad, c_sub) = _build_tables(identity, num_scales, scale_num_prototypes)
    p_max = max(max(hi - lo, 1) for lo, hi in spans)

    # ---- VMEM budget -> pixel tile size.  Accounts for double-buffered
    # inputs AND the in-kernel f32 temporaries; per-generation scoped limit. --
    try:
        phys_vmem = int(pltpu.get_tpu_info().vmem_capacity_bytes)
    except Exception:                       # noqa: BLE001 - be robust off-device
        phys_vmem = 64 * 1024 * 1024        # conservative (v7x per-core)
    vmem_limit = int(max(32, min(96, (phys_vmem >> 20) * 5 // 8)) << 20)

    fixed = 2 * sum(int(np.prod(w.shape)) * 4 for w in w_slabs)   # weight slabs
    fixed += 2 * (coef_np.size + dsel_np.size) * 4                # small consts
    fixed += 2 * _round_up(num_scales, _SUB) * cpad * 4           # accumulator
    per_row = 2 * P * itemsize              # double-buffered activation tile
    per_row += 2 * _SUB * 4                 # lane-dense label tile
    per_row += (4 * p_max + 4 * cpad + c_sub) * 4  # in-kernel f32 temporaries
    budget = vmem_limit - fixed - (4 << 20)
    cap = max(_LANE, min(2048, (budget // per_row) // _LANE * _LANE))
    if max_tile_rows is not None:
        cap = max(_LANE, min(cap, (int(max_tile_rows) // _LANE) * _LANE))

    if N <= cap:
        tile_n = N                           # one tile covers every pixel
    else:
        tile_n = cap
        cand = cap                           # prefer a divisor of N: no ragged tail
        while cand >= _LANE:
            if N % cand == 0:
                break
            cand -= _LANE
        if cand >= max(_LANE, cap // 2):
            tile_n = cand
    total_tiles = -(-N // tile_n)
    ragged = (N % tile_n) != 0
    # Extra "parallel" pixel-chunk axis keeps both v7x TensorCores busy even
    # at batch size 1 (no-op on single-TC v5e/v6e).
    n_chunks = 2 if (total_tiles >= 2 and total_tiles % 2 == 0) else 1
    tiles_per_chunk = total_tiles // n_chunks

    labels3 = labels.reshape(B, 1, N)
    w_args = [jnp.asarray(w) for w in w_slabs]
    coef_a = jnp.asarray(coef_np)
    dsel_a = jnp.asarray(dsel_np)

    kernel = functools.partial(
        _entropy_kernel, num_scales=num_scales, spans=tuple(spans),
        n_pixels=N, tile_n=tile_n, c_sub=c_sub, cpad=cpad, sanitize=ragged)

    in_specs = [
        pl.BlockSpec((1, tile_n, P),
                     lambda b, c, t: (b, c * tiles_per_chunk + t, 0)),
        pl.BlockSpec((1, 1, tile_n),
                     lambda b, c, t: (b, 0, c * tiles_per_chunk + t)),
    ]
    for w in w_args:
        in_specs.append(pl.BlockSpec(w.shape, lambda b, c, t: (0, 0)))
    in_specs.append(pl.BlockSpec(coef_a.shape, lambda b, c, t: (0, 0)))
    in_specs.append(pl.BlockSpec(dsel_a.shape, lambda b, c, t: (0, 0)))

    sums = pl.pallas_call(
        kernel,
        out_shape=jax.ShapeDtypeStruct((B * n_chunks, num_scales, cpad),
                                       jnp.float32),
        grid=(B, n_chunks, tiles_per_chunk),
        in_specs=in_specs,
        out_specs=pl.BlockSpec((1, num_scales, cpad),
                               lambda b, c, t: (b * n_chunks + c, 0, 0)),
        compiler_params=pltpu.CompilerParams(
            dimension_semantics=("parallel", "parallel", "arbitrary"),
            vmem_limit_bytes=vmem_limit),
    )(acts, labels3, *w_args, coef_a, dsel_a)

    # ---- tiny glue: per-class pixel counts (labels only) + final mean over
    # all present (image, class, scale) triples. ----
    cls_ids = jnp.arange(C, dtype=jnp.int32)
    cnt = jnp.sum(labels[:, :, None] == cls_ids[None, None, :],
                  axis=1).astype(jnp.float32)                       # (B, C)
    sums = jnp.sum(sums.reshape(B, n_chunks, num_scales, cpad), axis=1)[..., :C]
    group_valid = jnp.asarray(group_valid_np)                       # (S, C)
    present = (cnt[:, None, :] > 0.0) & group_valid[None, :, :]     # (B, S, C)
    means = jnp.where(present, sums / jnp.maximum(cnt[:, None, :], 1.0), 0.0)
    n_terms = jnp.sum(present)
    # TODO(synk): a class present in an image but owning no prototypes in some
    # scale is dropped here; the PyTorch code would raise on the empty stack.
    loss = jnp.where(n_terms > 0,
                     jnp.sum(means) / jnp.maximum(n_terms, 1).astype(jnp.float32),
                     jnp.float32(0.0))
    return loss


def _reference_loss(acts, labels, identity, num_scales, scale_num_prototypes):
    """NumPy port of the PyTorch forward, for verification."""
    B = labels.shape[0]
    P, C = identity.shape
    tl = labels.reshape(B, -1).astype(np.int64) - 1
    pa = acts.reshape(B, -1, P).astype(np.float64)
    losses = []
    for b in range(B):
        for c in np.unique(tl[b]):
            if c < 0 or c >= C:
                continue
            protos = np.nonzero(identity[:, c])[0]
            if len(protos) == 0:
                continue
            mask = tl[b] == c
            for s in range(num_scales):
                lo, hi = scale_num_prototypes[s]
                ps = [p for p in protos if lo <= p < hi]
                if len(ps) < 2:
                    # PyTorch raises (k==0) or yields NaN (k==1); kernel drops these.
                    continue
                ca = pa[b][mask][:, ps]                     # (npix, k)
                m = ca.max(-1, keepdims=True)
                e = np.exp(ca - m)
                z = e.sum(-1, keepdims=True)
                prob = e / z
                logp = (ca - m) - np.log(z)
                ent = (-prob * logp).sum(-1) / np.log(len(ps))
                losses.append(ent.mean())
    return float(np.mean(losses)) if losses else 0.0


if __name__ == "__main__":
    key = jax.random.PRNGKey(0)
    B, H, W = 2, 32, 32
    C, S, per = 4, 2, 2                 # 4 classes, 2 scales, 2 protos/class/scale
    P = C * S * per                     # 16 prototypes total

    # Prototype/class identity: scale 0 owns protos [0, 8), scale 1 owns [8, 16).
    identity = np.zeros((P, C), np.float32)
    scale_num_prototypes = {}
    idx = 0
    for s in range(S):
        start = s * C * per
        scale_num_prototypes[s] = (start, start + C * per)
        for c in range(C):
            for _ in range(per):
                identity[idx, c] = 1.0
                idx += 1

    k1, k2 = jax.random.split(key)
    prototype_activations = jax.random.normal(k1, (B, H * W, P), jnp.float32)
    target_labels = jax.random.randint(k2, (B, H, W), 0, C + 1).astype(jnp.int32)

    # max_tile_rows=256 forces a multi-tile, 2-chunk grid so the accumulator
    # path (pl.when init + per-tile updates) is exercised even at this size.
    loss = entropy_sampl_loss(prototype_activations, target_labels,
                              identity, S, scale_num_prototypes,
                              max_tile_rows=256)
    loss = jax.block_until_ready(loss)

    ref = _reference_loss(np.asarray(prototype_activations),
                          np.asarray(target_labels),
                          identity, S, scale_num_prototypes)
    assert abs(float(loss) - ref) < 2e-4, (float(loss), ref)
    print("KERNEL_OK")
</pallas_src>

<mosaic_0001>
module attributes {stable_mosaic.version = 11 : i64} {
  func.func @_entropy_kernel(%arg0: i32, %arg1: i32, %arg2: i32, %arg3: memref<1x256x16xf32, #tpu.memory_space<vmem>>, %arg4: memref<1x1x256xi32, #tpu.memory_space<vmem>>, %arg5: memref<8x128xf32, #tpu.memory_space<vmem>>, %arg6: memref<8x128xf32, #tpu.memory_space<vmem>>, %arg7: memref<2x128xf32, #tpu.memory_space<vmem>>, %arg8: memref<8x128xf32, #tpu.memory_space<vmem>>, %arg9: memref<1x2x128xf32, #tpu.memory_space<vmem>>) attributes {dimension_semantics = [#tpu.dimension_semantics<parallel>, #tpu.dimension_semantics<parallel>, #tpu.dimension_semantics<arbitrary>], iteration_bounds = array<i64: 2, 2, 2>, scalar_prefetch = 0 : i64, scratch_operands = 0 : i64, tpu.core_type = #tpu.core_type<tc>, window_params = [{transform_indices = @transform_0, window_bounds = array<i64: 1, 256, 16>}, {transform_indices = @transform_1, window_bounds = array<i64: 1, 1, 256>}, {pipeline_mode = #tpu.pipeline_mode<synchronous>, transform_indices = @transform_2, window_bounds = array<i64: 8, 128>}, {pipeline_mode = #tpu.pipeline_mode<synchronous>, transform_indices = @transform_3, window_bounds = array<i64: 8, 128>}, {pipeline_mode = #tpu.pipeline_mode<synchronous>, transform_indices = @transform_4, window_bounds = array<i64: 2, 128>}, {pipeline_mode = #tpu.pipeline_mode<synchronous>, transform_indices = @transform_5, window_bounds = array<i64: 8, 128>}, {transform_indices = @transform_6, window_bounds = array<i64: 1, 2, 128>}]} {
    %c0_i32 = arith.constant 0 : i32
    %0 = arith.cmpi eq, %arg2, %c0_i32 : i32
    %1 = arith.extui %0 : i1 to i32
    %c0_i32_0 = arith.constant 0 : i32
    %2 = arith.cmpi ne, %1, %c0_i32_0 : i32
    scf.if %2 {
      %cst_41 = arith.constant 0.000000e+00 : f32
      %84 = vector.broadcast %cst_41 : f32 to vector<1x2x128xf32>
      %c0_42 = arith.constant 0 : index
      %c0_43 = arith.constant 0 : index
      %c0_44 = arith.constant 0 : index
      %85 = vector.load %arg9[%c0_42, %c0_43, %c0_44] : memref<1x2x128xf32, #tpu.memory_space<vmem>>, vector<1x2x128xf32>
      tpu.vector_store %arg9[%c0_42, %c0_43, %c0_44], %84 {strides = array<i32>} : memref<1x2x128xf32, #tpu.memory_space<vmem>>, vector<1x2x128xf32>,
    } else {
    }
    %c0 = arith.constant 0 : index
    %c0_1 = arith.constant 0 : index
    %c0_2 = arith.constant 0 : index
    %3 = vector.load %arg4[%c0, %c0_1, %c0_2] : memref<1x1x256xi32, #tpu.memory_space<vmem>>, vector<1x1x256xi32>
    %4 = vector.shape_cast %3 : vector<1x1x256xi32> to vector<1x256xi32>
    %5 = tpu.iota {dimensions = array<i32: 0>} : vector<8x256xi32>
    %6 = vector.broadcast %4 : vector<1x256xi32> to vector<8x256xi32>
    %7 = arith.cmpi eq, %5, %6 : vector<8x256xi32>
    %cst = arith.constant 1.000000e+00 : f32
    %cst_3 = arith.constant 0.000000e+00 : f32
    %8 = vector.broadcast %cst : f32 to vector<8x256xf32>
    %9 = vector.broadcast %cst_3 : f32 to vector<8x256xf32>
    %10 = arith.select %7, %8, %9 : vector<8x256xi1>, vector<8x256xf32>
    %c0_4 = arith.constant 0 : index
    %c0_5 = arith.constant 0 : index
    %11 = vector.load %arg8[%c0_4, %c0_5] : memref<8x128xf32, #tpu.memory_space<vmem>>, vector<8x128xf32>
    %c0_6 = arith.constant 0 : index
    %c0_7 = arith.constant 0 : index
    %12 = vector.load %arg7[%c0_6, %c0_7] : memref<2x128xf32, #tpu.memory_space<vmem>>, vector<2x128xf32>
    %c0_8 = arith.constant 0 : index
    %c0_9 = arith.constant 0 : index
    %c0_10 = arith.constant 0 : index
    %13 = vector.load %arg3[%c0_8, %c0_9, %c0_10] : memref<1x256x16xf32, #tpu.memory_space<vmem>>, vector<1x256x8xf32>
    %14 = vector.shape_cast %13 : vector<1x256x8xf32> to vector<256x8xf32>
    %cst_11 = arith.constant dense<0xFF800000> : vector<256xf32>
    %15 = vector.multi_reduction <maximumf>, %14, %cst_11 [1] : vector<256x8xf32> to vector<256xf32>
    %16 = vector.shape_cast %15 : vector<256xf32> to vector<256x1xf32>
    %17 = vector.broadcast %16 : vector<256x1xf32> to vector<256x8xf32>
    %18 = arith.subf %14, %17 : vector<256x8xf32>
    %19 = math.exp %18 : vector<256x8xf32>
    %c0_12 = arith.constant 0 : index
    %c0_13 = arith.constant 0 : index
    %20 = vector.load %arg5[%c0_12, %c0_13] : memref<8x128xf32, #tpu.memory_space<vmem>>, vector<8x128xf32>
    %cst_14 = arith.constant dense<0.000000e+00> : vector<256x128xf32>
    %21 = tpu.matmul %19, %20, %cst_14 {dimension_numbers = #tpu.dot_dimension_numbers<[1], [0], [0], [1], [0, 0, 1, 1], [], []>} : vector<256x8xf32>, vector<8x128xf32>, vector<256x128xf32> -> vector<256x128xf32>
    %22 = arith.mulf %19, %18 : vector<256x8xf32>
    %cst_15 = arith.constant dense<0.000000e+00> : vector<256x128xf32>
    %23 = tpu.matmul %22, %20, %cst_15 {dimension_numbers = #tpu.dot_dimension_numbers<[1], [0], [0], [1], [0, 0, 1, 1], [], []>} : vector<256x8xf32>, vector<8x128xf32>, vector<256x128xf32> -> vector<256x128xf32>
    %cst_16 = arith.constant 1.000000e-30 : f32
    %24 = vector.broadcast %cst_16 : f32 to vector<256x128xf32>
    %25 = arith.maximumf %21, %24 : vector<256x128xf32>
    %26 = tpu.reciprocal %25 {approx = true} : vector<256x128xf32> -> vector<256x128xf32>
    %27 = arith.mulf %25, %26 : vector<256x128xf32>
    %cst_17 = arith.constant 2.000000e+00 : f32
    %28 = vector.broadcast %cst_17 : f32 to vector<256x128xf32>
    %29 = arith.subf %28, %27 : vector<256x128xf32>
    %30 = arith.mulf %26, %29 : vector<256x128xf32>
    %31 = math.log %25 : vector<256x128xf32>
    %32 = arith.mulf %23, %30 : vector<256x128xf32>
    %33 = arith.subf %31, %32 : vector<256x128xf32>
    %34 = vector.extract_strided_slice %12 {offsets = [0, 0], sizes = [1, 128], strides = [1, 1]} : vector<2x128xf32> to vector<1x128xf32>
    %35 = vector.broadcast %34 : vector<1x128xf32> to vector<256x128xf32>
    %36 = arith.mulf %33, %35 : vector<256x128xf32>
    %cst_18 = arith.constant 0.000000e+00 : f32
    %cst_19 = arith.constant 1.000000e+00 : f32
    %37 = vector.broadcast %cst_18 : f32 to vector<256x128xf32>
    %38 = arith.maximumf %37, %36 : vector<256x128xf32>
    %39 = vector.broadcast %cst_19 : f32 to vector<256x128xf32>
    %40 = arith.minimumf %39, %38 : vector<256x128xf32>
    %cst_20 = arith.constant dense<0.000000e+00> : vector<8x128xf32>
    %41 = tpu.matmul %10, %40, %cst_20 {dimension_numbers = #tpu.dot_dimension_numbers<[1], [0], [0], [1], [0, 0, 1, 1], [], []>} : vector<8x256xf32>, vector<256x128xf32>, vector<8x128xf32> -> vector<8x128xf32>
    %42 = arith.mulf %41, %11 : vector<8x128xf32>
    %cst_21 = arith.constant dense<0.000000e+00> : vector<128xf32>
    %43 = vector.multi_reduction <add>, %42, %cst_21 [0] : vector<8x128xf32> to vector<128xf32>
    %44 = vector.shape_cast %43 : vector<128xf32> to vector<1x128xf32>
    %c0_22 = arith.constant 0 : index
    %c0_23 = arith.constant 0 : index
    %c8 = arith.constant 8 : index
    %45 = vector.load %arg3[%c0_22, %c0_23, %c8] : memref<1x256x16xf32, #tpu.memory_space<vmem>>, vector<1x256x8xf32>
    %46 = vector.shape_cast %45 : vector<1x256x8xf32> to vector<256x8xf32>
    %cst_24 = arith.constant dense<0xFF800000> : vector<256xf32>
    %47 = vector.multi_reduction <maximumf>, %46, %cst_24 [1] : vector<256x8xf32> to vector<256xf32>
    %48 = vector.shape_cast %47 : vector<256xf32> to vector<256x1xf32>
    %49 = vector.broadcast %48 : vector<256x1xf32> to vector<256x8xf32>
    %50 = arith.subf %46, %49 : vector<256x8xf32>
    %51 = math.exp %50 : vector<256x8xf32>
    %c0_25 = arith.constant 0 : index
    %c0_26 = arith.constant 0 : index
    %52 = vector.load %arg6[%c0_25, %c0_26] : memref<8x128xf32, #tpu.memory_space<vmem>>, vector<8x128xf32>
    %cst_27 = arith.constant dense<0.000000e+00> : vector<256x128xf32>
    %53 = tpu.matmul %51, %52, %cst_27 {dimension_numbers = #tpu.dot_dimension_numbers<[1], [0], [0], [1], [0, 0, 1, 1], [], []>} : vector<256x8xf32>, vector<8x128xf32>, vector<256x128xf32> -> vector<256x128xf32>
    %54 = arith.mulf %51, %50 : vector<256x8xf32>
    %cst_28 = arith.constant dense<0.000000e+00> : vector<256x128xf32>
    %55 = tpu.matmul %54, %52, %cst_28 {dimension_numbers = #tpu.dot_dimension_numbers<[1], [0], [0], [1], [0, 0, 1, 1], [], []>} : vector<256x8xf32>, vector<8x128xf32>, vector<256x128xf32> -> vector<256x128xf32>
    %cst_29 = arith.constant 1.000000e-30 : f32
    %56 = vector.broadcast %cst_29 : f32 to vector<256x128xf32>
    %57 = arith.maximumf %53, %56 : vector<256x128xf32>
    %58 = tpu.reciprocal %57 {approx = true} : vector<256x128xf32> -> vector<256x128xf32>
    %59 = arith.mulf %57, %58 : vector<256x128xf32>
    %cst_30 = arith.constant 2.000000e+00 : f32
    %60 = vector.broadcast %cst_30 : f32 to vector<256x128xf32>
    %61 = arith.subf %60, %59 : vector<256x128xf32>
    %62 = arith.mulf %58, %61 : vector<256x128xf32>
    %63 = math.log %57 : vector<256x128xf32>
    %64 = arith.mulf %55, %62 : vector<256x128xf32>
    %65 = arith.subf %63, %64 : vector<256x128xf32>
    %66 = vector.extract_strided_slice %12 {offsets = [1, 0], sizes = [1, 128], strides = [1, 1]} : vector<2x128xf32> to vector<1x128xf32>
    %67 = vector.broadcast %66 : vector<1x128xf32> to vector<256x128xf32>
    %68 = arith.mulf %65, %67 : vector<256x128xf32>
    %cst_31 = arith.constant 0.000000e+00 : f32
    %cst_32 = arith.constant 1.000000e+00 : f32
    %69 = vector.broadcast %cst_31 : f32 to vector<256x128xf32>
    %70 = arith.maximumf %69, %68 : vector<256x128xf32>
    %71 = vector.broadcast %cst_32 : f32 to vector<256x128xf32>
    %72 = arith.minimumf %71, %70 : vector<256x128xf32>
    %cst_33 = arith.constant dense<0.000000e+00> : vector<8x128xf32>
    %73 = tpu.matmul %10, %72, %cst_33 {dimension_numbers = #tpu.dot_dimension_numbers<[1], [0], [0], [1], [0, 0, 1, 1], [], []>} : vector<8x256xf32>, vector<256x128xf32>, vector<8x128xf32> -> vector<8x128xf32>
    %74 = arith.mulf %73, %11 : vector<8x128xf32>
    %cst_34 = arith.constant dense<0.000000e+00> : vector<128xf32>
    %75 = vector.multi_reduction <add>, %74, %cst_34 [0] : vector<8x128xf32> to vector<128xf32>
    %76 = vector.shape_cast %75 : vector<128xf32> to vector<1x128xf32>
    %c0_35 = arith.constant 0 : index
    %c0_36 = arith.constant 0 : index
    %c0_37 = arith.constant 0 : index
    %77 = vector.load %arg9[%c0_35, %c0_36, %c0_37] : memref<1x2x128xf32, #tpu.memory_space<vmem>>, vector<1x2x128xf32>
    %78 = vector.shape_cast %77 : vector<1x2x128xf32> to vector<2x128xf32>
    %79 = tpu.concatenate %44, %76 in 0 : vector<1x128xf32>, vector<1x128xf32> -> vector<2x128xf32>
    %80 = arith.addf %78, %79 : vector<2x128xf32>
    %c0_38 = arith.constant 0 : index
    %c0_39 = arith.constant 0 : index
    %c0_40 = arith.constant 0 : index
    %81 = vector.load %arg9[%c0_38, %c0_39, %c0_40] : memref<1x2x128xf32, #tpu.memory_space<vmem>>, vector<1x2x128xf32>
    %82 = vector.shape_cast %81 : vector<1x2x128xf32> to vector<2x128xf32>
    %83 = vector.shape_cast %80 : vector<2x128xf32> to vector<1x2x128xf32>
    tpu.vector_store %arg9[%c0_38, %c0_39, %c0_40], %83 {strides = array<i32>} : memref<1x2x128xf32, #tpu.memory_space<vmem>>, vector<1x2x128xf32>,
    return
  }
  func.func @transform_0(%arg0: i32, %arg1: i32, %arg2: i32) -> (i32, i32, i32) {
    %c2_i32 = arith.constant 2 : i32
    %0 = arith.muli %arg1, %c2_i32 : i32
    %1 = arith.addi %0, %arg2 : i32
    %c0_i32 = arith.constant 0 : i32
    %c0_i32_0 = arith.constant 0 : i32
    return %arg0, %1, %c0_i32 : i32, i32, i32
  }
  func.func @transform_1(%arg0: i32, %arg1: i32, %arg2: i32) -> (i32, i32, i32) {
    %c2_i32 = arith.constant 2 : i32
    %0 = arith.muli %arg1, %c2_i32 : i32
    %1 = arith.addi %0, %arg2 : i32
    %c0_i32 = arith.constant 0 : i32
    %c0_i32_0 = arith.constant 0 : i32
    return %arg0, %c0_i32, %1 : i32, i32, i32
  }
  func.func @transform_2(%arg0: i32, %arg1: i32, %arg2: i32) -> (i32, i32) {
    %c0_i32 = arith.constant 0 : i32
    %c0_i32_0 = arith.constant 0 : i32
    %c0_i32_1 = arith.constant 0 : i32
    return %c0_i32, %c0_i32_0 : i32, i32
  }
  func.func @transform_3(%arg0: i32, %arg1: i32, %arg2: i32) -> (i32, i32) {
    %c0_i32 = arith.constant 0 : i32
    %c0_i32_0 = arith.constant 0 : i32
    %c0_i32_1 = arith.constant 0 : i32
    return %c0_i32, %c0_i32_0 : i32, i32
  }
  func.func @transform_4(%arg0: i32, %arg1: i32, %arg2: i32) -> (i32, i32) {
    %c0_i32 = arith.constant 0 : i32
    %c0_i32_0 = arith.constant 0 : i32
    %c0_i32_1 = arith.constant 0 : i32
    return %c0_i32, %c0_i32_0 : i32, i32
  }
  func.func @transform_5(%arg0: i32, %arg1: i32, %arg2: i32) -> (i32, i32) {
    %c0_i32 = arith.constant 0 : i32
    %c0_i32_0 = arith.constant 0 : i32
    %c0_i32_1 = arith.constant 0 : i32
    return %c0_i32, %c0_i32_0 : i32, i32
  }
  func.func @transform_6(%arg0: i32, %arg1: i32, %arg2: i32) -> (i32, i32, i32) {
    %c2_i32 = arith.constant 2 : i32
    %0 = arith.muli %arg0, %c2_i32 : i32
    %1 = arith.addi %0, %arg1 : i32
    %c0_i32 = arith.constant 0 : i32
    %c0_i32_0 = arith.constant 0 : i32
    %c0_i32_1 = arith.constant 0 : i32
    return %1, %c0_i32, %c0_i32_0 : i32, i32, i32
  }
}

</mosaic_0001>

<bundles_post_ra>
// kernel: tpu_custom_call.1
= control target key start
LH: loop header
LB: loop body
LE: loop exit
PB: predicated region body
PF: predicated region fallthrough
CT: control target
= control target key end

     0   :  { %11 = vsyncpa [#allocation3], 0  ;;  %s6516_s0 = inlined_call_operand.vmem [shape: f32[2,1024,16], index: 0, kind: input, shape index: {}]   ;;  %s6517_s1 = inlined_call_operand.vmem [shape: s32[2,1,1024], index: 1, kind: input, shape index: {}]   ;;  %s6518_s2 = inlined_call_operand.vmem [shape: f32[8,128], index: 2, kind: input, shape index: {}]   ;;  %s6519_s3 = inlined_call_operand.vmem [shape: f32[8,128], index: 3, kind: input, shape index: {}]   ;;  %s6520_s4 = inlined_call_operand.vmem [shape: f32[2,128], index: 4, kind: input, shape index: {}]   ;;  %s6521_s5 = inlined_call_operand.vmem [shape: f32[8,128], index: 5, kind: input, shape index: {}]   ;;  %s6522_s6 = inlined_call_operand.hbm [shape: f32[4,2,128], index: 6, kind: output, shape index: {}]  }
   0x1   :  { %13 = vsyncpa [#allocation3 + $0x1], 0  ;;  %s4578_s21 = smov 0   ;;  %s4580_s22 = smov 0  }
   0x2   :  { %s4582_s23 = smov 0   ;;  %s4584_s24 = smov 0  }
   0x3   :  { %s4586_s25 = smov 0   ;;  %s4588_s26 = smov 0  }
   0x4   :  { %s4590_s27 = smov 0   ;;  %s4592_s28 = smov 0  }
   0x5   :  { %s4594_s29 = smov 0   ;;  %s4596_s30 = smov 0  }
   0x6 LB: > { %6543 = sst [smem:[#allocation5_spill]] %s4509_s23  ;;  %s3320_s7 = sadd.s32 4294967295, %s4537_s30   ;;  %s4537_s30 = sphi %s4596_s30, %s19_s30   ;;  %s4533_s29 = sphi %s4594_s29, %s6623_s29   ;;  %s4529_s28 = sphi %s4592_s28, %s6622_s28   ;;  %s4525_s27 = sphi %s4590_s27, %s6621_s27   ;;  %s4521_s26 = sphi %s4588_s26, %s6620_s26   ;;  %s4517_s25 = sphi %s4586_s25, %s6619_s25   ;;  %s4513_s24 = sphi %s4584_s24, %s6618_s24   ;;  %s4509_s23 = sphi %s4582_s23, %s6617_s23   ;;  %s4505_s22 = sphi %s4580_s22, %s6625_s22   ;;  %s4501_s21 = sphi %s4578_s21, %s6624_s21  }
   0x7   : > { %6544 = sst [smem:[#allocation6_spill]] %s4525_s27  ;;  %s31_s8 = sadd.s32 1, %s4525_s27 }
   0x8   : > { %6545 = sst [smem:[#allocation7_spill]] %s4529_s28  ;;  %p32_p0 = scmp.ge.s32.totalorder %s31_s8, 2 }
   0x9   : > { %6546 = sst [smem:[#allocation8_spill]] %s4533_s29  ;;  %s34_s9 = sadd.s32 1, %s4529_s28 }
   0xa   : > { %s3321_s10 = sadd.s32 4294967294, %s4537_s30   ;;  %s38_s11 = sadd.s32 1, %s4533_s29 }
   0xb   : > { %s6627_s8 = smov (%p32_p0, %s31_s8), 0  ;;  %s6629_s9 = smov (!%p32_p0, %s34_s9), %s4529_s28 }
   0xc   : > { %6547 = sst [smem:[#allocation9_spill]] %s6627_s8  ;;  %s3326_s12 = sshll.u32 %s4533_s29, 1 }
   0xd   : > { %p207_p1 = scmp.ne.s32.totalorder %s4509_s23, %s4505_s22  ;;  %p36_p2 = scmp.ge.s32.totalorder %s6629_s9, 2 }
   0xe   : > { %p208_p3 = scmp.eq.s32.totalorder %s3320_s7, 7  ;;  %p213_p4 = scmp.ne.s32.totalorder %s4505_s22, %s4501_s21 }
   0xf   : > { %p214_p5 = scmp.eq.s32.totalorder %s3321_s10, 7  ;;  %s6631_s9 = smov (%p36_p2, %s6629_s9), 0 }
  0x10   : > { %6548 = sst [smem:[#allocation10_spill]] %s6631_s9  ;;  %s6633_s11 = smov (!%p36_p2, %s38_s11), %s4533_s29 }
  0x11   : > { %p4644_p6 = por %p208_p3, %p207_p1  ;;  %p4648_p7 = por %p214_p5, %p213_p4 }
  0x12   : > { %p40_p8 = scmp.ge.s32.totalorder %s6633_s11, 2  ;;  %p3330_p9 = scmp.ge.s32.totalorder %s4537_s30, 1 }
  0x13   : > { %p277_p10 = scmp.lt.s32.totalorder %s4537_s30, 9  ;;  %s191_s15 = sadd.s32 %s4529_s28, %s3326_s12 }
  0x14   : > { %s6635_s11 = smov (%p40_p8, %s6633_s11), 0  ;;  %s197_s19 = sadd.s32 1, %s4509_s23 }
  0x15   : > { %6551 = sst [smem:[#allocation11_spill]] %s6635_s11  ;;  %p278_p11 = pnand %p3330_p9, %p277_p10 }
  0x16   : > { %s3327_s16 = sshll.u32 %s6635_s11, 1 }
  0x17   : > { %s193_s17 = sadd.s32 %s3327_s16, %s6631_s9  ;;  %281 = sbr.rel (%p278_p11) target bundleno = 1095 (0x447), region = 44 }
  0x18   : > { %s194_s18 = ssub.s32 %s191_s15, %s193_s17 }
  0x19   : > { %p195_p12 = scmp.eq.s32.totalorder %s194_s18, 0 }
  0x1b   : > { %s4661_s20 = scalar_select %p195_p12, %s4509_s23, %s197_s19  }
  0x1d   : > { %6552 = sst [smem:[#allocation12_spill]] %s4661_s20 }
  0x1e   : > { %s6528_s7 = sand.u32 1, %s4505_s22   ;;  %s3332_s10 = sshll.u32 %s4517_s25, 1 }
  0x1f   : > { %s3331_s8 = sshll.u32 %s6528_s7, 1  ;;  %s324_s12 = sadd.s32 %s4513_s24, %s3332_s10 }
  0x20   : > { %s3333_s29 = sshll.u32 %s324_s12, 5  ;;  %p326_p13 = scmp.lt.s32.totalorder %s4521_s26, 1 }
  0x21   : > { %p328_p0 = scmp.lt.s32.totalorder %s3333_s29, 127  ;;  %s3337_s15 = sshll.u32 %s324_s12, 1 }
  0x22   : > { %s327_s16 = scalar_select %p326_p13, %s4521_s26, 1 }
  0x23   : > { %s6637_s29 = smov (!%p328_p0, %s3333_s29), 127  ;;  %p342_p1 = scmp.lt.s32.totalorder %s3337_s15, 7 }
  0x24   : > { %s3334_s17 = sshll.u32 %s327_s16, 7  ;;  %s3338_s27 = sshll.u32 %s327_s16, 3 }
  0x25   : > { %s331_s18 = sadd.s32 %s3334_s17, %s6637_s29  ;;  %s6639_s15 = smov (!%p342_p1, %s3337_s15), 7 }
  0x26   : > { %s3335_s19 = sshll.u32 %s331_s18, 3  ;;  %s345_s20 = sadd.s32 %s3338_s27, %s6639_s15 }
  0x27   : > { %s4673_s28 = scalar_lea.vmem %s6516_s0, %s3335_s19  ;;  %s4678_s23 = scalar_lea.vmem %s6517_s1, %s345_s20 }
  0x28   : > { %s4680_s12 = scalar_lea.vmem [#allocation2], %s3331_s8  ;;  %p3339_p2 = scmp.ne.s32.totalorder %s4513_s24, 0 }
  0x29   : > { %v4539_v0 = vmov (!%p3339_p2), 0.0  }
  0x2a   : > { %355 = sbr.rel (%p3339_p2) target bundleno = 49 (0x31), region = 48  ;;  %356 = vst [vmem:[%s4680_s12] sm:$0x3] (!%p3339_p2), %v4539_v0 }
  0x31 PF: > { %v4685_v1 = vld [vmem:[%s4673_s28 + $0x10] sm:$0xff]  ;;  %vm406_vm0 = vcmask 64512   ;;  %v4688_v2 = vld [vmem:[%s4673_s28] sm:$0xff]  ;;  %v4691_v3 = vld [vmem:[%s4673_s28 + $0x18] sm:$0xff]  ;;  %vm1739_vm1 = vcmask 130112   ;;  %s4540_s29 = smov 120  }
  0x32   : > { %v413_v4 = vsel %vm406_vm0, %v4685_v1, -inf  ;;  %v407_v5 = vsel %vm406_vm0, %v4688_v2, -inf  ;;  %v4698_v6 = vld [vmem:[%s4673_s28 + $0x8] sm:$0xff]  ;;  %v416_v7 = vsel %vm406_vm0, %v4691_v3, -inf  ;;  %v4708_v10 = vld [vmem:[%s4673_s28 + $0x20] sm:$0xff]  ;;  %v4715_v13 = vld [vmem:[%s4673_s28 + $0x38] sm:$0xff] }
  0x33   : > { %414 = vmax.xlane.f32.xlu1 %v413_v4  ;;  %408 = vmax.xlane.f32.xlu0 %v407_v5  ;;  %v410_v8 = vsel %vm406_vm0, %v4698_v6, -inf  ;;  %v4705_v9 = vld [vmem:[%s4673_s28 + $0x28] sm:$0xff]  ;;  %v419_v12 = vsel %vm406_vm0, %v4708_v10, -inf  ;;  %v4718_v14 = vld [vmem:[%s4673_s28 + $0x30] sm:$0xff]  ;;  %v428_v15 = vsel %vm406_vm0, %v4715_v13, -inf  ;;  %v4728_v18 = vld [vmem:[%s4673_s28 + $0x40] sm:$0xff] }
  0x34   : > { %v422_v11 = vsel %vm406_vm0, %v4705_v9, -inf  ;;  %v425_v16 = vsel %vm406_vm0, %v4718_v14, -inf  ;;  %v4725_v17 = vld [vmem:[%s4673_s28 + $0x48] sm:$0xff]  ;;  %v431_v20 = vsel %vm406_vm0, %v4728_v18, -inf  ;;  %v4735_v21 = vld [vmem:[%s4673_s28 + $0x58] sm:$0xff]  ;;  %v4738_v22 = vld [vmem:[%s4673_s28 + $0x50] sm:$0xff] }
  0x35   : > { %v434_v19 = vsel %vm406_vm0, %v4725_v17, -inf  ;;  %v440_v23 = vsel %vm406_vm0, %v4735_v21, -inf  ;;  %v437_v24 = vsel %vm406_vm0, %v4738_v22, -inf  ;;  %v4745_v25 = vld [vmem:[%s4673_s28 + $0x68] sm:$0xff]  ;;  %v4748_v26 = vld [vmem:[%s4673_s28 + $0x60] sm:$0xff]  ;;  %v4755_v29 = vld [vmem:[%s4673_s28 + $0x78] sm:$0xff] }
  0x36   : > { %v446_v27 = vsel %vm406_vm0, %v4745_v25, -inf  ;;  %v443_v28 = vsel %vm406_vm0, %v4748_v26, -inf  ;;  %v4758_v30 = vld [vmem:[%s4673_s28 + $0x70] sm:$0xff]  ;;  %v452_v31 = vsel %vm406_vm0, %v4755_v29, -inf  ;;  %v4765_v33 = vld [vmem:[%s4673_s28 + $0x88] sm:$0xff]  ;;  %v4768_v34 = vld [vmem:[%s4673_s28 + $0x80] sm:$0xff] }
  0x37   : > { %417 = vmax.xlane.f32.xlu1 %v416_v7  ;;  %411 = vmax.xlane.f32.xlu0 %v410_v8  ;;  %v449_v32 = vsel %vm406_vm0, %v4758_v30, -inf  ;;  %v458_v35 = vsel %vm406_vm0, %v4765_v33, -inf  ;;  %v455_v36 = vsel %vm406_vm0, %v4768_v34, -inf  ;;  %v4775_v37 = vld [vmem:[%s4673_s28 + $0x98] sm:$0xff]  ;;  %v4778_v38 = vld [vmem:[%s4673_s28 + $0x90] sm:$0xff]  ;;  %v599_v39 = vld [vmem:[%s6518_s2] sm:$0xff] }
  0x38   : > { %v464_v40 = vsel %vm406_vm0, %v4775_v37, -inf  ;;  %v461_v41 = vsel %vm406_vm0, %v4778_v38, -inf  ;;  %3679 = vmatprep.subr.mxu0 %v599_v39  ;;  %3729 = vmatprep.subr.mxu1 %v599_v39  ;;  %v4788_v42 = vld [vmem:[%s4673_s28 + $0xa8] sm:$0xff]  ;;  %v4791_v43 = vld [vmem:[%s4673_s28 + $0xa0] sm:$0xff]  ;;  %v4798_v46 = vld [vmem:[%s4673_s28 + $0xb8] sm:$0xff]  ;;  %v1743_v5 = vsel %vm1739_vm1, %v4698_v6, -inf }
  0x39   : > { %3680 = vmatpush3.msra.mxu0 %v599_v39  ;;  %3730 = vmatpush3.msra.mxu1 %v599_v39  ;;  %v470_v44 = vsel %vm406_vm0, %v4788_v42, -inf  ;;  %v467_v45 = vsel %vm406_vm0, %v4791_v43, -inf  ;;  %v4801_v47 = vld [vmem:[%s4673_s28 + $0xb0] sm:$0xff]  ;;  %v476_v48 = vsel %vm406_vm0, %v4798_v46, -inf  ;;  %v4808_v50 = vld [vmem:[%s4673_s28 + $0xc8] sm:$0xff]  ;;  %v4811_v51 = vld [vmem:[%s4673_s28 + $0xc0] sm:$0xff] }
  0x3a   : > { %v473_v49 = vsel %vm406_vm0, %v4801_v47, -inf  ;;  %v482_v52 = vsel %vm406_vm0, %v4808_v50, -inf  ;;  %v479_v53 = vsel %vm406_vm0, %v4811_v51, -inf  ;;  %v4818_v54 = vld [vmem:[%s4673_s28 + $0xd8] sm:$0xff]  ;;  %v4821_v55 = vld [vmem:[%s4673_s28 + $0xd0] sm:$0xff]  ;;  %v4828_v58 = vld [vmem:[%s4673_s28 + $0xe8] sm:$0xff] }
  0x3b   : > { %423 = vmax.xlane.f32.xlu1 %v422_v11  ;;  %420 = vmax.xlane.f32.xlu0 %v419_v12  ;;  %v488_v56 = vsel %vm406_vm0, %v4818_v54, -inf  ;;  %v485_v57 = vsel %vm406_vm0, %v4821_v55, -inf  ;;  %v4831_v59 = vld [vmem:[%s4673_s28 + $0xe0] sm:$0xff]  ;;  %v494_v60 = vsel %vm406_vm0, %v4828_v58, -inf  ;;  %v4838_v62 = vld [vmem:[%s4673_s28 + $0xf8] sm:$0xff]  ;;  %v4841_v63 = vld [vmem:[%s4673_s28 + $0xf0] sm:$0xff] }
  0x3c   : > { %v491_v61 = vsel %vm406_vm0, %v4831_v59, -inf  ;;  %v500_v0 = vsel %vm406_vm0, %v4838_v62, -inf  ;;  %v497_v4 = vsel %vm406_vm0, %v4841_v63, -inf  ;;  %v1740_v7 = vsel %vm1739_vm1, %v4688_v2, -inf  ;;  %s3473_s18 = sshll.u32 %s4521_s26, 1  ;;  %s3221_s24 = sshll.u32 %s4680_s12, 4  ;;  %s6456_s24 = int_to_ptr.vmem [resolvable:$true] %s3221_s24 }
  0x3d   : > { %v1746_v8 = vsel %vm1739_vm1, %v4685_v1, -inf  ;;  %v1749_v11 = vsel %vm1739_vm1, %v4691_v3, -inf  ;;  %v1752_v12 = vsel %vm1739_vm1, %v4708_v10, -inf  ;;  %v1791_v39 = vsel %vm1739_vm1, %v4765_v33, -inf  ;;  %s3214_s19 = sadd.s32 %s4517_s25, %s3473_s18  ;;  %s6615_s25 = sand.u32 1, %s4505_s22  }
  0x3e   : > { %vm3201_vm4 = vcmask 1040384   ;;  %s3474_s10 = sshll.u32 %s3214_s19, 5  ;;  %s3206_s26 = scalar_lea.sflag [#allocation3], %s6615_s25 }
  0x3f   : > { %429 = vmax.xlane.f32.xlu1 %v428_v15  ;;  %426 = vmax.xlane.f32.xlu0 %v425_v16  ;;  %v1755_v15 = vsel %vm1739_vm1, %v4705_v9, -inf  ;;  %v1758_v16 = vsel %vm1739_vm1, %v4718_v14, -inf  ;;  %s6454_s8 = scalar_lea.hbm %s6522_s6, %s3474_s10  ;;  %s4427_s9 = scalar_lea.vmem %s6456_s24, 32 }
  0x40   : > { %p4428_p3 = scmp.ne.s32.totalorder %s6456_s24, %s4427_s9 }
  0x42   : > { %p4429_p4 = pnand %p4428_p3, %p4644_p6 }
  0x43   : > { %435 = vmax.xlane.f32.xlu1 %v434_v19  ;;  %432 = vmax.xlane.f32.xlu0 %v431_v20  ;;  %v1761_v19 = vsel %vm1739_vm1, %v4715_v13, -inf  ;;  %v1764_v20 = vsel %vm1739_vm1, %v4728_v18, -inf }
  0x44   : > { %p4430_p5 = pneg %p4429_p4 }
  0x47   : > { %441 = vmax.xlane.f32.xlu1 %v440_v23  ;;  %438 = vmax.xlane.f32.xlu0 %v437_v24  ;;  %v1767_v23 = vsel %vm1739_vm1, %v4725_v17, -inf  ;;  %v1770_v24 = vsel %vm1739_vm1, %v4738_v22, -inf }
  0x4b   : > { %447 = vmax.xlane.f32.xlu1 %v446_v27  ;;  %444 = vmax.xlane.f32.xlu0 %v443_v28  ;;  %v1773_v27 = vsel %vm1739_vm1, %v4735_v21, -inf  ;;  %v1776_v28 = vsel %vm1739_vm1, %v4748_v26, -inf }
  0x4f   : > { %453 = vmax.xlane.f32.xlu1 %v452_v31  ;;  %450 = vmax.xlane.f32.xlu0 %v449_v32  ;;  %v1779_v31 = vsel %vm1739_vm1, %v4745_v25, -inf  ;;  %v1782_v32 = vsel %vm1739_vm1, %v4758_v30, -inf }
  0x53   : > { %459 = vmax.xlane.f32.xlu1 %v458_v35  ;;  %456 = vmax.xlane.f32.xlu0 %v455_v36  ;;  %v1785_v35 = vsel %vm1739_vm1, %v4755_v29, -inf  ;;  %v1788_v36 = vsel %vm1739_vm1, %v4768_v34, -inf }
  0x57   : > { %465 = vmax.xlane.f32.xlu1 %v464_v40  ;;  %462 = vmax.xlane.f32.xlu0 %v461_v41  ;;  %v1794_v40 = vsel %vm1739_vm1, %v4778_v38, -inf  ;;  %v1797_v41 = vsel %vm1739_vm1, %v4775_v37, -inf }
  0x5b   : > { %471 = vmax.xlane.f32.xlu1 %v470_v44  ;;  %468 = vmax.xlane.f32.xlu0 %v467_v45  ;;  %v1800_v44 = vsel %vm1739_vm1, %v4791_v43, -inf  ;;  %v1803_v45 = vsel %vm1739_vm1, %v4788_v42, -inf }
  0x5f   : > { %477 = vmax.xlane.f32.xlu1 %v476_v48  ;;  %474 = vmax.xlane.f32.xlu0 %v473_v49  ;;  %v1806_v48 = vsel %vm1739_vm1, %v4801_v47, -inf  ;;  %v1809_v49 = vsel %vm1739_vm1, %v4798_v46, -inf }
  0x63   : > { %483 = vmax.xlane.f32.xlu1 %v482_v52  ;;  %480 = vmax.xlane.f32.xlu0 %v479_v53  ;;  %v1812_v52 = vsel %vm1739_vm1, %v4811_v51, -inf  ;;  %v1815_v53 = vsel %vm1739_vm1, %v4808_v50, -inf }
  0x67   : > { %489 = vmax.xlane.f32.xlu1 %v488_v56  ;;  %486 = vmax.xlane.f32.xlu0 %v485_v57  ;;  %v1818_v56 = vsel %vm1739_vm1, %v4821_v55, -inf  ;;  %v1821_v57 = vsel %vm1739_vm1, %v4818_v54, -inf }
  0x6b   : > { %495 = vmax.xlane.f32.xlu1 %v494_v60  ;;  %492 = vmax.xlane.f32.xlu0 %v491_v61  ;;  %v1824_v60 = vsel %vm1739_vm1, %v4831_v59, -inf  ;;  %v1827_v61 = vsel %vm1739_vm1, %v4828_v58, -inf }
  0x6f   : > { %501 = vmax.xlane.f32.xlu1 %v500_v0  ;;  %498 = vmax.xlane.f32.xlu0 %v497_v4  ;;  %v1830_v0 = vsel %vm1739_vm1, %v4841_v63, -inf  ;;  %v1833_v4 = vsel %vm1739_vm1, %v4838_v62, -inf }
  0x73   : > { %1744 = vmax.xlane.f32.xlu1 %v1743_v5  ;;  %1741 = vmax.xlane.f32.xlu0 %v1740_v7 }
  0x77   : > { %1747 = vmax.xlane.f32.xlu0 %v1746_v8  ;;  %1750 = vmax.xlane.f32.xlu1 %v1749_v11 }
  0x7b   : > { %1753 = vmax.xlane.f32.xlu0 %v1752_v12  ;;  %1756 = vmax.xlane.f32.xlu1 %v1755_v15 }
  0x7f   : > { %1759 = vmax.xlane.f32.xlu0 %v1758_v16  ;;  %1762 = vmax.xlane.f32.xlu1 %v1761_v19 }
  0x83   : > { %1765 = vmax.xlane.f32.xlu0 %v1764_v20  ;;  %1768 = vmax.xlane.f32.xlu1 %v1767_v23 }
  0x87   : > { %1771 = vmax.xlane.f32.xlu0 %v1770_v24  ;;  %1774 = vmax.xlane.f32.xlu1 %v1773_v27 }
  0x8b   : > { %1777 = vmax.xlane.f32.xlu0 %v1776_v28  ;;  %1780 = vmax.xlane.f32.xlu1 %v1779_v31 }
  0x8f   : > { %1783 = vmax.xlane.f32.xlu0 %v1782_v32  ;;  %1786 = vmax.xlane.f32.xlu1 %v1785_v35 }
  0x93   : > { %1789 = vmax.xlane.f32.xlu0 %v1788_v36  ;;  %1792 = vmax.xlane.f32.xlu1 %v1791_v39 }
  0x97   : > { %1795 = vmax.xlane.f32.xlu0 %v1794_v40  ;;  %1798 = vmax.xlane.f32.xlu1 %v1797_v41 }
  0x9b   : > { %1801 = vmax.xlane.f32.xlu0 %v1800_v44  ;;  %1804 = vmax.xlane.f32.xlu1 %v1803_v45 }
  0x9f   : > { %1807 = vmax.xlane.f32.xlu0 %v1806_v48  ;;  %1810 = vmax.xlane.f32.xlu1 %v1809_v49 }
  0xa3   : > { %1813 = vmax.xlane.f32.xlu0 %v1812_v52  ;;  %1816 = vmax.xlane.f32.xlu1 %v1815_v53 }
  0xa7   : > { %1819 = vmax.xlane.f32.xlu0 %v1818_v56  ;;  %1822 = vmax.xlane.f32.xlu1 %v1821_v57 }
  0xab   : > { %1825 = vmax.xlane.f32.xlu0 %v1824_v60  ;;  %1828 = vmax.xlane.f32.xlu1 %v1827_v61 }
  0xaf   : > { %1831 = vmax.xlane.f32.xlu0 %v1830_v0  ;;  %1834 = vmax.xlane.f32.xlu1 %v1833_v4 }
  0xc0   : > { %v415_v5 = vpop.xlane.xlu1 %414  ;;  %v409_v7 = vpop.xlane.xlu0 %408 }
  0xc1   : > { %v505_v8 = vsub.f32 %v4685_v1, %v415_v5  ;;  %v503_v11 = vsub.f32 %v4688_v2, %v409_v7 }
  0xc3   : > { %v535_v12 = vmul.f32 1.442695, %v503_v11  ;;  %v539_v19 = vmul.f32 1.442695, %v505_v8 }
  0xc4   : > { %v418_v15 = vpop.xlane.xlu1 %417  ;;  %v412_v16 = vpop.xlane.xlu0 %411 }
  0xc5   : > { %v506_v20 = vsub.f32 %v4691_v3, %v418_v15  ;;  %v504_v23 = vsub.f32 %v4698_v6, %v412_v16  ;;  %4033 = vpow2.f32 %v535_v12 }
  0xc6   : > { %4035 = vpow2.f32 %v539_v19 }
  0xc7   : > { %v537_v24 = vmul.f32 1.442695, %v504_v23  ;;  %v541_v27 = vmul.f32 1.442695, %v506_v20 }
  0xc8   : > { %v424_v28 = vpop.xlane.xlu1 %423  ;;  %v421_v31 = vpop.xlane.xlu0 %420 }
  0xc9   : > { %v508_v32 = vsub.f32 %v4705_v9, %v424_v28  ;;  %v507_v35 = vsub.f32 %v4708_v10, %v421_v31  ;;  %4037 = vpow2.f32 %v537_v24 }
  0xca   : > { %4039 = vpow2.f32 %v541_v27 }
  0xcb   : > { %v543_v36 = vmul.f32 1.442695, %v507_v35  ;;  %v545_v39 = vmul.f32 1.442695, %v508_v32 }
  0xcc   : > { %v430_v40 = vpop.xlane.xlu1 %429  ;;  %v427_v41 = vpop.xlane.xlu0 %426 }
  0xcd   : > { %v4918_v44 = vsub.f32 %v4715_v13, %v430_v40  ;;  %v509_v45 = vsub.f32 %v4718_v14, %v427_v41  ;;  %4041 = vpow2.f32 %v543_v36 }
  0xce   : > { %4043 = vpow2.f32 %v545_v39 }
  0xcf   : > { %v547_v48 = vmul.f32 1.442695, %v509_v45  ;;  %v4034_v49 = vpop.eup %4033  ;;  %v549_v52 = vmul.f32 1.442695, %v4918_v44 }
  0xd0   : > { %v436_v53 = vpop.xlane.xlu1 %435  ;;  %v433_v56 = vpop.xlane.xlu0 %432  ;;  %3681 = vmatprep.mubr.msk.f32.mxu0 %vm406_vm0, %v4034_v49  ;;  %v921_v61 = vmul.f32 %v4034_v49, %v503_v11 }
  0xd1   : > { %v4923_v57 = vsub.f32 %v4725_v17, %v436_v53  ;;  %v511_v60 = vsub.f32 %v4728_v18, %v433_v56  ;;  %4045 = vpow2.f32 %v547_v48  ;;  %v4036_v0 = vpop.eup %4035 }
  0xd2   : > { %3731 = vmatprep.mubr.msk.f32.mxu1 %vm406_vm0, %v921_v61  ;;  %4047 = vpow2.f32 %v549_v52  ;;  %v923_v27 = vmul.f32 %v4036_v0, %v505_v8 }
  0xd3   : > { %v551_v4 = vmul.f32 1.442695, %v511_v60  ;;  %v4038_v5 = vpop.eup %4037  ;;  %v553_v7 = vmul.f32 1.442695, %v4923_v57 }
  0xd4   : > { %v442_v12 = vpop.xlane.xlu1 %441  ;;  %v439_v15 = vpop.xlane.xlu0 %438  ;;  %v922_v16 = vmul.f32 %v4038_v5, %v504_v23  ;;  %3682 = vmatmul.mubr.msk.f32.vlgmr.msra.gmra.mrb[0].mxu0 %vm406_vm0, %v4038_v5 }
  0xd5   : > { %v4930_v19 = vsub.f32 %v4735_v21, %v442_v12  ;;  %v513_v24 = vsub.f32 %v4738_v22, %v439_v15  ;;  %v4040_v11 = vpop.eup %4039  ;;  %4049 = vpow2.f32 %v551_v4  ;;  %3684 = vmatprep.mubr.msk.f32.mxu0 %vm406_vm0, %v4036_v0 }
  0xd6   : > { %3732 = vmatmul.mubr.msk.f32.vlgmr.msra.gmra.mrb[0].mxu1 %vm406_vm0, %v922_v16  ;;  %4051 = vpow2.f32 %v553_v7  ;;  %v924_v40 = vmul.f32 %v4040_v11, %v506_v20 }
  0xd7   : > { %v555_v28 = vmul.f32 1.442695, %v513_v24  ;;  %v4042_v31 = vpop.eup %4041  ;;  %v557_v36 = vmul.f32 1.442695, %v4930_v19  ;;  %3734 = vmatprep.mubr.msk.f32.mxu1 %vm406_vm0, %v923_v27 }
  0xd8   : > { %v448_v23 = vpop.xlane.xlu1 %447  ;;  %v445_v39 = vpop.xlane.xlu0 %444  ;;  %v925_v41 = vmul.f32 %v4042_v31, %v507_v35  ;;  %3685 = vmatmul.mubr.msk.f32.gmra.mrb[2].mxu0 %vm406_vm0, %v4040_v11 }
  0xd9   : > { %v4939_v48 = vsub.f32 %v4745_v25, %v448_v23  ;;  %v515_v8 = vsub.f32 %v4748_v26, %v445_v39  ;;  %v4044_v49 = vpop.eup %4043  ;;  %4053 = vpow2.f32 %v555_v28  ;;  %3687 = vmatprep.mubr.msk.f32.mxu0 %vm406_vm0, %v4042_v31 }
  0xda   : > { %3735 = vmatmul.mubr.msk.f32.gmra.mrb[2].mxu1 %vm406_vm0, %v924_v40  ;;  %4055 = vpow2.f32 %v557_v36  ;;  %v926_v61 = vmul.f32 %v4044_v49, %v508_v32 }
  0xdb   : > { %v559_v52 = vmul.f32 1.442695, %v515_v8  ;;  %v4046_v53 = vpop.eup %4045  ;;  %v561_v56 = vmul.f32 1.442695, %v4939_v48  ;;  %3737 = vmatprep.mubr.msk.f32.mxu1 %vm406_vm0, %v925_v41 }
  0xdc   : > { %v454_v20 = vpop.xlane.xlu1 %453  ;;  %v451_v35 = vpop.xlane.xlu0 %450  ;;  %v927_v0 = vmul.f32 %v4046_v53, %v509_v45  ;;  %3688 = vmatmul.mubr.msk.f32.gmra.mrb[4].mxu0 %vm406_vm0, %v4044_v49 }
  0xdd   : > { %v4948_v4 = vsub.f32 %v4755_v29, %v454_v20  ;;  %v517_v5 = vsub.f32 %v4758_v30, %v451_v35  ;;  %v4048_v7 = vpop.eup %4047  ;;  %4057 = vpow2.f32 %v559_v52  ;;  %3690 = vmatprep.mubr.msk.f32.mxu0 %vm406_vm0, %v4046_v53 }
  0xde   : > { %3738 = vmatmul.mubr.msk.f32.gmra.mrb[4].mxu1 %vm406_vm0, %v926_v61  ;;  %4059 = vpow2.f32 %v561_v56  ;;  %v928_v11 = vmul.f32 %v4048_v7, %v4918_v44 }
  0xdf   : > { %v563_v12 = vmul.f32 1.442695, %v517_v5  ;;  %v4050_v15 = vpop.eup %4049  ;;  %v565_v16 = vmul.f32 1.442695, %v4948_v4  ;;  %3740 = vmatprep.mubr.msk.f32.mxu1 %vm406_vm0, %v927_v0 }
  0xe0   : > { %v460_v32 = vpop.xlane.xlu1 %459  ;;  %v457_v45 = vpop.xlane.xlu0 %456  ;;  %v929_v27 = vmul.f32 %v4050_v15, %v511_v60  ;;  %3691 = vmatmul.mubr.msk.f32.gmra.mrb[6].mxu0 %vm406_vm0, %v4048_v7 }
  0xe1   : > { %v4958_v28 = vsub.f32 %v4765_v33, %v460_v32  ;;  %v519_v31 = vsub.f32 %v4768_v34, %v457_v45  ;;  %v4052_v36 = vpop.eup %4051  ;;  %4061 = vpow2.f32 %v563_v12  ;;  %3693 = vmatprep.mubr.msk.f32.mxu0 %vm406_vm0, %v4050_v15 }
  0xe2   : > { %3741 = vmatmul.mubr.msk.f32.gmra.mrb[6].mxu1 %vm406_vm0, %v928_v11  ;;  %4063 = vpow2.f32 %v565_v16  ;;  %v930_v41 = vmul.f32 %v4052_v36, %v4923_v57 }
  0xe3   : > { %v567_v23 = vmul.f32 1.442695, %v519_v31  ;;  %v4054_v39 = vpop.eup %4053  ;;  %v569_v40 = vmul.f32 1.442695, %v4958_v28  ;;  %3743 = vmatprep.mubr.msk.f32.mxu1 %vm406_vm0, %v929_v27 }
  0xe4   : > { %v466_v44 = vpop.xlane.xlu1 %465  ;;  %v463_v60 = vpop.xlane.xlu0 %462  ;;  %v931_v49 = vmul.f32 %v4054_v39, %v513_v24  ;;  %3694 = vmatmul.mubr.msk.f32.gmra.mrb[8].mxu0 %vm406_vm0, %v4052_v36 }
  0xe5   : > { %v4968_v52 = vsub.f32 %v4775_v37, %v466_v44  ;;  %v521_v53 = vsub.f32 %v4778_v38, %v463_v60  ;;  %v4056_v56 = vpop.eup %4055  ;;  %4065 = vpow2.f32 %v567_v23  ;;  %3696 = vmatprep.mubr.msk.f32.mxu0 %vm406_vm0, %v4054_v39 }
  0xe6   : > { %3744 = vmatmul.mubr.msk.f32.gmra.mrb[8].mxu1 %vm406_vm0, %v930_v41  ;;  %4067 = vpow2.f32 %v569_v40  ;;  %v932_v0 = vmul.f32 %v4056_v56, %v4930_v19 }
  0xe7   : > { %v571_v20 = vmul.f32 1.442695, %v521_v53  ;;  %v4058_v35 = vpop.eup %4057  ;;  %v573_v61 = vmul.f32 1.442695, %v4968_v52  ;;  %3746 = vmatprep.mubr.msk.f32.mxu1 %vm406_vm0, %v931_v49 }
  0xe8   : > { %v472_v57 = vpop.xlane.xlu1 %471  ;;  %v469_v24 = vpop.xlane.xlu0 %468  ;;  %v933_v7 = vmul.f32 %v4058_v35, %v515_v8  ;;  %3697 = vmatmul.mubr.msk.f32.gmra.mrb[10].mxu0 %vm406_vm0, %v4056_v56 }
  0xe9   : > { %v4978_v12 = vsub.f32 %v4788_v42, %v472_v57  ;;  %v523_v15 = vsub.f32 %v4791_v43, %v469_v24  ;;  %v4060_v16 = vpop.eup %4059  ;;  %4069 = vpow2.f32 %v571_v20  ;;  %3699 = vmatprep.mubr.msk.f32.mxu0 %vm406_vm0, %v4058_v35 }
  0xea   : > { %3747 = vmatmul.mubr.msk.f32.gmra.mrb[10].mxu1 %vm406_vm0, %v932_v0  ;;  %4071 = vpow2.f32 %v573_v61  ;;  %v934_v27 = vmul.f32 %v4060_v16, %v4939_v48 }
  0xeb   : > { %v575_v32 = vmul.f32 1.442695, %v523_v15  ;;  %v4062_v45 = vpop.eup %4061  ;;  %v577_v11 = vmul.f32 1.442695, %v4978_v12  ;;  %3749 = vmatprep.mubr.msk.f32.mxu1 %vm406_vm0, %v933_v7 }
  0xec   : > { %v478_v19 = vpop.xlane.xlu1 %477  ;;  %v475_v8 = vpop.xlane.xlu0 %474  ;;  %v935_v36 = vmul.f32 %v4062_v45, %v517_v5  ;;  %3700 = vmatmul.mubr.msk.f32.gmra.mrb[12].mxu0 %vm406_vm0, %v4060_v16 }
  0xed   : > { %v4988_v23 = vsub.f32 %v4798_v46, %v478_v19  ;;  %v525_v39 = vsub.f32 %v4801_v47, %v475_v8  ;;  %v4064_v40 = vpop.eup %4063  ;;  %4073 = vpow2.f32 %v575_v32  ;;  %3702 = vmatprep.mubr.msk.f32.mxu0 %vm406_vm0, %v4062_v45 }
  0xee   : > { %3750 = vmatmul.mubr.msk.f32.gmra.mrb[12].mxu1 %vm406_vm0, %v934_v27  ;;  %4075 = vpow2.f32 %v577_v11  ;;  %v936_v49 = vmul.f32 %v4064_v40, %v4948_v4 }
  0xef   : > { %v579_v44 = vmul.f32 1.442695, %v525_v39  ;;  %v4066_v60 = vpop.eup %4065  ;;  %v581_v41 = vmul.f32 1.442695, %v4988_v23  ;;  %3752 = vmatprep.mubr.msk.f32.mxu1 %vm406_vm0, %v935_v36 }
  0xf0   : > { %v484_v48 = vpop.xlane.xlu1 %483  ;;  %v481_v5 = vpop.xlane.xlu0 %480  ;;  %v937_v56 = vmul.f32 %v4066_v60, %v519_v31  ;;  %3703 = vmatmul.mubr.msk.f32.gmra.mrb[14].mxu0 %vm406_vm0, %v4064_v40 }
  0xf1   : > { %v4998_v20 = vsub.f32 %v4808_v50, %v484_v48  ;;  %v527_v35 = vsub.f32 %v4811_v51, %v481_v5  ;;  %v4068_v61 = vpop.eup %4067  ;;  %4077 = vpow2.f32 %v579_v44  ;;  %3705 = vmatprep.mubr.msk.f32.mxu0 %vm406_vm0, %v4066_v60 }
  0xf2   : > { %3753 = vmatmul.mubr.msk.f32.gmra.mrb[14].mxu1 %vm406_vm0, %v936_v49  ;;  %4079 = vpow2.f32 %v581_v41  ;;  %v938_v31 = vmul.f32 %v4068_v61, %v4958_v28 }
  0xf3   : > { %v585_v57 = vmul.f32 1.442695, %v4998_v20  ;;  %v583_v24 = vmul.f32 1.442695, %v527_v35  ;;  %v4070_v0 = vpop.eup %4069  ;;  %3755 = vmatprep.mubr.msk.f32.mxu1 %vm406_vm0, %v937_v56 }
  0xf4   : > { %v490_v4 = vpop.xlane.xlu1 %489  ;;  %v487_v50 = vpop.xlane.xlu0 %486  ;;  %v939_v7 = vmul.f32 %v4070_v0, %v521_v53  ;;  %3706 = vmatmul.mubr.msk.f32.gmra.mrb[16].mxu0 %vm406_vm0, %v4068_v61 }
  0xf5   : > { %v5008_v16 = vsub.f32 %v4818_v54, %v490_v4  ;;  %v529_v32 = vsub.f32 %v4821_v55, %v487_v50  ;;  %v4072_v45 = vpop.eup %4071  ;;  %4081 = vpow2.f32 %v583_v24  ;;  %3708 = vmatprep.mubr.msk.f32.mxu0 %vm406_vm0, %v4070_v0 }
  0xf6   : > { %4083 = vpow2.f32 %v585_v57  ;;  %3756 = vmatmul.mubr.msk.f32.gmra.mrb[16].mxu1 %vm406_vm0, %v938_v31  ;;  %v940_v53 = vmul.f32 %v4072_v45, %v4968_v52 }
  0xf7   : > { %v589_v11 = vmul.f32 1.442695, %v5008_v16  ;;  %v587_v19 = vmul.f32 1.442695, %v529_v32  ;;  %v4074_v8 = vpop.eup %4073  ;;  %3758 = vmatprep.mubr.msk.f32.mxu1 %vm406_vm0, %v939_v7 }
  0xf8   : > { %v496_v28 = vpop.xlane.xlu1 %495  ;;  %v493_v54 = vpop.xlane.xlu0 %492  ;;  %v941_v27 = vmul.f32 %v4074_v8, %v523_v15  ;;  %3709 = vmatmul.mubr.msk.f32.gmra.mrb[18].mxu0 %vm406_vm0, %v4072_v45 }
  0xf9   : > { %v5018_v55 = vsub.f32 %v4828_v58, %v496_v28  ;;  %v531_v36 = vsub.f32 %v4831_v59, %v493_v54  ;;  %v4076_v40 = vpop.eup %4075  ;;  %4085 = vpow2.f32 %v587_v19  ;;  %3711 = vmatprep.mubr.msk.f32.mxu0 %vm406_vm0, %v4074_v8 }
  0xfa   : > { %4087 = vpow2.f32 %v589_v11  ;;  %3759 = vmatmul.mubr.msk.f32.gmra.mrb[18].mxu1 %vm406_vm0, %v940_v53  ;;  %v942_v15 = vmul.f32 %v4076_v40, %v4978_v12 }
  0xfb   : > { %v593_v44 = vmul.f32 1.442695, %v5018_v55  ;;  %v591_v60 = vmul.f32 1.442695, %v531_v36  ;;  %v4078_v41 = vpop.eup %4077  ;;  %3761 = vmatprep.mubr.msk.f32.mxu1 %vm406_vm0, %v941_v27 }
  0xfc   : > { %v502_v52 = vpop.xlane.xlu1 %501  ;;  %v499_v58 = vpop.xlane.xlu0 %498  ;;  %v943_v48 = vmul.f32 %v4078_v41, %v525_v39  ;;  %3712 = vmatmul.mubr.msk.f32.gmra.mrb[20].mxu0 %vm406_vm0, %v4076_v40 }
  0xfd   : > { %v5028_v59 = vsub.f32 %v4838_v62, %v502_v52  ;;  %v533_v5 = vsub.f32 %v4841_v63, %v499_v58  ;;  %v4080_v49 = vpop.eup %4079  ;;  %4089 = vpow2.f32 %v591_v60  ;;  %3714 = vmatprep.mubr.msk.f32.mxu0 %vm406_vm0, %v4078_v41 }
  0xfe   : > { %4091 = vpow2.f32 %v593_v44  ;;  %3762 = vmatmul.mubr.msk.f32.gmra.mrb[20].mxu1 %vm406_vm0, %v942_v15  ;;  %v944_v24 = vmul.f32 %v4080_v49, %v4988_v23 }
  0xff   : > { %v595_v56 = vmul.f32 1.442695, %v533_v5  ;;  %v4082_v61 = vpop.eup %4081  ;;  %v597_v57 = vmul.f32 1.442695, %v5028_v59  ;;  %3764 = vmatprep.mubr.msk.f32.mxu1 %vm406_vm0, %v943_v48 }
 0x100   : > { %v1745_v12 = vpop.xlane.xlu1 %1744  ;;  %v1742_v62 = vpop.xlane.xlu0 %1741  ;;  %v945_v0 = vmul.f32 %v4082_v61, %v527_v35  ;;  %3715 = vmatmul.mubr.msk.f32.gmra.mrb[22].mxu0 %vm406_vm0, %v4080_v49 }
 0x101   : > { %v4084_v39 = vpop.eup %4083  ;;  %v5039_v63 = vsub.f32 %v4698_v6, %v1745_v12  ;;  %v5042_v4 = vsub.f32 %v4688_v2, %v1742_v62  ;;  %4093 = vpow2.f32 %v595_v56  ;;  %3717 = vmatprep.mubr.msk.f32.mxu0 %vm406_vm0, %v4082_v61 }
 0x102   : > { %3765 = vmatmul.mubr.msk.f32.gmra.mrb[22].mxu1 %vm406_vm0, %v944_v24  ;;  %v946_v23 = vmul.f32 %v4084_v39, %v4998_v20  ;;  %4095 = vpow2.f32 %v597_v57 }
 0x103   : > { %v1870_v50 = vmul.f32 1.442695, %v5039_v63  ;;  %v1868_v31 = vmul.f32 1.442695, %v5042_v4  ;;  %v4086_v7 = vpop.eup %4085  ;;  %3767 = vmatprep.mubr.msk.f32.mxu1 %vm406_vm0, %v945_v0 }
 0x104   : > { %v1748_v6 = vpop.xlane.xlu0 %1747  ;;  %v1751_v35 = vpop.xlane.xlu1 %1750  ;;  %v947_v2 = vmul.f32 %v4086_v7, %v529_v32  ;;  %3718 = vmatmul.mubr.msk.f32.gmra.mrb[24].mxu0 %vm406_vm0, %v4084_v39 }
 0x105   : > { %v4088_v45 = vpop.eup %4087  ;;  %4097 = vpow2.f32 %v1870_v50  ;;  %v5052_v11 = vsub.f32 %v4685_v1, %v1748_v6  ;;  %v5055_v19 = vsub.f32 %v4691_v3, %v1751_v35  ;;  %3720 = vmatprep.mubr.msk.f32.mxu0 %vm406_vm0, %v4086_v7 }
 0x106   : > { %4099 = vpow2.f32 %v1868_v31  ;;  %3768 = vmatmul.mubr.msk.f32.gmra.mrb[24].mxu1 %vm406_vm0, %v946_v23  ;;  %v948_v32 = vmul.f32 %v4088_v45, %v5008_v16 }
 0x107   : > { %v1872_v20 = vmul.f32 1.442695, %v5052_v11  ;;  %v1874_v8 = vmul.f32 1.442695, %v5055_v19  ;;  %v4090_v28 = vpop.eup %4089  ;;  %3770 = vmatprep.mubr.msk.f32.mxu1 %vm406_vm0, %v947_v2 }
 0x108   : > { %v1754_v54 = vpop.xlane.xlu0 %1753  ;;  %v1757_v1 = vpop.xlane.xlu1 %1756  ;;  %v949_v27 = vmul.f32 %v4090_v28, %v531_v36  ;;  %3721 = vmatmul.mubr.msk.f32.gmra.mrb[26].mxu0 %vm406_vm0, %v4088_v45 }
 0x109   : > { %v4092_v53 = vpop.eup %4091  ;;  %4101 = vpow2.f32 %v1872_v20  ;;  %v5065_v3 = vsub.f32 %v4708_v10, %v1754_v54  ;;  %v5068_v40 = vsub.f32 %v4705_v9, %v1757_v1  ;;  %3723 = vmatprep.mubr.msk.f32.mxu0 %vm406_vm0, %v4090_v28 }
 0x10a   : > { %3771 = vmatmul.mubr.msk.f32.gmra.mrb[26].mxu1 %vm406_vm0, %v948_v32  ;;  %4103 = vpow2.f32 %v1874_v8  ;;  %v950_v36 = vmul.f32 %v4092_v53, %v5018_v55 }
 0x10b   : > { %v1876_v16 = vmul.f32 1.442695, %v5065_v3  ;;  %v1878_v44 = vmul.f32 1.442695, %v5068_v40  ;;  %v4094_v60 = vpop.eup %4093  ;;  %3773 = vmatprep.mubr.msk.f32.mxu1 %vm406_vm0, %v949_v27 }
 0x10c   : > { %v1760_v41 = vpop.xlane.xlu0 %1759  ;;  %v1763_v10 = vpop.xlane.xlu1 %1762  ;;  %v951_v52 = vmul.f32 %v4094_v60, %v533_v5  ;;  %3724 = vmatmul.mubr.msk.f32.gmra.mrb[28].mxu0 %vm406_vm0, %v4092_v53 }
 0x10d   : > { %4105 = vpow2.f32 %v1876_v16  ;;  %v5078_v9 = vsub.f32 %v4718_v14, %v1760_v41  ;;  %v5081_v58 = vsub.f32 %v4715_v13, %v1763_v10  ;;  %v4096_v15 = vpop.eup %4095  ;;  %3726 = vmatprep.mubr.msk.f32.mxu0 %vm406_vm0, %v4094_v60 }
 0x10e   : > { %3774 = vmatmul.mubr.msk.f32.gmra.mrb[28].mxu1 %vm406_vm0, %v950_v36  ;;  %4107 = vpow2.f32 %v1878_v44  ;;  %v952_v56 = vmul.f32 %v4096_v15, %v5028_v59 }
 0x10f   : > { %v4098_v48 = vpop.eup %4097  ;;  %v1880_v55 = vmul.f32 1.442695, %v5078_v9  ;;  %v1882_v5 = vmul.f32 1.442695, %v5081_v58  ;;  %3776 = vmatprep.mubr.msk.f32.mxu1 %vm406_vm0, %v951_v52 }
 0x110   : > { %v4100_v49 = vpop.eup %4099  ;;  %1967 = vrot.lane.b32.xlu1 %v4098_v48, %s4540_s29  ;;  %v1766_v14 = vpop.xlane.xlu0 %1765  ;;  %3727 = vmatmul.mubr.msk.f32.gmra.mrb[30].mxu0 %vm406_vm0, %v4096_v15  ;;  %v2319_v53 = vmul.f32 %v4098_v48, %v5039_v63 }
 0x111   : > { %v1769_v13 = vpop.xlane.xlu1 %1768  ;;  %4109 = vpow2.f32 %v1880_v55  ;;  %v5092_v61 = vsub.f32 %v4728_v18, %v1766_v14  ;;  %1965 = vrot.lane.b32.xlu0 %v4100_v49, %s4540_s29  ;;  %v2318_v28 = vmul.f32 %v4100_v49, %v5042_v4 }
 0x112   : > { %v5095_v57 = vsub.f32 %v4725_v17, %v1769_v13  ;;  %3777 = vmatmul.mubr.msk.f32.gmra.mrb[30].mxu1 %vm406_vm0, %v952_v56  ;;  %4111 = vpow2.f32 %v1882_v5 }
 0x113   : > { %v4102_v12 = vpop.eup %4101  ;;  %v1884_v62 = vmul.f32 1.442695, %v5092_v61 }
 0x114   : > { %v1886_v39 = vmul.f32 1.442695, %v5095_v57  ;;  %1969 = vrot.lane.b32.xlu1 %v4102_v12, %s4540_s29  ;;  %v1772_v59 = vpop.xlane.xlu0 %1771  ;;  %v4104_v0 = vpop.eup %4103  ;;  %v2320_v44 = vmul.f32 %v4102_v12, %v5052_v11 }
 0x115   : > { %v1775_v24 = vpop.xlane.xlu1 %1774  ;;  %4113 = vpow2.f32 %v1884_v62  ;;  %v5103_v18 = vsub.f32 %v4738_v22, %v1772_v59  ;;  %v2321_v41 = vmul.f32 %v4104_v0, %v5055_v19 }
 0x116   : > { %4115 = vpow2.f32 %v1886_v39  ;;  %v5107_v31 = vsub.f32 %v4735_v21, %v1775_v24 }
 0x117   : > { %v4106_v17 = vpop.eup %4105  ;;  %v1888_v50 = vmul.f32 1.442695, %v5103_v18 }
 0x118   : > { %1971 = vrot.lane.b32.xlu1 %v4104_v0, %s4540_s29  ;;  %1973 = vrot.lane.b32.xlu0 %v4106_v17, %s4540_s29  ;;  %v1778_v7 = vpop.xlane.xlu0 %1777  ;;  %v4108_v23 = vpop.eup %4107  ;;  %v1890_v35 = vmul.f32 1.442695, %v5107_v31  ;;  %v2322_v15 = vmul.f32 %v4106_v17, %v5065_v3 }
 0x119   : > { %4117 = vpow2.f32 %v1888_v50  ;;  %v5113_v22 = vsub.f32 %v4748_v26, %v1778_v7  ;;  %v1781_v45 = vpop.xlane.xlu1 %1780  ;;  %v2323_v5 = vmul.f32 %v4108_v23, %v5068_v40 }
 0x11a   : > { %4119 = vpow2.f32 %v1890_v35  ;;  %v5121_v8 = vsub.f32 %v4745_v25, %v1781_v45  ;;  %v1932_v35 = vld [vmem:[%s6519_s3] sm:$0xff] }
 0x11b   : > { %v4110_v6 = vpop.eup %4109  ;;  %v1892_v20 = vmul.f32 1.442695, %v5113_v22  ;;  %3779 = vmatprep.subr.mxu1 %v1932_v35 }
 0x11c   : > { %1975 = vrot.lane.b32.xlu1 %v4108_v23, %s4540_s29  ;;  %1977 = vrot.lane.b32.xlu0 %v4110_v6, %s4540_s29  ;;  %v4112_v21 = vpop.eup %4111  ;;  %v1784_v26 = vpop.xlane.xlu0 %1783  ;;  %v1894_v54 = vmul.f32 1.442695, %v5121_v8  ;;  %v2324_v13 = vmul.f32 %v4110_v6, %v5078_v9 }
 0x11d   : > { %4121 = vpow2.f32 %v1892_v20  ;;  %v5131_v1 = vsub.f32 %v4758_v30, %v1784_v26  ;;  %v1787_v25 = vpop.xlane.xlu1 %1786  ;;  %v2325_v62 = vmul.f32 %v4112_v21, %v5081_v58  ;;  %3780 = vmatpush3.msra.mxu1 %v1932_v35 }
 0x11e   : > { %4123 = vpow2.f32 %v1894_v54  ;;  %v5141_v16 = vsub.f32 %v4755_v29, %v1787_v25 }
 0x11f   : > { %v5117_v2 = vpop.eup %4113  ;;  %v1896_v27 = vmul.f32 1.442695, %v5131_v1 }
 0x120   : > { %1979 = vrot.lane.b32.xlu1 %v4112_v21, %s4540_s29  ;;  %1981 = vrot.lane.b32.xlu0 %v5117_v2, %s4540_s29  ;;  %v5127_v32 = vpop.eup %4115  ;;  %v1790_v30 = vpop.xlane.xlu0 %1789  ;;  %v1898_v60 = vmul.f32 1.442695, %v5141_v16 }
 0x121   : > { %4125 = vpow2.f32 %v1896_v27  ;;  %v5151_v36 = vsub.f32 %v4768_v34, %v1790_v30  ;;  %v1793_v29 = vpop.xlane.xlu1 %1792  ;;  %v4419_v30 = vld [vmem:[%s4673_s28 + $0xd8] sm:$0xff] }
 0x122   : > { %4127 = vpow2.f32 %v1898_v60  ;;  %v5161_v52 = vsub.f32 %v4765_v33, %v1793_v29 }
 0x123   : > { %v5137_v4 = vpop.eup %4117  ;;  %v1900_v10 = vmul.f32 1.442695, %v5151_v36 }
 0x124   : > { %1983 = vrot.lane.b32.xlu1 %v5127_v32, %s4540_s29  ;;  %2382 = vrot.lane.b32.xlu0 %v2318_v28, %s4540_s29  ;;  %v5147_v63 = vpop.eup %4119  ;;  %v1796_v34 = vpop.xlane.xlu0 %1795  ;;  %v1902_v48 = vmul.f32 1.442695, %v5161_v52  ;;  %v4417_v28 = vld [vmem:[%s4673_s28 + $0xc8] sm:$0xff] }
 0x125   : > { %4129 = vpow2.f32 %v1900_v10  ;;  %v5171_v55 = vsub.f32 %v4778_v38, %v1796_v34  ;;  %v1799_v33 = vpop.xlane.xlu1 %1798 }
 0x126   : > { %4131 = vpow2.f32 %v1902_v48  ;;  %v5181_v14 = vsub.f32 %v4775_v37, %v1799_v33  ;;  %v4421_v48 = vld [vmem:[%s4673_s28 + $0xe8] sm:$0xff] }
 0x127   : > { %v5157_v11 = vpop.eup %4121  ;;  %v1904_v49 = vmul.f32 1.442695, %v5171_v55 }
 0x128   : > { %2384 = vrot.lane.b32.xlu0 %v2319_v53, %s4540_s29  ;;  %1985 = vrot.lane.b32.xlu1 %v5137_v4, %s4540_s29  ;;  %v5167_v19 = vpop.eup %4123  ;;  %v1802_v38 = vpop.xlane.xlu0 %1801  ;;  %v1906_v56 = vmul.f32 1.442695, %v5181_v14  ;;  %v4418_v53 = vld [vmem:[%s4673_s28 + $0xd0] sm:$0xff] }
 0x129   : > { %4133 = vpow2.f32 %v1904_v49  ;;  %v5191_v12 = vsub.f32 %v4791_v43, %v1802_v38  ;;  %v1805_v37 = vpop.xlane.xlu1 %1804  ;;  %v2326_v43 = vmul.f32 %v5117_v2, %v5092_v61 }
 0x12a   : > { %4135 = vpow2.f32 %v1906_v56  ;;  %v5201_v59 = vsub.f32 %v4788_v42, %v1805_v37  ;;  %v2327_v42 = vmul.f32 %v5127_v32, %v5095_v57  ;;  %v4423_v37 = vld [vmem:[%s4673_s28 + $0xf8] sm:$0xff] }
 0x12b   : > { %v5177_v3 = vpop.eup %4125  ;;  %v1908_v39 = vmul.f32 1.442695, %v5191_v12 }
 0x12c   : > { %2386 = vrot.lane.b32.xlu0 %v2320_v44, %s4540_s29  ;;  %1987 = vrot.lane.b32.xlu1 %v5147_v63, %s4540_s29  ;;  %v5187_v40 = vpop.eup %4127  ;;  %v1808_v58 = vpop.xlane.xlu0 %1807  ;;  %v1910_v0 = vmul.f32 1.442695, %v5201_v59  ;;  %v2332_v60 = vmul.f32 %v5177_v3, %v5131_v1 }
 0x12d   : > { %4137 = vpow2.f32 %v1908_v39  ;;  %v5212_v17 = vsub.f32 %v4801_v47, %v1808_v58  ;;  %v1811_v61 = vpop.xlane.xlu1 %1810  ;;  %v2328_v47 = vmul.f32 %v5137_v4, %v5103_v18  ;;  %v2329_v18 = vmul.f32 %v5147_v63, %v5107_v31 }
 0x12e   : > { %4139 = vpow2.f32 %v1910_v0  ;;  %v5223_v23 = vsub.f32 %v4798_v46, %v1811_v61  ;;  %v2331_v4 = vmul.f32 %v5167_v19, %v5121_v8 }
 0x12f   : > { %v5197_v9 = vpop.eup %4129  ;;  %v1912_v7 = vmul.f32 1.442695, %v5212_v17 }
 0x130   : > { %2388 = vrot.lane.b32.xlu0 %v2321_v41, %s4540_s29  ;;  %1989 = vrot.lane.b32.xlu1 %v5157_v11, %s4540_s29  ;;  %v5208_v24 = vpop.eup %4131  ;;  %v1814_v57 = vpop.xlane.xlu0 %1813  ;;  %v1914_v46 = vmul.f32 1.442695, %v5223_v23  ;;  %v2334_v33 = vmul.f32 %v5197_v9, %v5151_v36 }
 0x131   : > { %4141 = vpow2.f32 %v1912_v7  ;;  %v5237_v45 = vsub.f32 %v4811_v51, %v1814_v57  ;;  %v1817_v21 = vpop.xlane.xlu1 %1816  ;;  %v2330_v51 = vmul.f32 %v5157_v11, %v5113_v22  ;;  %v4420_v11 = vld [vmem:[%s4673_s28 + $0xe0] sm:$0xff] }
 0x132   : > { %4143 = vpow2.f32 %v1914_v46  ;;  %v5248_v26 = vsub.f32 %v4417_v28, %v1817_v21 }
 0x133   : > { %v5219_v50 = vpop.eup %4133  ;;  %v1916_v20 = vmul.f32 1.442695, %v5237_v45 }
 0x134   : > { %2390 = vrot.lane.b32.xlu0 %v2322_v15, %s4540_s29  ;;  %1991 = vrot.lane.b32.xlu1 %v5167_v19, %s4540_s29  ;;  %v5230_v6 = vpop.eup %4135  ;;  %v1820_v31 = vpop.xlane.xlu0 %1819  ;;  %v1918_v54 = vmul.f32 1.442695, %v5248_v26  ;;  %v2333_v15 = vmul.f32 %v5187_v40, %v5141_v16  ;;  %v2336_v39 = vmul.f32 %v5219_v50, %v5171_v55 }
 0x135   : > { %4145 = vpow2.f32 %v1916_v20  ;;  %v5259_v25 = vsub.f32 %v4418_v53, %v1820_v31  ;;  %v1823_v22 = vpop.xlane.xlu1 %1822  ;;  %v2337_v58 = vmul.f32 %v5230_v6, %v5181_v14 }
 0x136   : > { %4147 = vpow2.f32 %v1918_v54  ;;  %v5268_v63 = vsub.f32 %v4419_v30, %v1823_v22 }
 0x137   : > { %v5244_v2 = vpop.eup %4137  ;;  %v1920_v44 = vmul.f32 1.442695, %v5259_v25 }
 0x138   : > { %2392 = vrot.lane.b32.xlu0 %v2323_v5, %s4540_s29  ;;  %1993 = vrot.lane.b32.xlu1 %v5177_v3, %s4540_s29  ;;  %v5255_v32 = vpop.eup %4139  ;;  %v1826_v8 = vpop.xlane.xlu0 %1825  ;;  %v1922_v29 = vmul.f32 1.442695, %v5268_v63  ;;  %v2338_v0 = vmul.f32 %v5244_v2, %v5191_v12 }
 0x139   : > { %4149 = vpow2.f32 %v1920_v44  ;;  %v1864_v10 = vsub.f32 %v4420_v11, %v1826_v8  ;;  %v1829_v1 = vpop.xlane.xlu1 %1828 }
 0x13a   : > { %4151 = vpow2.f32 %v1922_v29  ;;  %v1865_v5 = vsub.f32 %v4421_v48, %v1829_v1  ;;  %v357_v1 = vld [vmem:[%s4678_s23] sm:$0x3] }
 0x13b   : > { %v4142_v27 = vpop.eup %4141  ;;  %v1924_v19 = vmul.f32 1.442695, %v1864_v10 }
 0x13c   : > { %2394 = vrot.lane.b32.xlu0 %v2324_v13, %s4540_s29  ;;  %1995 = vrot.lane.b32.xlu1 %v5187_v40, %s4540_s29  ;;  %v4144_v41 = vpop.eup %4143  ;;  %v1832_v16 = vpop.xlane.xlu0 %1831  ;;  %v1926_v49 = vmul.f32 1.442695, %v1865_v5  ;;  %v4422_v13 = vld [vmem:[%s4673_s28 + $0xf0] sm:$0xff]  ;;  %v2335_v40 = vmul.f32 %v5208_v24, %v5161_v52  ;;  %v2340_v61 = vmul.f32 %v4142_v27, %v5212_v17  ;;  %s4542_s28 = smov [#allocation2]  }
 0x13d   : > { %4153 = vpow2.f32 %v1924_v19  ;;  %v1866_v38 = vsub.f32 %v4422_v13, %v1832_v16  ;;  %v1835_v56 = vpop.xlane.xlu1 %1834  ;;  %v6532_v13 = vmov 1.0   ;;  %s4431_s11 = sshll.u32 %s4542_s28, 4  ;;  %s4432_s11 = int_to_ptr.vmem [resolvable:$false] %s4431_s11 }
 0x13e   : > { %4155 = vpow2.f32 %v1926_v49  ;;  %s4433_s20 = scalar_lea.vmem %s4432_s11, 64  ;;  %p4434_p8 = scmp.lt.s32.totalorder %s6456_s24, %s4432_s11 }
 0x13f   : > { %v4146_v34 = vpop.eup %4145  ;;  %p4435_p9 = scmp.lt.s32.totalorder %s4433_s20, %s4427_s9 }
 0x140   : > { %2396 = vrot.lane.b32.xlu0 %v2325_v62, %s4540_s29  ;;  %1997 = vrot.lane.b32.xlu1 %v5197_v9, %s4540_s29  ;;  %v4148_v3 = vpop.eup %4147  ;;  %v1928_v62 = vmul.f32 1.442695, %v1866_v38  ;;  %v1867_v9 = vsub.f32 %v4423_v37, %v1835_v56  ;;  %v2342_v7 = vmul.f32 %v4146_v34, %v5237_v45 }
 0x141   : > { %p4436_p10 = por %p4435_p9, %p4434_p8 }
 0x142   : > { %4157 = vpow2.f32 %v1928_v62  ;;  %v1930_v52 = vmul.f32 1.442695, %v1867_v9 }
 0x143   : > { %v4150_v36 = vpop.eup %4149  ;;  %p4437_p11 = pnand %p4436_p10, %p4430_p5 }
 0x144   : > { %2398 = vrot.lane.b32.xlu0 %v2326_v43, %s4540_s29  ;;  %1999 = vrot.lane.b32.xlu1 %v5208_v24, %s4540_s29  ;;  %v4152_v43 = vpop.eup %4151  ;;  %4159 = vpow2.f32 %v1930_v52 }
 0x145   : > { %v2345_v57 = vmul.f32 %v4152_v43, %v5268_v63 }
 0x147   : > { %v4154_v24 = vpop.eup %4153 }
 0x148   : > { %2400 = vrot.lane.b32.xlu0 %v2327_v42, %s4540_s29  ;;  %2001 = vrot.lane.b32.xlu1 %v5219_v50, %s4540_s29  ;;  %v4156_v55 = vpop.eup %4155  ;;  %v2339_v42 = vmul.f32 %v5255_v32, %v5201_v59  ;;  %v2341_v50 = vmul.f32 %v4144_v41, %v5223_v23  ;;  %v2343_v59 = vmul.f32 %v4148_v3, %v5248_v26 }
 0x149   : > { %v2347_v46 = vmul.f32 %v4156_v55, %v1865_v5 }
 0x14c   : > { %2402 = vrot.lane.b32.xlu0 %v2328_v47, %s4540_s29  ;;  %2003 = vrot.lane.b32.xlu1 %v5230_v6, %s4540_s29  ;;  %v4158_v14 = vpop.eup %4157  ;;  %v2344_v47 = vmul.f32 %v4150_v36, %v5259_v25  ;;  %v2346_v6 = vmul.f32 %v4154_v24, %v1864_v10  ;;  %v358_v25 = vlaneseq }
 0x14d   : > { %v2348_v45 = vmul.f32 %v4158_v14, %v1866_v38 }
 0x14e   : > { %v4160_v12 = vpop.eup %4159  ;;  %v5340_v63 = vshrl.u32 %v358_v25, 7 }
 0x150   : > { %2404 = vrot.lane.b32.xlu0 %v2329_v18, %s4540_s29  ;;  %2005 = vrot.lane.b32.xlu1 %v5244_v2, %s4540_s29  ;;  %v2349_v2 = vmul.f32 %v4160_v12, %v1867_v9  ;;  %6553 = vst [vmem:[#allocation13_spill] sm:$0xff] %v5340_v63  ;;  %v6530_v11 = vsub.s32 1, %v5340_v63 }
 0x152   : > { %v5355_v5 = vrot.slane %v357_v1, %v6530_v11 }
 0x154   : > { %2406 = vrot.lane.b32.xlu0 %v2330_v51, %s4540_s29  ;;  %2007 = vrot.lane.b32.xlu1 %v5255_v32, %s4540_s29  ;;  %vm369_vm2 = vcmp.eq.s32.totalorder %v5340_v63, %v5355_v5 }
 0x155   : > { %3404 = vmatprep.mubr.msk.f32.mxu0 %vm369_vm2, %v6532_v13 }
 0x158   : > { %2408 = vrot.lane.b32.xlu0 %v2331_v4, %s4540_s29  ;;  %2009 = vrot.lane.b32.xlu1 %v4142_v27, %s4540_s29 }
 0x15c   : > { %2410 = vrot.lane.b32.xlu0 %v2332_v60, %s4540_s29  ;;  %2011 = vrot.lane.b32.xlu1 %v4144_v41, %s4540_s29 }
 0x160   : > { %2412 = vrot.lane.b32.xlu0 %v2333_v15, %s4540_s29  ;;  %2013 = vrot.lane.b32.xlu1 %v4146_v34, %s4540_s29 }
 0x164   : > { %2414 = vrot.lane.b32.xlu0 %v2334_v33, %s4540_s29  ;;  %2015 = vrot.lane.b32.xlu1 %v4148_v3, %s4540_s29 }
 0x168   : > { %2416 = vrot.lane.b32.xlu0 %v2335_v40, %s4540_s29  ;;  %2017 = vrot.lane.b32.xlu1 %v4150_v36, %s4540_s29 }
 0x16c   : > { %2418 = vrot.lane.b32.xlu0 %v2336_v39, %s4540_s29  ;;  %2019 = vrot.lane.b32.xlu1 %v4152_v43, %s4540_s29 }
 0x170   : > { %2420 = vrot.lane.b32.xlu0 %v2337_v58, %s4540_s29  ;;  %2021 = vrot.lane.b32.xlu1 %v4154_v24, %s4540_s29 }
 0x174   : > { %2422 = vrot.lane.b32.xlu0 %v2338_v0, %s4540_s29  ;;  %2023 = vrot.lane.b32.xlu1 %v4156_v55, %s4540_s29 }
 0x178   : > { %2424 = vrot.lane.b32.xlu0 %v2339_v42, %s4540_s29  ;;  %2025 = vrot.lane.b32.xlu1 %v4158_v14, %s4540_s29  ;;  %v6531_v42 = vsub.s32 0, %v5340_v63 }
 0x17c   : > { %2426 = vrot.lane.b32.xlu0 %v2340_v61, %s4540_s29  ;;  %2027 = vrot.lane.b32.xlu1 %v4160_v12, %s4540_s29  ;;  %v373_v12 = vld [vmem:[%s6520_s4] sm:$0x3] }
 0x180   : > { %2428 = vrot.lane.b32.xlu1 %v2341_v50, %s4540_s29  ;;  %2430 = vrot.lane.b32.xlu0 %v2342_v7, %s4540_s29 }
 0x182   : > { %v1968_v17 = vpop.permute.xlu1 %1967 }
 0x183   : > { %v1966_v35 = vpop.permute.xlu0 %1965 }
 0x184   : > { %2432 = vrot.lane.b32.xlu1 %v2343_v59, %s4540_s29  ;;  %2434 = vrot.lane.b32.xlu0 %v2344_v47, %s4540_s29 }
 0x185   : > { %3781 = vmatprep.mubr.msk.f32.mxu1 %vm406_vm0, %v1966_v35 }
 0x186   : > { %v1970_v23 = vpop.permute.xlu1 %1969  ;;  %3782 = vmatmul.mubr.msk.f32.vlgmr.msra.gmra.mrb[32].mxu1 %vm406_vm0, %v1968_v17 }
 0x187   : > { %3784 = vmatprep.mubr.msk.f32.mxu1 %vm406_vm0, %v1970_v23 }
 0x188   : > { %2436 = vrot.lane.b32.xlu1 %v2345_v57, %s4540_s29  ;;  %2438 = vrot.lane.b32.xlu0 %v2346_v6, %s4540_s29 }
 0x18a   : > { %v1972_v18 = vpop.permute.xlu1 %1971  ;;  %v1974_v21 = vpop.permute.xlu0 %1973 }
 0x18b   : > { %3785 = vmatmul.mubr.msk.f32.gmra.mrb[34].mxu1 %vm406_vm0, %v1972_v18 }
 0x18c   : > { %2440 = vrot.lane.b32.xlu1 %v2347_v46, %s4540_s29  ;;  %2442 = vrot.lane.b32.xlu0 %v2348_v45, %s4540_s29 }
 0x18d   : > { %3787 = vmatprep.mubr.msk.f32.mxu1 %vm406_vm0, %v1974_v21 }
 0x18e   : > { %v1976_v20 = vpop.permute.xlu1 %1975  ;;  %v1978_v28 = vpop.permute.xlu0 %1977 }
 0x18f   : > { %3788 = vmatmul.mubr.msk.f32.gmra.mrb[36].mxu1 %vm406_vm0, %v1976_v20  ;;  %v5404_v20 = vrot.slane %v373_v12, %v6531_v42 }
 0x190   : > { %2444 = vrot.lane.b32.xlu1 %v2349_v2, %s4540_s29  ;;  %3790 = vmatprep.mubr.msk.f32.mxu1 %vm406_vm0, %v1978_v28 }
 0x192   : > { %v1980_v26 = vpop.permute.xlu1 %1979  ;;  %v1982_v51 = vpop.permute.xlu0 %1981 }
 0x193   : > { %3791 = vmatmul.mubr.msk.f32.gmra.mrb[38].mxu1 %vm406_vm0, %v1980_v26 }
 0x194   : > { %3793 = vmatprep.mubr.msk.f32.mxu1 %vm406_vm0, %v1982_v51 }
 0x196   : > { %v1984_v31 = vpop.permute.xlu1 %1983 }
 0x197   : > { %3794 = vmatmul.mubr.msk.f32.gmra.mrb[40].mxu1 %vm406_vm0, %v1984_v31 }
 0x19a   : > { %v1986_v32 = vpop.permute.xlu1 %1985 }
 0x19b   : > { %3796 = vmatprep.mubr.msk.f32.mxu1 %vm406_vm0, %v1986_v32 }
 0x19e   : > { %v1988_v54 = vpop.permute.xlu1 %1987 }
 0x19f   : > { %3797 = vmatmul.mubr.msk.f32.gmra.mrb[42].mxu1 %vm406_vm0, %v1988_v54 }
 0x1a2   : > { %v1990_v53 = vpop.permute.xlu1 %1989 }
 0x1a3   : > { %3799 = vmatprep.mubr.msk.f32.mxu1 %vm406_vm0, %v1990_v53 }
 0x1a6   : > { %v1992_v4 = vpop.permute.xlu1 %1991 }
 0x1a7   : > { %3800 = vmatmul.mubr.msk.f32.gmra.mrb[44].mxu1 %vm406_vm0, %v1992_v4  ;;  %v3683_v22 = vpop.f32.mrb[0].mxu0 }
 0x1a8   : > { %v1275_v27 = vmax.f32 %v3683_v22, 1e-30  ;;  %v762_v44 = vpop.f32.mrb[1].mxu0 }
 0x1a9   : > { %v1274_v30 = vmax.f32 %v762_v44, 1e-30  ;;  %v5342_v60 = vpop.f32.mrb[0].mxu1 }
 0x1aa   : > { %v1994_v8 = vpop.permute.xlu1 %1993  ;;  %4161 = vrcp.f32 %v1275_v27  ;;  %v5344_v41 = vpop.f32.mrb[1].mxu1 }
 0x1ab   : > { %3802 = vmatprep.mubr.msk.f32.mxu1 %vm406_vm0, %v1994_v8  ;;  %4163 = vlog2.f32 %v1275_v27  ;;  %v3686_v29 = vpop.f32.mrb[2].mxu0 }
 0x1ac   : > { %4165 = vrcp.f32 %v1274_v30  ;;  %v1277_v10 = vmax.f32 %v3686_v29, 1e-30  ;;  %v772_v15 = vpop.f32.mrb[3].mxu0 }
 0x1ad   : > { %4167 = vlog2.f32 %v1274_v30  ;;  %v5349_v34 = vmax.f32 %v772_v15, 1e-30  ;;  %v5351_v19 = vpop.f32.mrb[2].mxu1 }
 0x1ae   : > { %v1996_v48 = vpop.permute.xlu1 %1995  ;;  %4169 = vrcp.f32 %v1277_v10  ;;  %v5357_v33 = vpop.f32.mrb[3].mxu1 }
 0x1af   : > { %3803 = vmatmul.mubr.msk.f32.gmra.mrb[46].mxu1 %vm406_vm0, %v1996_v48  ;;  %4171 = vlog2.f32 %v1277_v10  ;;  %v3689_v16 = vpop.f32.mrb[4].mxu0 }
 0x1b0   : > { %4173 = vrcp.f32 %v5349_v34  ;;  %v5363_v3 = vmax.f32 %v3689_v16, 1e-30  ;;  %v782_v49 = vpop.f32.mrb[5].mxu0 }
 0x1b1   : > { %4175 = vlog2.f32 %v5349_v34  ;;  %v5370_v38 = vmax.f32 %v782_v49, 1e-30  ;;  %v5372_v40 = vpop.f32.mrb[4].mxu1 }
 0x1b2   : > { %v1998_v56 = vpop.permute.xlu1 %1997  ;;  %4177 = vrcp.f32 %v5363_v3  ;;  %v5375_v36 = vpop.f32.mrb[5].mxu1 }
 0x1b3   : > { %3805 = vmatprep.mubr.msk.f32.mxu1 %vm406_vm0, %v1998_v56  ;;  %4179 = vlog2.f32 %v5363_v3  ;;  %v3692_v62 = vpop.f32.mrb[6].mxu0 }
 0x1b4   : > { %v4162_v37 = vpop.eup %4161  ;;  %4181 = vrcp.f32 %v5370_v38  ;;  %v5380_v9 = vmax.f32 %v3692_v62, 1e-30  ;;  %v792_v39 = vpop.f32.mrb[7].mxu0 }
 0x1b5   : > { %v4164_v43 = vpop.eup %4163  ;;  %v1339_v52 = vmul.f32 %v4162_v37, %v1275_v27  ;;  %4183 = vlog2.f32 %v5370_v38  ;;  %v5383_v58 = vmax.f32 %v792_v39, 1e-30  ;;  %v5385_v24 = vpop.f32.mrb[6].mxu1 }
 0x1b6   : > { %v2000_v0 = vpop.permute.xlu1 %1999  ;;  %v4166_v55 = vpop.eup %4165  ;;  %4185 = vrcp.f32 %v5380_v9  ;;  %v1437_v2 = vmul.f32 0.6931472, %v4164_v43 }
 0x1b7   : > { %v5389_v14 = vpop.f32.mrb[7].mxu1  ;;  %3806 = vmatmul.mubr.msk.f32.gmra.mrb[48].mxu1 %vm406_vm0, %v2000_v0  ;;  %v4168_v61 = vpop.eup %4167  ;;  %v1371_v50 = vsub.f32 2.0, %v1339_v52  ;;  %v1338_v7 = vmul.f32 %v4166_v55, %v1274_v30  ;;  %4187 = vlog2.f32 %v5380_v9 }
 0x1b8   : > { %v3695_v59 = vpop.f32.mrb[8].mxu0  ;;  %v4170_v47 = vpop.eup %4169  ;;  %4189 = vrcp.f32 %v5383_v58  ;;  %v1435_v22 = vmul.f32 0.6931472, %v4168_v61 }
 0x1b9   : > { %v5397_v17 = vmax.f32 %v3695_v59, 1e-30  ;;  %v802_v57 = vpop.f32.mrb[9].mxu0  ;;  %v4172_v6 = vpop.eup %4171  ;;  %v1403_v35 = vmul.f32 %v4162_v37, %v1371_v50  ;;  %v1370_v23 = vsub.f32 2.0, %v1338_v7  ;;  %v1341_v46 = vmul.f32 %v4170_v47, %v1277_v10 }
 0x1ba   : > { %4191 = vlog2.f32 %v5383_v58  ;;  %v5400_v45 = vpop.f32.mrb[8].mxu1  ;;  %v2002_v18 = vpop.permute.xlu1 %2001  ;;  %v5407_v28 = vmax.f32 %v802_v57, 1e-30  ;;  %v1441_v48 = vmul.f32 0.6931472, %v4172_v6 }
 0x1bb   : > { %v4174_v21 = vpop.eup %4173  ;;  %4193 = vrcp.f32 %v5397_v17  ;;  %v5409_v26 = vpop.f32.mrb[9].mxu1  ;;  %3808 = vmatprep.mubr.msk.f32.mxu1 %vm406_vm0, %v2002_v18  ;;  %v1499_v31 = vmul.f32 %v5342_v60, %v1403_v35  ;;  %v1402_v32 = vmul.f32 %v4166_v55, %v1370_v23  ;;  %v1373_v54 = vsub.f32 2.0, %v1341_v46 }
 0x1bc   : > { %v4176_v51 = vpop.eup %4175  ;;  %v1340_v53 = vmul.f32 %v4174_v21, %v5349_v34  ;;  %v3698_v25 = vpop.f32.mrb[10].mxu0  ;;  %4195 = vlog2.f32 %v5397_v17 }
 0x1bd   : > { %v4178_v4 = vpop.eup %4177  ;;  %v812_v27 = vpop.f32.mrb[11].mxu0  ;;  %v1531_v30 = vsub.f32 %v1437_v2, %v1499_v31  ;;  %v1498_v8 = vmul.f32 %v1402_v32, %v5344_v41  ;;  %v1405_v29 = vmul.f32 %v4170_v47, %v1373_v54  ;;  %4197 = vrcp.f32 %v5407_v28 }
 0x1be   : > { %v4180_v44 = vpop.eup %4179  ;;  %v1372_v10 = vsub.f32 2.0, %v1340_v53  ;;  %v5416_v15 = vpop.f32.mrb[10].mxu1  ;;  %v1343_v16 = vmul.f32 %v4178_v4, %v5363_v3  ;;  %v1439_v52 = vmul.f32 0.6931472, %v4176_v51  ;;  %v5428_v55 = vmax.f32 %v3698_v25, 1e-30 }
 0x1bf   : > { %v2004_v1 = vpop.permute.xlu1 %2003  ;;  %v4182_v60 = vpop.eup %4181  ;;  %v1567_v56 = vmul.f32 %v5404_v20, %v1531_v30  ;;  %v1530_v62 = vsub.f32 %v1435_v22, %v1498_v8  ;;  %v1501_v41 = vmul.f32 %v5351_v19, %v1405_v29  ;;  %4199 = vlog2.f32 %v5407_v28 }
 0x1c0   : > { %v5420_v34 = vpop.f32.mrb[11].mxu1  ;;  %3809 = vmatmul.mubr.msk.f32.gmra.mrb[50].mxu1 %vm406_vm0, %v2004_v1  ;;  %v4184_v49 = vpop.eup %4183  ;;  %v1404_v37 = vmul.f32 %v4174_v21, %v1372_v10  ;;  %v1375_v0 = vsub.f32 2.0, %v1343_v16  ;;  %v1342_v3 = vmul.f32 %v4182_v60, %v5370_v38  ;;  %v1445_v35 = vmul.f32 0.6931472, %v4180_v44 }
 0x1c1   : > { %v5425_v39 = vpop.f32.mrb[12].mxu0  ;;  %v4186_v43 = vpop.eup %4185  ;;  %v1566_v50 = vmul.f32 %v5404_v20, %v1530_v62  ;;  %v1533_v7 = vsub.f32 %v1441_v48, %v1501_v41  ;;  %v1599_v21 = vmax.f32 %v1567_v56, 0.0  ;;  %v1443_v44 = vmul.f32 0.6931472, %v4184_v49 }
 0x1c2   : > { %v5430_v61 = vpop.f32.mrb[13].mxu0  ;;  %v4188_v12 = vpop.eup %4187  ;;  %v1500_v59 = vmul.f32 %v1404_v37, %v5357_v33  ;;  %v1407_v6 = vmul.f32 %v4178_v4, %v1375_v0  ;;  %v1374_v23 = vsub.f32 2.0, %v1342_v3  ;;  %v1345_v38 = vmul.f32 %v4186_v43, %v5380_v9 }
 0x1c3   : > { %v5435_v19 = vpop.f32.mrb[12].mxu1  ;;  %v2006_v47 = vpop.permute.xlu1 %2005  ;;  %v1598_v2 = vmax.f32 %v1566_v50, 0.0  ;;  %v5441_v33 = vmax.f32 %v812_v27, 1e-30  ;;  %v5450_v22 = vmul.f32 %v5404_v20, %v1533_v7  ;;  %v1449_v30 = vmul.f32 0.6931472, %v4188_v12 }
 0x1c4   : > { %v4190_v57 = vpop.eup %4189  ;;  %v5438_v46 = vpop.f32.mrb[13].mxu1  ;;  %3811 = vmatprep.mubr.msk.f32.mxu1 %vm406_vm0, %v2006_v47  ;;  %v1532_v51 = vsub.f32 %v1439_v52, %v1500_v59  ;;  %v1503_v54 = vmul.f32 %v5372_v40, %v1407_v6  ;;  %v1406_v53 = vmul.f32 %v4182_v60, %v1374_v23  ;;  %v1377_v25 = vsub.f32 2.0, %v1345_v38 }
 0x1c5   : > { %v4192_v18 = vpop.eup %4191  ;;  %v5443_v31 = vpop.f32.mrb[14].mxu0  ;;  %v1344_v4 = vmul.f32 %v4190_v57, %v5383_v58  ;;  %v5458_v58 = vmin.f32 %v1599_v21, 1.0  ;;  %v5460_v16 = vmin.f32 %v1598_v2, 1.0  ;;  %v1601_v3 = vmax.f32 %v5450_v22, 0.0 }
 0x1c6   : > { %v4194_v32 = vpop.eup %4193  ;;  %v5447_v9 = vpop.f32.mrb[15].mxu0  ;;  %v1535_v10 = vsub.f32 %v1445_v35, %v1503_v54  ;;  %v1502_v1 = vmul.f32 %v1406_v53, %v5375_v36  ;;  %v1409_v48 = vmul.f32 %v4186_v43, %v1377_v25  ;;  %v1568_v49 = vmul.f32 %v5404_v20, %v1532_v51 }
 0x1c7   : > { %v5452_v8 = vpop.f32.mrb[14].mxu1  ;;  %v2008_v27 = vpop.permute.xlu1 %2007  ;;  %v1376_v40 = vsub.f32 2.0, %v1344_v4  ;;  %v1347_v56 = vmul.f32 %v4194_v32, %v5397_v17  ;;  %4201 = vrcp.f32 %v5428_v55  ;;  %v1447_v6 = vmul.f32 0.6931472, %v4192_v18 }
 0x1c8   : > { %v4196_v29 = vpop.eup %4195  ;;  %v5455_v60 = vpop.f32.mrb[15].mxu1  ;;  %3812 = vmatmul.mubr.msk.f32.gmra.mrb[52].mxu1 %vm406_vm0, %v2008_v27  ;;  %v1571_v37 = vmul.f32 %v5404_v20, %v1535_v10  ;;  %v1534_v36 = vsub.f32 %v1443_v44, %v1502_v1  ;;  %v1505_v43 = vmul.f32 %v5385_v24, %v1409_v48  ;;  %v1600_v23 = vmax.f32 %v1568_v49, 0.0 }
 0x1c9   : > { %v5464_v62 = vpop.f32.mrb[16].mxu0  ;;  %v4198_v41 = vpop.eup %4197  ;;  %v1408_v52 = vmul.f32 %v4190_v57, %v1376_v40  ;;  %v1379_v12 = vsub.f32 2.0, %v1347_v56  ;;  %v1453_v21 = vmul.f32 0.6931472, %v4196_v29  ;;  %4203 = vlog2.f32 %v5428_v55 }
 0x1ca   : > { %v5468_v0 = vpop.f32.mrb[17].mxu0  ;;  %v1346_v50 = vmul.f32 %v4198_v41, %v5407_v28  ;;  %v5473_v7 = vpop.f32.mrb[16].mxu1  ;;  %v1570_v59 = vmul.f32 %v5404_v20, %v1534_v36  ;;  %v1537_v47 = vsub.f32 %v1449_v30, %v1505_v43  ;;  %v1603_v51 = vmax.f32 %v1571_v37, 0.0 }
 0x1cb   : > { %v2010_v17 = vpop.permute.xlu1 %2009  ;;  %v1504_v35 = vmul.f32 %v1408_v52, %v5389_v14  ;;  %v5477_v24 = vpop.f32.mrb[17].mxu1  ;;  %v1411_v38 = vmul.f32 %v4194_v32, %v1379_v12  ;;  %4205 = vrcp.f32 %v5441_v33  ;;  %v5485_v4 = vmax.f32 %v5425_v39, 1e-30 }
 0x1cc   : > { %3814 = vmatprep.mubr.msk.f32.mxu1 %vm406_vm0, %v2010_v17  ;;  %v4200_v57 = vpop.eup %4199  ;;  %v1378_v28 = vsub.f32 2.0, %v1346_v50  ;;  %v3710_v2 = vpop.f32.mrb[18].mxu0  ;;  %v1573_v54 = vmul.f32 %v5404_v20, %v1537_v47  ;;  %v1602_v44 = vmax.f32 %v1570_v59, 0.0  ;;  %4207 = vlog2.f32 %v5441_v33 }
 0x1cd   : > { %v1536_v53 = vsub.f32 %v1447_v6, %v1504_v35  ;;  %v852_v25 = vpop.f32.mrb[19].mxu0  ;;  %v1507_v18 = vmul.f32 %v5400_v45, %v1411_v38  ;;  %v5487_v22 = vpop.f32.mrb[18].mxu1  ;;  %v1451_v27 = vmul.f32 0.6931472, %v4200_v57  ;;  %4209 = vrcp.f32 %v5485_v4 }
 0x1ce   : > { %v1410_v14 = vmul.f32 %v4198_v41, %v1378_v28  ;;  %v5491_v29 = vpop.f32.mrb[19].mxu1  ;;  %v5497_v39 = vmax.f32 %v5430_v61, 1e-30  ;;  %v1605_v48 = vmax.f32 %v1573_v54, 0.0  ;;  %4211 = vlog2.f32 %v5485_v4 }
 0x1cf   : > { %v2012_v32 = vpop.permute.xlu1 %2011  ;;  %v1572_v30 = vmul.f32 %v5404_v20, %v1536_v53  ;;  %v1539_v45 = vsub.f32 %v1453_v21, %v1507_v18  ;;  %v3713_v1 = vpop.f32.mrb[20].mxu0  ;;  %v5501_v49 = vmax.f32 %v5443_v31, 1e-30  ;;  %v5510_v43 = vmin.f32 %v1601_v3, 1.0 }
 0x1d0   : > { %3815 = vmatmul.mubr.msk.f32.gmra.mrb[54].mxu1 %vm406_vm0, %v2012_v32  ;;  %v1506_v10 = vmul.f32 %v1410_v14, %v5409_v26  ;;  %v862_v56 = vpop.f32.mrb[21].mxu0  ;;  %4213 = vrcp.f32 %v5497_v39  ;;  %v5506_v26 = vmax.f32 %v5447_v9, 1e-30  ;;  %v5512_v52 = vmin.f32 %v1600_v23, 1.0 }
 0x1d1   : > { %v1604_v40 = vmax.f32 %v1572_v30, 0.0  ;;  %v1575_v41 = vmul.f32 %v5404_v20, %v1539_v45  ;;  %v5508_v36 = vpop.f32.mrb[20].mxu1  ;;  %v5514_v12 = vmin.f32 %v1603_v51, 1.0  ;;  %4215 = vlog2.f32 %v5497_v39  ;;  %v4202_v50 = vpop.eup %4201 }
 0x1d2   : > { %v1538_v37 = vsub.f32 %v1451_v27, %v1506_v10  ;;  %v5517_v31 = vpop.f32.mrb[21].mxu1  ;;  %4217 = vrcp.f32 %v5501_v49  ;;  %v5523_v59 = vmax.f32 %v5464_v62, 1e-30  ;;  %v5525_v47 = vmin.f32 %v1602_v44, 1.0  ;;  %v5554_v27 = vpop.permute.xlu0 %2382 }
 0x1d3   : > { %v2014_v61 = vpop.permute.xlu1 %2013  ;;  %6554 = vst [vmem:[#allocation14_spill] sm:$0xff] %v5514_v12  ;;  %v1607_v17 = vmax.f32 %v1575_v41, 0.0  ;;  %v3716_v3 = vpop.f32.mrb[22].mxu0  ;;  %v5527_v6 = vmin.f32 %v1605_v48, 1.0  ;;  %v1349_v35 = vmul.f32 %v4202_v50, %v5428_v55  ;;  %4219 = vlog2.f32 %v5501_v49  ;;  %6559 = vst [vmem:[#allocation19_spill] sm:$0xff] %v5554_v27 }
 0x1d4   : > { %3817 = vmatprep.mubr.msk.f32.mxu1 %vm406_vm0, %v2014_v61  ;;  %v1574_v9 = vmul.f32 %v5404_v20, %v1538_v37  ;;  %6555 = vst [vmem:[#allocation15_spill] sm:$0xff] %v5525_v47  ;;  %v872_v57 = vpop.f32.mrb[23].mxu0  ;;  %v5531_v23 = vmin.f32 %v1604_v40, 1.0  ;;  %4221 = vrcp.f32 %v5506_v26  ;;  %v5535_v38 = vmax.f32 %v5468_v0, 1e-30  ;;  %v4204_v51 = vpop.eup %4203 }
 0x1d5   : > { %6556 = vst [vmem:[#allocation16_spill] sm:$0xff] %v5527_v6  ;;  %v5537_v21 = vmax.f32 %v3710_v2, 1e-30  ;;  %v5539_v62 = vpop.f32.mrb[22].mxu1  ;;  %v1381_v54 = vsub.f32 2.0, %v1349_v35  ;;  %4223 = vlog2.f32 %v5506_v26  ;;  %v4206_v14 = vpop.eup %4205  ;;  %v5549_v0 = vmin.f32 %v1607_v17, 1.0 }
 0x1d6   : > { %6557 = vst [vmem:[#allocation17_spill] sm:$0xff] %v5531_v23  ;;  %v5542_v55 = vmax.f32 %v852_v25, 1e-30  ;;  %v5544_v53 = vmax.f32 %v3713_v1, 1e-30  ;;  %v5546_v18 = vpop.f32.mrb[23].mxu1  ;;  %4225 = vrcp.f32 %v5523_v59  ;;  %v4208_v30 = vpop.eup %4207  ;;  %v1348_v45 = vmul.f32 %v4206_v14, %v5441_v33 }
 0x1d7   : > { %v2016_v28 = vpop.permute.xlu1 %2015  ;;  %6558 = vst [vmem:[#allocation18_spill] sm:$0xff] %v5549_v0  ;;  %v1606_v2 = vmax.f32 %v1574_v9, 0.0  ;;  %v3719_v32 = vpop.f32.mrb[24].mxu0  ;;  %v1413_v25 = vmul.f32 %v4202_v50, %v1381_v54  ;;  %4227 = vlog2.f32 %v5523_v59  ;;  %v5558_v10 = vmax.f32 %v862_v56, 1e-30 }
 0x1d8   : > { %3818 = vmatmul.mubr.msk.f32.gmra.mrb[56].mxu1 %vm406_vm0, %v2016_v28  ;;  %v5560_v1 = vpop.f32.mrb[25].mxu0  ;;  %v4210_v48 = vpop.eup %4209  ;;  %v1457_v40 = vmul.f32 0.6931472, %v4204_v51  ;;  %4229 = vrcp.f32 %v5535_v38  ;;  %v5563_v41 = vmax.f32 %v3716_v3, 1e-30  ;;  %v1380_v9 = vsub.f32 2.0, %v1348_v45 }
 0x1d9   : > { %v5565_v37 = vpop.f32.mrb[24].mxu1  ;;  %v4212_v17 = vpop.eup %4211  ;;  %v1509_v33 = vmul.f32 %v5416_v15, %v1413_v25  ;;  %v1351_v56 = vmul.f32 %v4210_v48, %v5485_v4  ;;  %4231 = vlog2.f32 %v5535_v38  ;;  %v5575_v28 = vmin.f32 %v1606_v2, 1.0 }
 0x1da   : > { %v5572_v35 = vpop.f32.mrb[25].mxu1  ;;  %v4214_v3 = vpop.eup %4213  ;;  %4233 = vrcp.f32 %v5537_v21  ;;  %v1412_v45 = vmul.f32 %v4206_v14, %v1380_v9  ;;  %v1455_v61 = vmul.f32 0.6931472, %v4208_v30  ;;  %v5588_v44 = vmax.f32 %v872_v57, 1e-30 }
 0x1db   : > { %v2018_v50 = vpop.permute.xlu1 %2017  ;;  %6560 = vst [vmem:[#allocation20_spill] sm:$0xff] %v5575_v28  ;;  %v5578_v51 = vpop.f32.mrb[26].mxu0  ;;  %v1541_v25 = vsub.f32 %v1457_v40, %v1509_v33  ;;  %v1383_v11 = vsub.f32 2.0, %v1351_v56  ;;  %v1350_v42 = vmul.f32 %v4214_v3, %v5497_v39  ;;  %4235 = vlog2.f32 %v5537_v21 }
 0x1dc   : > { %3820 = vmatprep.mubr.msk.f32.mxu1 %vm406_vm0, %v2018_v50  ;;  %v4216_v4 = vpop.eup %4215  ;;  %v5585_v50 = vpop.f32.mrb[27].mxu0  ;;  %v5590_v13 = vmax.f32 %v3719_v32, 1e-30  ;;  %v1508_v14 = vmul.f32 %v1412_v45, %v5420_v34  ;;  %v1461_v56 = vmul.f32 0.6931472, %v4212_v17  ;;  %4237 = vrcp.f32 %v5542_v55 }
 0x1dd   : > { %v4218_v2 = vpop.eup %4217  ;;  %v5592_v47 = vpop.permute.xlu0 %2384  ;;  %v1577_v40 = vmul.f32 %v5404_v20, %v1541_v25  ;;  %v1415_v33 = vmul.f32 %v4210_v48, %v1383_v11  ;;  %v1382_v39 = vsub.f32 2.0, %v1350_v42  ;;  %v1459_v45 = vmul.f32 0.6931472, %v4216_v4 }
 0x1de   : > { %v4220_v27 = vpop.eup %4219  ;;  %6561 = vst [vmem:[#allocation21_spill] sm:$0xff] %v5592_v47  ;;  %v5596_v9 = vpop.f32.mrb[26].mxu1  ;;  %v1353_v57 = vmul.f32 %v4218_v2, %v5501_v49  ;;  %v1540_v11 = vsub.f32 %v1455_v61, %v1508_v14  ;;  %4239 = vlog2.f32 %v5542_v55 }
 0x1df   : > { %v2020_v54 = vpop.permute.xlu1 %2019  ;;  %v4222_v30 = vpop.eup %4221  ;;  %v1511_v42 = vmul.f32 %v5435_v19, %v1415_v33  ;;  %v1414_v48 = vmul.f32 %v4214_v3, %v1382_v39  ;;  %v1609_v47 = vmax.f32 %v1577_v40, 0.0  ;;  %v1465_v3 = vmul.f32 0.6931472, %v4220_v27 }
 0x1e0   : > { %3821 = vmatmul.mubr.msk.f32.gmra.mrb[58].mxu1 %vm406_vm0, %v2020_v54  ;;  %v5601_v32 = vpop.f32.mrb[27].mxu1  ;;  %v5603_v15 = vpop.f32.mrb[28].mxu0  ;;  %v1385_v49 = vsub.f32 2.0, %v1353_v57  ;;  %v1352_v23 = vmul.f32 %v4222_v30, %v5506_v26  ;;  %v1576_v25 = vmul.f32 %v5404_v20, %v1540_v11  ;;  %4241 = vrcp.f32 %v5544_v53 }
 0x1e1   : > { %6562 = vst [vmem:[#allocation22_spill] sm:$0xff] %v5601_v32  ;;  %v4224_v34 = vpop.eup %4223  ;;  %v5608_v54 = vpop.f32.mrb[29].mxu0  ;;  %v1543_v61 = vsub.f32 %v1461_v56, %v1511_v42  ;;  %v1510_v19 = vmul.f32 %v1414_v48, %v5438_v46  ;;  %v5628_v42 = vmin.f32 %v1609_v47, 1.0  ;;  %4243 = vlog2.f32 %v5544_v53 }
 0x1e2   : > { %v4226_v17 = vpop.eup %4225  ;;  %v5612_v6 = vpop.f32.mrb[28].mxu1  ;;  %v1417_v14 = vmul.f32 %v4218_v2, %v1385_v49  ;;  %v1384_v33 = vsub.f32 2.0, %v1352_v23  ;;  %v1463_v26 = vmul.f32 0.6931472, %v4224_v34  ;;  %v1608_v0 = vmax.f32 %v1576_v25, 0.0 }
 0x1e3   : > { %6563 = vst [vmem:[#allocation23_spill] sm:$0xff] %v5612_v6  ;;  %v2022_v12 = vpop.permute.xlu1 %2021  ;;  %v4228_v32 = vpop.eup %4227  ;;  %v1355_v39 = vmul.f32 %v4226_v17, %v5523_v59  ;;  %v1579_v56 = vmul.f32 %v5404_v20, %v1543_v61  ;;  %v1542_v46 = vsub.f32 %v1459_v45, %v1510_v19  ;;  %4245 = vrcp.f32 %v5558_v10 }
 0x1e4   : > { %v5616_v4 = vpop.f32.mrb[29].mxu1  ;;  %3823 = vmatprep.mubr.msk.f32.mxu1 %vm406_vm0, %v2022_v12  ;;  %v4230_v40 = vpop.eup %4229  ;;  %v1513_v23 = vmul.f32 %v5452_v8, %v1417_v14  ;;  %v1416_v2 = vmul.f32 %v4222_v30, %v1384_v33  ;;  %v5639_v30 = vmin.f32 %v1608_v0, 1.0  ;;  %4247 = vlog2.f32 %v5558_v10 }
 0x1e5   : > { %6564 = vst [vmem:[#allocation24_spill] sm:$0xff] %v5616_v4  ;;  %v5620_v57 = vpop.f32.mrb[30].mxu0  ;;  %v4232_v28 = vpop.eup %4231  ;;  %v1354_v27 = vmul.f32 %v4230_v40, %v5535_v38  ;;  %v1387_v59 = vsub.f32 2.0, %v1355_v39  ;;  %v1611_v25 = vmax.f32 %v1579_v56, 0.0  ;;  %v1578_v49 = vmul.f32 %v5404_v20, %v1542_v46 }
 0x1e6   : > { %v5622_v6 = vpop.permute.xlu0 %2386  ;;  %v5626_v11 = vpop.f32.mrb[31].mxu0  ;;  %v1545_v19 = vsub.f32 %v1465_v3, %v1513_v23  ;;  %v1512_v47 = vmul.f32 %v1416_v2, %v5455_v60  ;;  %v1467_v39 = vmul.f32 0.6931472, %v4232_v28  ;;  %4249 = vrcp.f32 %v5563_v41 }
 0x1e7   : > { %6565 = vst [vmem:[#allocation25_spill] sm:$0xff] %v5622_v6  ;;  %v4234_v12 = vpop.eup %4233  ;;  %v5631_v34 = vpop.f32.mrb[30].mxu1  ;;  %v1469_v6 = vmul.f32 0.6931472, %v4228_v32  ;;  %v1386_v61 = vsub.f32 2.0, %v1354_v27  ;;  %v1419_v4 = vmul.f32 %v4226_v17, %v1387_v59  ;;  %v1610_v14 = vmax.f32 %v1578_v49, 0.0 }
 0x1e8   : > { %6566 = vst [vmem:[#allocation26_spill] sm:$0xff] %v5631_v34  ;;  %v2024_v48 = vpop.permute.xlu1 %2023  ;;  %v5634_v45 = vpop.f32.mrb[31].mxu1  ;;  %v1357_v8 = vmul.f32 %v4234_v12, %v5537_v21  ;;  %v1581_v32 = vmul.f32 %v5404_v20, %v1545_v19  ;;  %v1544_v46 = vsub.f32 %v1463_v26, %v1512_v47  ;;  %v5643_v34 = vmin.f32 %v1611_v25, 1.0 }
 0x1e9   : > { %6567 = vst [vmem:[#allocation27_spill] sm:$0xff] %v5634_v45  ;;  %3824 = vmatmul.mubr.msk.f32.gmra.mrb[60].mxu1 %vm406_vm0, %v2024_v48  ;;  %v4236_v38 = vpop.eup %4235  ;;  %v1418_v33 = vmul.f32 %v4230_v40, %v1386_v61  ;;  %v1515_v27 = vmul.f32 %v5473_v7, %v1419_v4  ;;  %v5652_v4 = vmin.f32 %v1610_v14, 1.0  ;;  %4251 = vlog2.f32 %v5563_v41 }
 0x1ea   : > { %v4238_v56 = vpop.eup %4237  ;;  %v1389_v45 = vsub.f32 2.0, %v1357_v8  ;;  %v5645_v3 = vpop.permute.xlu0 %2388  ;;  %v1613_v28 = vmax.f32 %v1581_v32, 0.0  ;;  %v1580_v17 = vmul.f32 %v5404_v20, %v1544_v46  ;;  %v1473_v23 = vmul.f32 0.6931472, %v4236_v38 }
 0x1eb   : > { %v1514_v60 = vmul.f32 %v1418_v33, %v5477_v24  ;;  %v1356_v21 = vmul.f32 %v4238_v56, %v5542_v55  ;;  %v4240_v0 = vpop.eup %4239  ;;  %v1547_v40 = vsub.f32 %v1469_v6, %v1515_v27  ;;  %v6568_v38 = vmov 1.0  }
 0x1ec   : > { %v2026_v48 = vpop.permute.xlu1 %2025  ;;  %v1421_v7 = vmul.f32 %v4234_v12, %v1389_v45  ;;  %v1612_v59 = vmax.f32 %v1580_v17, 0.0  ;;  %v1471_v19 = vmul.f32 0.6931472, %v4240_v0  ;;  %v5660_v6 = vmin.f32 %v1613_v28, 1.0 }
 0x1ed   : > { %3826 = vmatprep.mubr.msk.f32.mxu1 %vm406_vm0, %v2026_v48  ;;  %v1546_v26 = vsub.f32 %v1467_v39, %v1514_v60  ;;  %v1388_v2 = vsub.f32 2.0, %v1356_v21  ;;  %v1583_v24 = vmul.f32 %v5404_v20, %v1547_v40  ;;  %4253 = vrcp.f32 %v5588_v44  ;;  %v4242_v60 = vpop.eup %4241 }
 0x1ee   : > { %v1517_v55 = vmul.f32 %v5487_v22, %v1421_v7  ;;  %v5667_v22 = vmin.f32 %v1612_v59, 1.0  ;;  %v5669_v47 = vpop.permute.xlu0 %2390  ;;  %v5680_v46 = vmax.f32 %v5578_v51, 1e-30  ;;  %4255 = vlog2.f32 %v5588_v44 }
 0x1ef   : > { %v1582_v49 = vmul.f32 %v5404_v20, %v1546_v26  ;;  %v1420_v61 = vmul.f32 %v4238_v56, %v1388_v2  ;;  %v1615_v12 = vmax.f32 %v1583_v24, 0.0  ;;  %v5676_v56 = vmax.f32 %v5560_v1, 1e-30  ;;  %v4244_v26 = vpop.eup %4243 }
 0x1f0   : > { %v2028_v25 = vpop.permute.xlu1 %2027  ;;  %v1549_v45 = vsub.f32 %v1473_v23, %v1517_v55  ;;  %v3905_v48 = vpack.c.bf16 %v5643_v34, %v5652_v4  ;;  %4257 = vrcp.f32 %v5590_v13  ;;  %v3909_v0 = vpack.c.bf16 %v5660_v6, %v5667_v22  ;;  %v6587_v34 = vld [vmem:[#allocation19_spill] sm:$0xff]  ;;  %v6588_v6 = vld [vmem:[#allocation21_spill] sm:$0xff] }
 0x1f1   : > { %3827 = vmatmul.mubr.msk.f32.gmra.mrb[62].mxu1 %vm406_vm0, %v2028_v25  ;;  %v1614_v8 = vmax.f32 %v1582_v49, 0.0  ;;  %v1516_v14 = vmul.f32 %v1420_v61, %v5491_v29  ;;  %v1647_v33 = vmin.f32 %v1615_v12, 1.0  ;;  %v3901_v29 = vpack.c.bf16 %v5628_v42, %v5639_v30  ;;  %v4424_v30 = vld [vmem:[%s4678_s23] sm:$0x3]  ;;  %v6589_v22 = vld [vmem:[#allocation25_spill] sm:$0xff] }
 0x1f2   : > { %3470 = vmatprep.mubr.msk.f32.mxu1 %vm369_vm2, %v6568_v38  ;;  %v1585_v39 = vmul.f32 %v5404_v20, %v1549_v45  ;;  %v1359_v51 = vmul.f32 %v4242_v60, %v5544_v53  ;;  %4259 = vlog2.f32 %v5590_v13  ;;  %v5693_v28 = vpop.permute.xlu0 %2392  ;;  %v5697_v7 = vmax.f32 %v5585_v50, 1e-30  ;;  %v4246_v53 = vpop.eup %4245 }
 0x1f3   : > { %v1646_v32 = vmin.f32 %v1614_v8, 1.0  ;;  %v1548_v5 = vsub.f32 %v1471_v19, %v1516_v14  ;;  %4261 = vrcp.f32 %v5676_v56  ;;  %v6569_v2 = vpack.c.bf16 %v5458_v58, %v5460_v16  ;;  %v4248_v55 = vpop.eup %4247 }
 0x1f4   : > { %v1617_v27 = vmax.f32 %v1585_v39, 0.0  ;;  %v1391_v23 = vsub.f32 2.0, %v1359_v51  ;;  %4263 = vlog2.f32 %v5676_v56  ;;  %v5705_v24 = vmax.f32 %v5603_v15, 1e-30  ;;  %v4250_v49 = vpop.eup %4249 }
 0x1f5   : > { %v1584_v1 = vmul.f32 %v5404_v20, %v1548_v5  ;;  %v3879_v21 = vpack.c.bf16 %v1647_v33, %v1646_v32  ;;  %4265 = vrcp.f32 %v5680_v46  ;;  %v1358_v50 = vmul.f32 %v4246_v53, %v5558_v10  ;;  %v4252_v58 = vpop.eup %4251 }
 0x1f6   : > { %v1649_v17 = vmin.f32 %v1617_v27, 1.0  ;;  %v1423_v25 = vmul.f32 %v4242_v60, %v1391_v23  ;;  %4267 = vlog2.f32 %v5680_v46  ;;  %v1477_v61 = vmul.f32 0.6931472, %v4244_v26  ;;  %v5713_v8 = vpop.permute.xlu0 %2394 }
 0x1f7   : > { %v1616_v40 = vmax.f32 %v1584_v1, 0.0  ;;  %3880 = vmatprep.subr.bf16.mxu0 %v3879_v21  ;;  %4269 = vrcp.f32 %v5697_v7  ;;  %v1390_v12 = vsub.f32 2.0, %v1358_v50  ;;  %v1361_v45 = vmul.f32 %v4250_v49, %v5563_v41  ;;  %v4254_v15 = vpop.eup %4253 }
 0x1f8   : > { %3882 = vmatpush3.bf16.msra.mxu0 %v6569_v2  ;;  %v1519_v16 = vmul.f32 %v5508_v36, %v1423_v25  ;;  %4271 = vlog2.f32 %v5697_v7  ;;  %v5717_v10 = vmax.f32 %v5608_v54, 1e-30  ;;  %v4256_v14 = vpop.eup %4255  ;;  %v1360_v36 = vmul.f32 %v4254_v15, %v5588_v44 }
 0x1f9   : > { %v1648_v59 = vmin.f32 %v1616_v40, 1.0  ;;  %4273 = vrcp.f32 %v5705_v24  ;;  %v1422_v39 = vmul.f32 %v4246_v53, %v1390_v12  ;;  %v1393_v32 = vsub.f32 2.0, %v1361_v45 }
 0x1fa   : > { %v1551_v33 = vsub.f32 %v1477_v61, %v1519_v16  ;;  %v6570_v41 = vpack.c.bf16 %v5510_v43, %v5512_v52  ;;  %v4258_v5 = vpop.eup %4257  ;;  %v1475_v27 = vmul.f32 0.6931472, %v4248_v55  ;;  %4275 = vlog2.f32 %v5705_v24  ;;  %v5735_v55 = vpop.permute.xlu0 %2396 }
 0x1fb   : > { %v3883_v19 = vpack.c.bf16 %v1649_v17, %v1648_v59  ;;  %v5725_v60 = vmax.f32 %v5620_v57, 1e-30  ;;  %v5728_v54 = vmax.f32 %v5626_v11, 1e-30  ;;  %v1518_v51 = vmul.f32 %v1422_v39, %v5517_v31 }
 0x1fc   : > { %v4260_v1 = vpop.eup %4259  ;;  %v1587_v21 = vmul.f32 %v5404_v20, %v1551_v33  ;;  %v1425_v44 = vmul.f32 %v4250_v49, %v1393_v32  ;;  %v1392_v17 = vsub.f32 2.0, %v1360_v36  ;;  %v1481_v43 = vmul.f32 0.6931472, %v4252_v58 }
 0x1fd   : > { %3884 = vmatprep.subr.bf16.mxu0 %v3883_v19  ;;  %v4262_v40 = vpop.eup %4261  ;;  %v1479_v52 = vmul.f32 0.6931472, %v4256_v14  ;;  %v1363_v26 = vmul.f32 %v4258_v5, %v5590_v13  ;;  %4277 = vrcp.f32 %v5717_v10  ;;  %v1550_v2 = vsub.f32 %v1475_v27, %v1518_v51 }
 0x1fe   : > { %3886 = vmatpush3.bf16.msra.mxu0 %v6570_v41  ;;  %v4264_v23 = vpop.eup %4263  ;;  %v1619_v57 = vmax.f32 %v1587_v21, 0.0  ;;  %v1521_v11 = vmul.f32 %v5539_v62, %v1425_v44  ;;  %v1424_v53 = vmul.f32 %v4254_v15, %v1392_v17  ;;  %v1485_v31 = vmul.f32 0.6931472, %v4260_v1 }
 0x1ff   : > { %v4266_v59 = vpop.eup %4265  ;;  %v1395_v25 = vsub.f32 2.0, %v1363_v26  ;;  %v1362_v50 = vmul.f32 %v4262_v40, %v5676_v56  ;;  %v1483_v49 = vmul.f32 0.6931472, %v4264_v23  ;;  %v1586_v19 = vmul.f32 %v5404_v20, %v1550_v2 }
 0x200   : > { %v4268_v61 = vpop.eup %4267  ;;  %v1553_v13 = vsub.f32 %v1481_v43, %v1521_v11  ;;  %v1520_v58 = vmul.f32 %v1424_v53, %v5546_v18  ;;  %4279 = vlog2.f32 %v5717_v10  ;;  %v1651_v12 = vmin.f32 %v1619_v57, 1.0 }
 0x201   : > { %v4270_v16 = vpop.eup %4269  ;;  %v1427_v62 = vmul.f32 %v4258_v5, %v1395_v25  ;;  %v1394_v45 = vsub.f32 2.0, %v1362_v50  ;;  %v1365_v15 = vmul.f32 %v4266_v59, %v5680_v46  ;;  %v1618_v33 = vmax.f32 %v1586_v19, 0.0  ;;  %v5746_v46 = vpop.permute.xlu0 %2398 }
 0x202   : > { %v4272_v14 = vpop.eup %4271  ;;  %v1589_v39 = vmul.f32 %v5404_v20, %v1553_v13  ;;  %v1552_v56 = vsub.f32 %v1479_v52, %v1520_v58  ;;  %v1364_v32 = vmul.f32 %v4270_v16, %v5697_v7  ;;  %v1489_v1 = vmul.f32 0.6931472, %v4268_v61  ;;  %v6571_v61 = vld [vmem:[#allocation22_spill] sm:$0xff] }
 0x203   : > { %v4274_v36 = vpop.eup %4273  ;;  %v1523_v41 = vmul.f32 %v5565_v37, %v1427_v62  ;;  %v1426_v27 = vmul.f32 %v4262_v40, %v1394_v45  ;;  %v1397_v18 = vsub.f32 2.0, %v1365_v15  ;;  %v1487_v44 = vmul.f32 0.6931472, %v4272_v14 }
 0x204   : > { %v1621_v21 = vmax.f32 %v1589_v39, 0.0  ;;  %v1588_v51 = vmul.f32 %v5404_v20, %v1552_v56  ;;  %v1396_v5 = vsub.f32 2.0, %v1364_v32  ;;  %v4276_v17 = vpop.eup %4275  ;;  %v1367_v7 = vmul.f32 %v4274_v36, %v5705_v24 }
 0x205   : > { %v1555_v43 = vsub.f32 %v1485_v31, %v1523_v41  ;;  %v1522_v26 = vmul.f32 %v1426_v27, %v5572_v35  ;;  %v1429_v52 = vmul.f32 %v4266_v59, %v1397_v18  ;;  %v1650_v23 = vmin.f32 %v1618_v33, 1.0  ;;  %v5757_v14 = vpop.permute.xlu0 %2400 }
 0x206   : > { %v1653_v57 = vmin.f32 %v1621_v21, 1.0  ;;  %v1620_v37 = vmax.f32 %v1588_v51, 0.0  ;;  %v1428_v40 = vmul.f32 %v4270_v16, %v1396_v5  ;;  %v1399_v50 = vsub.f32 2.0, %v1367_v7  ;;  %v6573_v51 = vld [vmem:[#allocation24_spill] sm:$0xff] }
 0x207   : > { %v4278_v2 = vpop.eup %4277  ;;  %v1591_v11 = vmul.f32 %v5404_v20, %v1555_v43  ;;  %v1554_v53 = vsub.f32 %v1483_v49, %v1522_v26  ;;  %v1525_v25 = vmul.f32 %v5596_v9, %v1429_v52  ;;  %v1493_v13 = vmul.f32 0.6931472, %v4276_v17  ;;  %v6574_v26 = vld [vmem:[#allocation14_spill] sm:$0xff]  ;;  %v6575_v52 = vld [vmem:[#allocation15_spill] sm:$0xff] }
 0x208   : > { %v1524_v19 = vmul.f32 %v1428_v40, %v6571_v61  ;;  %v1366_v31 = vmul.f32 %v4278_v2, %v5717_v10  ;;  %4281 = vrcp.f32 %v5725_v60  ;;  %v1431_v58 = vmul.f32 %v4274_v36, %v1399_v50  ;;  %v6572_v10 = vld [vmem:[#allocation23_spill] sm:$0xff]  ;;  %v6577_v50 = vld [vmem:[#allocation16_spill] sm:$0xff]  ;;  %v6578_v61 = vld [vmem:[#allocation17_spill] sm:$0xff] }
 0x209   : > { %v1623_v35 = vmax.f32 %v1591_v11, 0.0  ;;  %v1590_v24 = vmul.f32 %v5404_v20, %v1554_v53  ;;  %v1557_v59 = vsub.f32 %v1489_v1, %v1525_v25  ;;  %v1652_v62 = vmin.f32 %v1620_v37, 1.0 }
 0x20a   : > { %v4280_v16 = vpop.eup %4279  ;;  %v1556_v45 = vsub.f32 %v1487_v44, %v1524_v19  ;;  %v1398_v15 = vsub.f32 2.0, %v1366_v31  ;;  %4283 = vlog2.f32 %v5725_v60  ;;  %v1527_v39 = vmul.f32 %v6572_v10, %v1431_v58  ;;  %v6583_v10 = vld [vmem:[#allocation26_spill] sm:$0xff] }
 0x20b   : > { %v1655_v9 = vmin.f32 %v1623_v35, 1.0  ;;  %v1622_v49 = vmax.f32 %v1590_v24, 0.0  ;;  %v1593_v33 = vmul.f32 %v5404_v20, %v1557_v59  ;;  %4285 = vrcp.f32 %v5728_v54 }
 0x20c   : > { %v1592_v56 = vmul.f32 %v5404_v20, %v1556_v45  ;;  %v1430_v32 = vmul.f32 %v4278_v2, %v1398_v15  ;;  %v3887_v36 = vpack.c.bf16 %v1651_v12, %v1650_v23  ;;  %v1559_v18 = vsub.f32 %v1493_v13, %v1527_v39  ;;  %v5769_v12 = vpop.permute.xlu0 %2402  ;;  %v6580_v15 = vld [vmem:[#allocation18_spill] sm:$0xff] }
 0x20d   : > { %v1654_v41 = vmin.f32 %v1622_v49, 1.0  ;;  %v1625_v27 = vmax.f32 %v1593_v33, 0.0  ;;  %v1491_v21 = vmul.f32 0.6931472, %v4280_v16  ;;  %v3891_v44 = vpack.c.bf16 %v1653_v57, %v1652_v62 }
 0x20e   : > { %v1624_v1 = vmax.f32 %v1592_v56, 0.0  ;;  %v1526_v5 = vmul.f32 %v1430_v32, %v6573_v51  ;;  %3888 = vmatprep.subr.bf16.mxu0 %v3887_v36  ;;  %v1595_v43 = vmul.f32 %v5404_v20, %v1559_v18  ;;  %v6576_v7 = vpack.c.bf16 %v6574_v26, %v6575_v52  ;;  %v6584_v18 = vld [vmem:[#allocation27_spill] sm:$0xff] }
 0x20f   : > { %v1657_v17 = vmin.f32 %v1625_v27, 1.0  ;;  %v3895_v37 = vpack.c.bf16 %v1655_v9, %v1654_v41  ;;  %4287 = vlog2.f32 %v5728_v54  ;;  %v6579_v19 = vpack.c.bf16 %v6577_v50, %v6578_v61  ;;  %v6581_v9 = vld [vmem:[#allocation20_spill] sm:$0xff] }
 0x210   : > { %3890 = vmatpush3.bf16.msra.mxu0 %v6576_v7  ;;  %v1656_v40 = vmin.f32 %v1624_v1, 1.0  ;;  %v1558_v2 = vsub.f32 %v1491_v21, %v1526_v5  ;;  %v1627_v23 = vmax.f32 %v1595_v43, 0.0  ;;  %v2405_v16 = vpop.permute.xlu0 %2404  ;;  %v6582_v49 = vpack.c.bf16 %v6580_v15, %v6581_v9 }
 0x211   : > { %3892 = vmatprep.subr.bf16.mxu0 %v3891_v44 }
 0x212   : > { %v4282_v11 = vpop.eup %4281  ;;  %v1594_v53 = vmul.f32 %v5404_v20, %v1558_v2  ;;  %v3899_v57 = vpack.c.bf16 %v1657_v17, %v1656_v40  ;;  %v1659_v31 = vmin.f32 %v1627_v23, 1.0 }
 0x213   : > { %v1369_v25 = vmul.f32 %v4282_v11, %v5725_v60 }
 0x214   : > { %3894 = vmatpush3.bf16.msra.mxu0 %v6579_v19  ;;  %v4284_v13 = vpop.eup %4283  ;;  %v1626_v35 = vmax.f32 %v1594_v53, 0.0  ;;  %v2407_v21 = vpop.permute.xlu0 %2406 }
 0x215   : > { %3896 = vmatprep.subr.bf16.mxu0 %v3895_v37  ;;  %v1401_v24 = vsub.f32 2.0, %v1369_v25  ;;  %v4286_v59 = vpop.eup %4285  ;;  %v1497_v33 = vmul.f32 0.6931472, %v4284_v13 }
 0x216   : > { %v1658_v58 = vmin.f32 %v1626_v35, 1.0  ;;  %v1368_v45 = vmul.f32 %v4286_v59, %v5728_v54 }
 0x217   : > { %v1433_v62 = vmul.f32 %v4282_v11, %v1401_v24 }
 0x218   : > { %3898 = vmatpush3.bf16.msra.mxu0 %v6582_v49  ;;  %v3903_v60 = vpack.c.bf16 %v1659_v31, %v1658_v58  ;;  %v1400_v56 = vsub.f32 2.0, %v1368_v45  ;;  %v2409_v26 = vpop.permute.xlu0 %2408 }
 0x219   : > { %3900 = vmatprep.subr.bf16.mxu0 %v3899_v57  ;;  %v1529_v39 = vmul.f32 %v6583_v10, %v1433_v62  ;;  %v4288_v32 = vpop.eup %4287 }
 0x21a   : > { %v1432_v41 = vmul.f32 %v4286_v59, %v1400_v56  ;;  %v1495_v27 = vmul.f32 0.6931472, %v4288_v32 }
 0x21b   : > { %v1561_v36 = vsub.f32 %v1497_v33, %v1529_v39 }
 0x21c   : > { %3902 = vmatpush3.bf16.msra.mxu0 %v3901_v29  ;;  %v1528_v1 = vmul.f32 %v1432_v41, %v6584_v18  ;;  %v6585_v29 = vsub.s32 0, %v5340_v63  ;;  %v2411_v37 = vpop.permute.xlu0 %2410 }
 0x21d   : > { %3904 = vmatprep.subr.bf16.mxu0 %v3903_v60  ;;  %v1597_v54 = vmul.f32 %v5404_v20, %v1561_v36 }
 0x21e   : > { %v1560_v5 = vsub.f32 %v1495_v27, %v1528_v1  ;;  %v5793_v52 = vrot.slane %v4424_v30, %v6585_v29 }
 0x21f   : > { %v1629_v51 = vmax.f32 %v1597_v54, 0.0 }
 0x220   : > { %3906 = vmatpush3.bf16.msra.mxu0 %v3905_v48  ;;  %v1596_v44 = vmul.f32 %v5404_v20, %v1560_v5  ;;  %6586 = vst [vmem:[#allocation22_spill] sm:$0xff] %v5793_v52  ;;  %vm368_vm3 = vcmp.eq.s32.totalorder %v5340_v63, %v5793_v52  ;;  %v4425_v20 = vld [vmem:[%s6519_s3] sm:$0xff]  ;;  %v2413_v4 = vpop.permute.xlu0 %2412 }
 0x221   : > { %v1661_v17 = vmin.f32 %v1629_v51, 1.0 }
 0x222   : > { %v1628_v43 = vmax.f32 %v1596_v44, 0.0 }
 0x224   : > { %v1660_v42 = vmin.f32 %v1628_v43, 1.0  ;;  %v2415_v48 = vpop.permute.xlu0 %2414 }
 0x226   : > { %v3907_v7 = vpack.c.bf16 %v1661_v17, %v1660_v42 }
 0x228   : > { %3908 = vmatprep.subr.bf16.mxu0 %v3907_v7 }
 0x229   : > { %3910 = vmatpush3.bf16.msra.mxu0 %v3909_v0  ;;  %v2417_v0 = vpop.permute.xlu0 %2416 }
 0x22a   : > { %3829 = vmatprep.subr.mxu0 %v4425_v20 }
 0x22c   : > { %3405 = vmatmul.mubr.msk.f32.vlgmr.msra.gmra.mrb[32].mxu0 %vm368_vm3, %v6568_v38 }
 0x22d   : > { %3831 = vmatprep.mubr.msk.f32.mxu0 %vm406_vm0, %v6587_v34  ;;  %3830 = vmatpush3.msra.mxu0 %v4425_v20  ;;  %v2419_v40 = vpop.permute.xlu0 %2418 }
 0x230   : > { %3832 = vmatmul.mubr.msk.f32.vlgmr.msra.gmra.mrb[34].mxu0 %vm406_vm0, %v6588_v6 }
 0x231   : > { %3834 = vmatprep.mubr.msk.f32.mxu0 %vm406_vm0, %v6589_v22 }
 0x234   : > { %3835 = vmatmul.mubr.msk.f32.gmra.mrb[36].mxu0 %vm406_vm0, %v5645_v3  ;;  %v2421_v3 = vpop.permute.xlu0 %2420 }
 0x235   : > { %3837 = vmatprep.mubr.msk.f32.mxu0 %vm406_vm0, %v5669_v47 }
 0x238   : > { %3838 = vmatmul.mubr.msk.f32.gmra.mrb[38].mxu0 %vm406_vm0, %v5693_v28  ;;  %v2423_v47 = vpop.permute.xlu0 %2422 }
 0x239   : > { %3840 = vmatprep.mubr.msk.f32.mxu0 %vm406_vm0, %v5713_v8 }
 0x23c   : > { %3841 = vmatmul.mubr.msk.f32.gmra.mrb[40].mxu0 %vm406_vm0, %v5735_v55  ;;  %v2425_v28 = vpop.permute.xlu0 %2424 }
 0x23d   : > { %3843 = vmatprep.mubr.msk.f32.mxu0 %vm406_vm0, %v5746_v46 }
 0x240   : > { %3844 = vmatmul.mubr.msk.f32.gmra.mrb[42].mxu0 %vm406_vm0, %v5757_v14  ;;  %v2427_v46 = vpop.permute.xlu0 %2426 }
 0x241   : > { %3846 = vmatprep.mubr.msk.f32.mxu0 %vm406_vm0, %v5769_v12  ;;  %v2429_v12 = vpop.permute.xlu1 %2428 }
 0x244   : > { %3847 = vmatmul.mubr.msk.f32.gmra.mrb[44].mxu0 %vm406_vm0, %v2405_v16  ;;  %v2431_v23 = vpop.permute.xlu0 %2430 }
 0x245   : > { %3849 = vmatprep.mubr.msk.f32.mxu0 %vm406_vm0, %v2407_v21  ;;  %v2433_v57 = vpop.permute.xlu1 %2432 }
 0x248   : > { %3850 = vmatmul.mubr.msk.f32.gmra.mrb[46].mxu0 %vm406_vm0, %v2409_v26  ;;  %v2435_v25 = vpop.permute.xlu0 %2434 }
 0x249   : > { %3852 = vmatprep.mubr.msk.f32.mxu0 %vm406_vm0, %v2411_v37  ;;  %v2437_v19 = vpop.permute.xlu1 %2436 }
 0x24c   : > { %3853 = vmatmul.mubr.msk.f32.gmra.mrb[48].mxu0 %vm406_vm0, %v2413_v4  ;;  %v2439_v13 = vpop.permute.xlu0 %2438 }
 0x24d   : > { %3855 = vmatprep.mubr.msk.f32.mxu0 %vm406_vm0, %v2415_v48  ;;  %v2441_v24 = vpop.permute.xlu1 %2440 }
 0x250   : > { %3856 = vmatmul.mubr.msk.f32.gmra.mrb[50].mxu0 %vm406_vm0, %v2417_v0  ;;  %v2443_v59 = vpop.permute.xlu0 %2442 }
 0x251   : > { %3858 = vmatprep.mubr.msk.f32.mxu0 %vm406_vm0, %v2419_v40  ;;  %v2445_v58 = vpop.permute.xlu1 %2444 }
 0x254   : > { %3859 = vmatmul.mubr.msk.f32.gmra.mrb[52].mxu0 %vm406_vm0, %v2421_v3 }
 0x255   : > { %3861 = vmatprep.mubr.msk.f32.mxu0 %vm406_vm0, %v2423_v47 }
 0x258   : > { %3862 = vmatmul.mubr.msk.f32.gmra.mrb[54].mxu0 %vm406_vm0, %v2425_v28 }
 0x259   : > { %v3783_v8 = vpop.f32.mrb[32].mxu1  ;;  %3864 = vmatprep.mubr.msk.f32.mxu0 %vm406_vm0, %v2427_v46 }
 0x25a   : > { %v2159_v55 = vpop.f32.mrb[33].mxu1  ;;  %v2736_v17 = vmax.f32 %v3783_v8, 1e-30 }
 0x25b   : > { %v2735_v43 = vmax.f32 %v2159_v55, 1e-30 }
 0x25c   : > { %3865 = vmatmul.mubr.msk.f32.gmra.mrb[56].mxu0 %vm406_vm0, %v2429_v12  ;;  %4289 = vrcp.f32 %v2736_v17 }
 0x25d   : > { %3867 = vmatprep.mubr.msk.f32.mxu0 %vm406_vm0, %v2431_v23  ;;  %4291 = vlog2.f32 %v2736_v17 }
 0x25e   : > { %v3786_v14 = vpop.f32.mrb[34].mxu1  ;;  %4293 = vrcp.f32 %v2735_v43 }
 0x25f   : > { %v2169_v2 = vpop.f32.mrb[35].mxu1  ;;  %v2738_v26 = vmax.f32 %v3786_v14, 1e-30  ;;  %4295 = vlog2.f32 %v2735_v43 }
 0x260   : > { %3868 = vmatmul.mubr.msk.f32.gmra.mrb[58].mxu0 %vm406_vm0, %v2433_v57  ;;  %v2737_v42 = vmax.f32 %v2169_v2, 1e-30 }
 0x261   : > { %3870 = vmatprep.mubr.msk.f32.mxu0 %vm406_vm0, %v2435_v25  ;;  %4297 = vrcp.f32 %v2738_v26 }
 0x262   : > { %v3789_v11 = vpop.f32.mrb[36].mxu1  ;;  %4299 = vlog2.f32 %v2738_v26 }
 0x263   : > { %v2179_v53 = vpop.f32.mrb[37].mxu1  ;;  %v5890_v30 = vmax.f32 %v3789_v11, 1e-30  ;;  %4301 = vrcp.f32 %v2737_v42 }
 0x264   : > { %3871 = vmatmul.mubr.msk.f32.gmra.mrb[60].mxu0 %vm406_vm0, %v2437_v19  ;;  %v5892_v29 = vmax.f32 %v2179_v53, 1e-30  ;;  %4303 = vlog2.f32 %v2737_v42 }
 0x265   : > { %3873 = vmatprep.mubr.msk.f32.mxu0 %vm406_vm0, %v2439_v13  ;;  %4305 = vrcp.f32 %v5890_v30 }
 0x266   : > { %v3792_v50 = vpop.f32.mrb[38].mxu1  ;;  %4307 = vlog2.f32 %v5890_v30  ;;  %v5898_v37 = vpop.eup %4289 }
 0x267   : > { %v2189_v61 = vpop.f32.mrb[39].mxu1  ;;  %v5895_v7 = vmax.f32 %v3792_v50, 1e-30  ;;  %4309 = vrcp.f32 %v5892_v29  ;;  %v4292_v34 = vpop.eup %4291  ;;  %v2800_v25 = vmul.f32 %v5898_v37, %v2736_v17 }
 0x268   : > { %3874 = vmatmul.mubr.msk.f32.gmra.mrb[62].mxu0 %vm406_vm0, %v2441_v24  ;;  %v5901_v20 = vmax.f32 %v2189_v61, 1e-30  ;;  %4311 = vlog2.f32 %v5892_v29  ;;  %v5904_v4 = vpop.eup %4293  ;;  %v5984_v17 = vmul.f32 0.6931472, %v4292_v34 }
 0x269   : > { %3876 = vmatprep.mubr.msk.f32.mxu0 %vm406_vm0, %v2443_v59  ;;  %4313 = vrcp.f32 %v5895_v7  ;;  %v4296_v22 = vpop.eup %4295  ;;  %v2799_v50 = vmul.f32 %v5904_v4, %v2735_v43 }
 0x26a   : > { %v3795_v31 = vpop.f32.mrb[40].mxu1  ;;  %4315 = vlog2.f32 %v5895_v7 }
 0x26b   : > { %v2199_v35 = vpop.f32.mrb[41].mxu1  ;;  %v5907_v6 = vmax.f32 %v3795_v31, 1e-30  ;;  %v5910_v48 = vpop.eup %4297  ;;  %4317 = vrcp.f32 %v5901_v20 }
 0x26c   : > { %3877 = vmatmul.mubr.msk.f32.gmra.mrb[64].mxu0 %vm406_vm0, %v2445_v58  ;;  %v5913_v0 = vmax.f32 %v2199_v35, 1e-30  ;;  %v4300_v40 = vpop.eup %4299  ;;  %4319 = vlog2.f32 %v5901_v20  ;;  %v2802_v31 = vmul.f32 %v5910_v48, %v2738_v26 }
 0x26d   : > { %v5916_v3 = vpop.eup %4301  ;;  %4321 = vrcp.f32 %v5907_v6 }
 0x26e   : > { %v4304_v28 = vpop.eup %4303  ;;  %4323 = vlog2.f32 %v5907_v6  ;;  %v2801_v59 = vmul.f32 %v5916_v3, %v2737_v42  ;;  %v2834_v42 = vsub.f32 2.0, %v2802_v31 }
 0x26f   : > { %v5922_v8 = vpop.eup %4305  ;;  %4325 = vrcp.f32 %v5913_v0 }
 0x270   : > { %v4308_v46 = vpop.eup %4307  ;;  %4327 = vlog2.f32 %v5913_v0 }
 0x271   : > { %v5928_v14 = vpop.eup %4309 }
 0x272   : > { %v3798_v16 = vpop.f32.mrb[42].mxu1  ;;  %v5934_v12 = vpop.eup %4311 }
 0x273   : > { %v2209_v62 = vpop.f32.mrb[43].mxu1  ;;  %v5919_v47 = vmax.f32 %v3798_v16, 1e-30  ;;  %v5937_v23 = vpop.eup %4313 }
 0x274   : > { %v5925_v55 = vmax.f32 %v2209_v62, 1e-30  ;;  %v5943_v53 = vpop.eup %4315  ;;  %v2832_v62 = vsub.f32 2.0, %v2800_v25  ;;  %v2803_v25 = vmul.f32 %v5928_v14, %v5892_v29  ;;  %v2806_v29 = vmul.f32 %v5937_v23, %v5895_v7 }
 0x275   : > { %4329 = vrcp.f32 %v5919_v47  ;;  %v5951_v61 = vpop.eup %4317 }
 0x276   : > { %4331 = vlog2.f32 %v5919_v47  ;;  %v5957_v13 = vpop.eup %4319 }
 0x277   : > { %4333 = vrcp.f32 %v5925_v55  ;;  %v5961_v35 = vpop.eup %4321 }
 0x278   : > { %4335 = vlog2.f32 %v5925_v55  ;;  %v5968_v58 = vpop.eup %4323 }
 0x27a   : > { %v5850_v45 = vpop.f32.mrb[44].mxu1 }
 0x27b   : > { %v5852_v15 = vpop.f32.mrb[45].mxu1  ;;  %v5932_v2 = vmax.f32 %v5850_v45, 1e-30  ;;  %v2831_v45 = vsub.f32 2.0, %v2799_v50 }
 0x27c   : > { %v5941_v11 = vmax.f32 %v5852_v15, 1e-30  ;;  %v5974_v15 = vpop.eup %4325 }
 0x27d   : > { %4337 = vrcp.f32 %v5932_v2  ;;  %v5988_v43 = vpop.eup %4327  ;;  %v6011_v31 = vmul.f32 %v5904_v4, %v2831_v45  ;;  %v6028_v4 = vmul.f32 0.6931472, %v4308_v46  ;;  %v2808_v45 = vmul.f32 %v5961_v35, %v5907_v6 }
 0x27e   : > { %4339 = vlog2.f32 %v5932_v2  ;;  %v2838_v46 = vsub.f32 2.0, %v2806_v29  ;;  %v6056_v6 = vmul.f32 0.6931472, %v5943_v53 }
 0x27f   : > { %4341 = vrcp.f32 %v5941_v11  ;;  %v5996_v50 = vpop.eup %4329 }
 0x282   : > { %v5854_v9 = vpop.f32.mrb[46].mxu1 }
 0x283   : > { %v5856_v49 = vpop.f32.mrb[47].mxu1  ;;  %v5947_v57 = vmax.f32 %v5854_v9, 1e-30  ;;  %v4426_v9 = vld [vmem:[%s6520_s4] sm:$0x3] }
 0x284   : > { %v5955_v19 = vmax.f32 %v5856_v49, 1e-30  ;;  %v6595_v49 = vsub.s32 1, %v5340_v63 }
 0x285   : > { %4343 = vrcp.f32 %v5947_v57 }
 0x286   : > { %4345 = vrcp.f32 %v5955_v19 }
 0x287   : > { %4347 = vlog2.f32 %v5941_v11 }
 0x28a   : > { %v5858_v60 = vpop.f32.mrb[48].mxu1 }
 0x28b   : > { %v5860_v33 = vpop.f32.mrb[49].mxu1  ;;  %v5965_v24 = vmax.f32 %v5858_v60, 1e-30  ;;  %v5981_v60 = vrot.slane %v4426_v9, %v6595_v49  ;;  %v6002_v9 = vmul.f32 0.6931472, %v4296_v22  ;;  %v6004_v49 = vpop.eup %4331 }
 0x28c   : > { %v5972_v16 = vmax.f32 %v5860_v33, 1e-30  ;;  %v2804_v33 = vmul.f32 %v5922_v8, %v5890_v30  ;;  %v2833_v30 = vsub.f32 2.0, %v2801_v59  ;;  %v6015_v52 = vpop.eup %4333  ;;  %v6020_v22 = vmul.f32 0.6931472, %v4304_v28 }
 0x28d   : > { %4349 = vrcp.f32 %v5965_v24  ;;  %v6022_v63 = vpop.eup %4335  ;;  %v2805_v28 = vmul.f32 %v5951_v61, %v5901_v20  ;;  %v6053_v20 = vmul.f32 0.6931472, %v5934_v12  ;;  %v2809_v53 = vmul.f32 %v6015_v52, %v5925_v55 }
 0x28e   : > { %4351 = vrcp.f32 %v5972_v16  ;;  %v2836_v59 = vsub.f32 2.0, %v2804_v33  ;;  %v6030_v7 = vpop.eup %4337 }
 0x28f   : > { %4353 = vlog2.f32 %v5947_v57  ;;  %v4340_v33 = vpop.eup %4339  ;;  %v2837_v12 = vsub.f32 2.0, %v2805_v28  ;;  %v2812_v28 = vmul.f32 %v6030_v7, %v5932_v2  ;;  %v6098_v2 = vmul.f32 0.6931472, %v5988_v43 }
 0x291   : > { %6596 = vst [vmem:[#allocation17_spill] sm:$0xff] %v6098_v2  ;;  %v6123_v2 = vmul.f32 0.6931472, %v4340_v33 }
 0x293   : > { %v5862_v10 = vpop.f32.mrb[50].mxu1 }
 0x294   : > { %v5864_v39 = vpop.f32.mrb[51].mxu1  ;;  %v5992_v26 = vmax.f32 %v5862_v10, 1e-30  ;;  %v6008_v10 = vmul.f32 %v5898_v37, %v2832_v62  ;;  %v6026_v37 = vmul.f32 %v5910_v48, %v2834_v42  ;;  %v2835_v62 = vsub.f32 2.0, %v2803_v25  ;;  %v6046_v25 = vpop.eup %4341 }
 0x295   : > { %v6000_v34 = vmax.f32 %v5864_v39, 1e-30  ;;  %v6018_v39 = vmul.f32 0.6931472, %v4300_v40  ;;  %v6034_v40 = vmul.f32 %v5916_v3, %v2833_v30  ;;  %v2807_v42 = vmul.f32 %v5974_v15, %v5913_v0  ;;  %v6058_v30 = vpop.eup %4343 }
 0x296   : > { %4355 = vrcp.f32 %v5992_v26  ;;  %v6050_v3 = vmul.f32 %v5922_v8, %v2836_v59  ;;  %v6065_v0 = vmul.f32 %v5928_v14, %v2835_v62  ;;  %v2810_v8 = vmul.f32 %v5996_v50, %v5919_v47  ;;  %v4346_v29 = vpop.eup %4345 }
 0x297   : > { %4357 = vrcp.f32 %v6000_v34  ;;  %v2840_v59 = vsub.f32 2.0, %v2808_v45  ;;  %v4348_v38 = vpop.eup %4347  ;;  %v6077_v14 = vmul.f32 0.6931472, %v5957_v13  ;;  %v2839_v62 = vsub.f32 2.0, %v2807_v42 }
 0x298   : > { %4359 = vlog2.f32 %v5955_v19  ;;  %v6081_v47 = vmul.f32 0.6931472, %v5968_v58  ;;  %v2811_v55 = vmul.f32 %v6046_v25, %v5941_v11  ;;  %v2814_v13 = vmul.f32 %v6058_v30, %v5947_v57 }
 0x299   : > { %4361 = vlog2.f32 %v5965_v24  ;;  %v6095_v58 = vmul.f32 %v5961_v35, %v2840_v59  ;;  %v2841_v11 = vsub.f32 2.0, %v2809_v53  ;;  %v6107_v57 = vmul.f32 0.6931472, %v6004_v49 }
 0x29a   : > { %4363 = vlog2.f32 %v5972_v16  ;;  %v2844_v35 = vsub.f32 2.0, %v2812_v28  ;;  %v2843_v43 = vsub.f32 2.0, %v2811_v55  ;;  %v2846_v49 = vsub.f32 2.0, %v2814_v13 }
 0x29b   : > { %v5866_v56 = vpop.f32.mrb[52].mxu1  ;;  %4365 = vlog2.f32 %v5992_v26  ;;  %6597 = vst [vmem:[#allocation18_spill] sm:$0xff] %v6107_v57  ;;  %v6125_v28 = vmul.f32 0.6931472, %v4348_v38 }
 0x29c   : > { %v5868_v32 = vpop.f32.mrb[53].mxu1  ;;  %v6042_v48 = vmax.f32 %v5866_v56, 1e-30  ;;  %v6140_v38 = vmul.f32 %v6030_v7, %v2844_v35  ;;  %v6143_v33 = vmul.f32 %v6046_v25, %v2843_v43 }
 0x29d   : > { %v6062_v56 = vmax.f32 %v5868_v32, 1e-30  ;;  %v6074_v32 = vmul.f32 %v5937_v23, %v2838_v46  ;;  %v2842_v23 = vsub.f32 2.0, %v2810_v8  ;;  %v2813_v46 = vmul.f32 %v4346_v29, %v5955_v19  ;;  %6598 = vst [vmem:[#allocation20_spill] sm:$0xff] %v6125_v28 }
 0x29e   : > { %4367 = vrcp.f32 %v6042_v48  ;;  %v6104_v8 = vmul.f32 %v5974_v15, %v2839_v62  ;;  %v6118_v15 = vmul.f32 0.6931472, %v6022_v63 }
 0x29f   : > { %4369 = vlog2.f32 %v6000_v34  ;;  %v2845_v62 = vsub.f32 2.0, %v2813_v46 }
 0x2a0   : > { %4371 = vrcp.f32 %v6062_v56 }
 0x2a1   : > { %4373 = vlog2.f32 %v6042_v48 }
 0x2a2   : > { %4375 = vlog2.f32 %v6062_v56 }
 0x2a3   : > { %v5870_v36 = vpop.f32.mrb[54].mxu1 }
 0x2a4   : > { %v5872_v41 = vpop.f32.mrb[55].mxu1  ;;  %v6132_v63 = vmax.f32 %v5870_v36, 1e-30  ;;  %v6146_v36 = vmul.f32 %v6058_v30, %v2846_v49 }
 0x2a6   : > { %4377 = vrcp.f32 %v6132_v63 }
 0x2ab   : > { %v5874_v54 = vpop.f32.mrb[56].mxu1 }
 0x2ac   : > { %v5876_v27 = vpop.f32.mrb[57].mxu1 }
 0x2b3   : > { %v5878_v18 = vpop.f32.mrb[58].mxu1 }
 0x2b4   : > { %v5880_v1 = vpop.f32.mrb[59].mxu1 }
 0x2b5   : > { %6590 = vst [vmem:[#allocation23_spill] sm:$0xff] %v5880_v1  ;;  %v6121_v1 = vmul.f32 %v6015_v52, %v2841_v11  ;;  %v6137_v52 = vmax.f32 %v5872_v41, 1e-30 }
 0x2b7   : > { %4379 = vrcp.f32 %v6137_v52 }
 0x2bc   : > { %v5882_v21 = vpop.f32.mrb[60].mxu1 }
 0x2bd   : > { %6591 = vst [vmem:[#allocation24_spill] sm:$0xff] %v5882_v21  ;;  %v5884_v51 = vpop.f32.mrb[61].mxu1  ;;  %v6115_v21 = vmul.f32 %v5996_v50, %v2842_v23 }
 0x2be   : > { %6592 = vst [vmem:[#allocation14_spill] sm:$0xff] %v5884_v51 }
 0x2c4   : > { %v5886_v5 = vpop.f32.mrb[62].mxu1 }
 0x2c5   : > { %6593 = vst [vmem:[#allocation15_spill] sm:$0xff] %v5886_v5  ;;  %v5888_v44 = vpop.f32.mrb[63].mxu1  ;;  %v6092_v5 = vmul.f32 %v5951_v61, %v2837_v12 }
 0x2c6   : > { %6594 = vst [vmem:[#allocation16_spill] sm:$0xff] %v5888_v44  ;;  %v4350_v44 = vpop.eup %4349  ;;  %4381 = vlog2.f32 %v6132_v63 }
 0x2c7   : > { %v4352_v45 = vpop.eup %4351  ;;  %v2816_v61 = vmul.f32 %v4350_v44, %v5965_v24  ;;  %4383 = vlog2.f32 %v6137_v52 }
 0x2c8   : > { %v4354_v42 = vpop.eup %4353  ;;  %v2815_v12 = vmul.f32 %v4352_v45, %v5972_v16 }
 0x2c9   : > { %v6100_v51 = vpop.eup %4355  ;;  %v2848_v23 = vsub.f32 2.0, %v2816_v61  ;;  %v6148_v61 = vmul.f32 0.6931472, %v4354_v42 }
 0x2ca   : > { %v6110_v19 = vpop.eup %4357  ;;  %v2818_v16 = vmul.f32 %v6100_v51, %v5992_v26  ;;  %v2847_v26 = vsub.f32 2.0, %v2815_v12 }
 0x2cb   : > { %v4360_v59 = vpop.eup %4359  ;;  %v2817_v13 = vmul.f32 %v6110_v19, %v6000_v34  ;;  %v6161_v30 = vmul.f32 %v4350_v44, %v2848_v23 }
 0x2cc   : > { %v4362_v57 = vpop.eup %4361  ;;  %v6152_v34 = vmul.f32 0.6931472, %v4360_v59  ;;  %v2850_v43 = vsub.f32 2.0, %v2818_v16  ;;  %v6165_v59 = vmul.f32 %v4352_v45, %v2847_v26 }
 0x2cd   : > { %v4364_v55 = vpop.eup %4363  ;;  %v6155_v35 = vmul.f32 0.6931472, %v4362_v57 }
 0x2ce   : > { %v4366_v46 = vpop.eup %4365  ;;  %v6157_v25 = vmul.f32 0.6931472, %v4364_v55  ;;  %v6177_v45 = vmul.f32 %v6100_v51, %v2850_v43 }
 0x2cf   : > { %v4368_v11 = vpop.eup %4367 }
 0x2d0   : > { %v4370_v41 = vpop.eup %4369 }
 0x2d1   : > { %v4372_v12 = vpop.eup %4371  ;;  %v6172_v16 = vmul.f32 0.6931472, %v4370_v41 }
 0x2d2   : > { %v4374_v57 = vpop.eup %4373 }
 0x2d3   : > { %v4376_v44 = vpop.eup %4375  ;;  %v6191_v41 = vmul.f32 0.6931472, %v4374_v57 }
 0x2ff   : > { %v3575_v53 = vpop.f32.mrb[32].mxu0 }
 0x300   : > { %v3576_v24 = vpop.f32.mrb[33].mxu0 }
 0x301   : > { %v6129_v50 = vadd.f32 %v3576_v24, %v3575_v53  ;;  %v6150_v24 = vmul.f32 %v4346_v29, %v2845_v62  ;;  %v2849_v29 = vsub.f32 2.0, %v2817_v13 }
 0x303   : > { %6599 = vst [vmem:[#allocation26_spill] sm:$0xff] %v6129_v50  ;;  %v3833_v53 = vpop.f32.mrb[34].mxu0  ;;  %v6184_v23 = vmul.f32 %v6110_v19, %v2849_v29 }
 0x304   : > { %v2960_v50 = vmul.f32 %v3833_v53, %v6008_v10  ;;  %v2576_v7 = vpop.f32.mrb[35].mxu0  ;;  %v2820_v10 = vmul.f32 %v4368_v11, %v6042_v48  ;;  %v2819_v48 = vmul.f32 %v4372_v12, %v6062_v56 }
 0x305   : > { %v2959_v28 = vmul.f32 %v6011_v31, %v2576_v7  ;;  %v6170_v31 = vmul.f32 0.6931472, %v4366_v46  ;;  %v6193_v7 = vmul.f32 0.6931472, %v4376_v44  ;;  %v4378_v44 = vpop.eup %4377 }
 0x306   : > { %v2992_v42 = vsub.f32 %v5984_v17, %v2960_v50  ;;  %v2852_v26 = vsub.f32 2.0, %v2820_v10 }
 0x307   : > { %v2991_v49 = vsub.f32 %v6002_v9, %v2959_v28  ;;  %v3836_v62 = vpop.f32.mrb[36].mxu0 }
 0x308   : > { %v3028_v55 = vmul.f32 %v5981_v60, %v2992_v42  ;;  %v2962_v17 = vmul.f32 %v3836_v62, %v6026_v37  ;;  %v2586_v50 = vpop.f32.mrb[37].mxu0  ;;  %v6188_v37 = vmax.f32 %v5874_v54, 1e-30  ;;  %v6208_v62 = vmul.f32 %v4368_v11, %v2852_v26 }
 0x309   : > { %v3027_v9 = vmul.f32 %v5981_v60, %v2991_v49  ;;  %v2961_v28 = vmul.f32 %v6034_v40, %v2586_v50  ;;  %v4380_v50 = vpop.eup %4379 }
 0x30a   : > { %v3060_v13 = vmax.f32 %v3028_v55, 0.0  ;;  %v2994_v46 = vsub.f32 %v6018_v39, %v2962_v17  ;;  %v2851_v39 = vsub.f32 2.0, %v2819_v48  ;;  %4385 = vrcp.f32 %v6188_v37 }
 0x30b   : > { %v3059_v51 = vmax.f32 %v3027_v9, 0.0  ;;  %v2993_v53 = vsub.f32 %v6020_v22, %v2961_v28  ;;  %v3839_v56 = vpop.f32.mrb[38].mxu0  ;;  %v6204_v22 = vmax.f32 %v5876_v27, 1e-30  ;;  %4387 = vlog2.f32 %v6188_v37  ;;  %v4382_v28 = vpop.eup %4381 }
 0x30c   : > { %v6195_v40 = vmin.f32 %v3060_v13, 1.0  ;;  %v3030_v19 = vmul.f32 %v5981_v60, %v2994_v46  ;;  %v2964_v43 = vmul.f32 %v3839_v56, %v6050_v3  ;;  %v2596_v29 = vpop.f32.mrb[39].mxu0  ;;  %v6218_v11 = vmul.f32 %v4372_v12, %v2851_v39 }
 0x30d   : > { %v6199_v42 = vmin.f32 %v3059_v51, 1.0  ;;  %v3029_v54 = vmul.f32 %v5981_v60, %v2993_v53  ;;  %v2963_v10 = vmul.f32 %v6065_v0, %v2596_v29  ;;  %4389 = vrcp.f32 %v6204_v22 }
 0x30e   : > { %v3062_v57 = vmax.f32 %v3030_v19, 0.0  ;;  %v2996_v49 = vsub.f32 %v6028_v4, %v2964_v43  ;;  %4391 = vlog2.f32 %v6204_v22  ;;  %v2822_v53 = vmul.f32 %v4378_v44, %v6132_v63 }
 0x30f   : > { %v3061_v3 = vmax.f32 %v3029_v54, 0.0  ;;  %v2995_v55 = vsub.f32 %v6053_v20, %v2963_v10  ;;  %v3842_v17 = vpop.f32.mrb[40].mxu0  ;;  %v3913_v0 = vpack.c.bf16 %v6195_v40, %v6199_v42  ;;  %v2821_v43 = vmul.f32 %v4380_v50, %v6137_v52 }
 0x310   : > { %v6214_v27 = vmin.f32 %v3062_v57, 1.0  ;;  %v3032_v48 = vmul.f32 %v5981_v60, %v2996_v49  ;;  %v2966_v4 = vmul.f32 %v3842_v17, %v6074_v32  ;;  %v2606_v9 = vpop.f32.mrb[41].mxu0  ;;  %v4384_v32 = vpop.eup %4383  ;;  %v6236_v10 = vmul.f32 0.6931472, %v4382_v28 }
 0x311   : > { %v6220_v13 = vmin.f32 %v3061_v3, 1.0  ;;  %v3031_v20 = vmul.f32 %v5981_v60, %v2995_v55  ;;  %v2965_v46 = vmul.f32 %v6092_v5, %v2606_v9  ;;  %v6243_v52 = vmax.f32 %v5878_v18, 1e-30 }
 0x312   : > { %v3064_v26 = vmax.f32 %v3032_v48, 0.0  ;;  %v2998_v51 = vsub.f32 %v6056_v6, %v2966_v4  ;;  %v2854_v55 = vsub.f32 2.0, %v2822_v53  ;;  %v6246_v17 = vmul.f32 0.6931472, %v4384_v32 }
 0x313   : > { %v3063_v56 = vmax.f32 %v3031_v20, 0.0  ;;  %v2997_v12 = vsub.f32 %v6077_v14, %v2965_v46  ;;  %v3845_v19 = vpop.f32.mrb[42].mxu0  ;;  %v3917_v29 = vpack.c.bf16 %v6214_v27, %v6220_v13  ;;  %v2853_v28 = vsub.f32 2.0, %v2821_v43 }
 0x314   : > { %v6232_v5 = vmin.f32 %v3064_v26, 1.0  ;;  %v3034_v39 = vmul.f32 %v5981_v60, %v2998_v51  ;;  %v2968_v6 = vmul.f32 %v3845_v19, %v6095_v58  ;;  %v2616_v54 = vpop.f32.mrb[43].mxu0  ;;  %v6600_v58 = vld [vmem:[#allocation17_spill] sm:$0xff]  ;;  %v6251_v46 = vpop.eup %4385  ;;  %v6601_v51 = vld [vmem:[#allocation23_spill] sm:$0xff]  ;;  %4393 = vrcp.f32 %v6243_v52 }
 0x315   : > { %v6238_v63 = vmin.f32 %v3063_v56, 1.0  ;;  %v3033_v57 = vmul.f32 %v5981_v60, %v2997_v12  ;;  %v2967_v14 = vmul.f32 %v6104_v8, %v2616_v54  ;;  %v6258_v53 = vmax.f32 %v6601_v51, 1e-30  ;;  %v4388_v32 = vpop.eup %4387  ;;  %v6603_v51 = vld [vmem:[#allocation20_spill] sm:$0xff] }
 0x316   : > { %v3066_v49 = vmax.f32 %v3034_v39, 0.0  ;;  %v3000_v3 = vsub.f32 %v6081_v47, %v2968_v6  ;;  %v6602_v39 = vld [vmem:[#allocation18_spill] sm:$0xff]  ;;  %4395 = vlog2.f32 %v6243_v52  ;;  %v6267_v54 = vmul.f32 %v4378_v44, %v2854_v55 }
 0x317   : > { %v3065_v48 = vmax.f32 %v3033_v57, 0.0  ;;  %v2999_v4 = vsub.f32 %v6600_v58, %v2967_v14  ;;  %v3848_v9 = vpop.f32.mrb[44].mxu0  ;;  %v3921_v20 = vpack.c.bf16 %v6232_v5, %v6238_v63  ;;  %4397 = vrcp.f32 %v6258_v53 }
 0x318   : > { %v6253_v8 = vmin.f32 %v3066_v49, 1.0  ;;  %v3036_v18 = vmul.f32 %v5981_v60, %v3000_v3  ;;  %v2970_v26 = vmul.f32 %v3848_v9, %v6115_v21  ;;  %v2626_v47 = vpop.f32.mrb[45].mxu0  ;;  %v6269_v21 = vpop.eup %4389  ;;  %v6272_v3 = vmul.f32 %v4380_v50, %v2853_v28 }
 0x319   : > { %v6260_v56 = vmin.f32 %v3065_v48, 1.0  ;;  %v3035_v12 = vmul.f32 %v5981_v60, %v2999_v4  ;;  %v2969_v19 = vmul.f32 %v6121_v1, %v2626_v47  ;;  %v4392_v48 = vpop.eup %4391  ;;  %v6287_v28 = vmul.f32 %v6251_v46, %v6188_v37 }
 0x31a   : > { %v3068_v43 = vmax.f32 %v3036_v18, 0.0  ;;  %v3002_v6 = vsub.f32 %v6602_v39, %v2970_v26  ;;  %4399 = vlog2.f32 %v6258_v53  ;;  %v6291_v47 = vmul.f32 0.6931472, %v4388_v32 }
 0x31b   : > { %v3067_v57 = vmax.f32 %v3035_v12, 0.0  ;;  %v3001_v14 = vsub.f32 %v6118_v15, %v2969_v19  ;;  %v3851_v49 = vpop.f32.mrb[46].mxu0  ;;  %v3925_v1 = vpack.c.bf16 %v6253_v8, %v6260_v56 }
 0x31c   : > { %v6276_v58 = vmin.f32 %v3068_v43, 1.0  ;;  %v3038_v4 = vmul.f32 %v5981_v60, %v3002_v6  ;;  %v2972_v9 = vmul.f32 %v3851_v49, %v6140_v38  ;;  %v2636_v44 = vpop.f32.mrb[47].mxu0  ;;  %v6604_v43 = vld [vmem:[#allocation24_spill] sm:$0xff] }
 0x31d   : > { %v6281_v55 = vmin.f32 %v3067_v57, 1.0  ;;  %v3037_v15 = vmul.f32 %v5981_v60, %v3001_v14  ;;  %v2971_v50 = vmul.f32 %v6143_v33, %v2636_v44  ;;  %v6295_v39 = vmax.f32 %v6604_v43, 1e-30  ;;  %v6605_v14 = vld [vmem:[#allocation14_spill] sm:$0xff] }
 0x31e   : > { %v3070_v18 = vmax.f32 %v3038_v4, 0.0  ;;  %v3004_v26 = vsub.f32 %v6123_v2, %v2972_v9  ;;  %v6304_v32 = vmax.f32 %v6605_v14, 1e-30  ;;  %v2856_v44 = vsub.f32 2.0, %v6287_v28 }
 0x31f   : > { %v3069_v38 = vmax.f32 %v3037_v15, 0.0  ;;  %v3003_v12 = vsub.f32 %v6603_v51, %v2971_v50  ;;  %v3854_v19 = vpop.f32.mrb[48].mxu0  ;;  %v3929_v33 = vpack.c.bf16 %v6276_v58, %v6281_v55  ;;  %4401 = vrcp.f32 %v6295_v39 }
 0x320   : > { %v6299_v6 = vmin.f32 %v3070_v18, 1.0  ;;  %v3040_v37 = vmul.f32 %v5981_v60, %v3004_v26  ;;  %v2974_v2 = vmul.f32 %v3854_v19, %v6146_v36  ;;  %v2646_v57 = vpop.f32.mrb[49].mxu0  ;;  %v2823_v18 = vmul.f32 %v6269_v21, %v6204_v22  ;;  %v6316_v36 = vpop.eup %4393 }
 0x321   : > { %v6306_v49 = vmin.f32 %v3069_v38, 1.0  ;;  %v3039_v4 = vmul.f32 %v5981_v60, %v3003_v12  ;;  %v2973_v9 = vmul.f32 %v6150_v24, %v2646_v57  ;;  %v6314_v26 = vmul.f32 0.6931472, %v4392_v48  ;;  %v4396_v28 = vpop.eup %4395 }
 0x322   : > { %v3072_v15 = vmax.f32 %v3040_v37, 0.0  ;;  %v3006_v50 = vsub.f32 %v6148_v61, %v2974_v2  ;;  %4403 = vrcp.f32 %v6304_v32  ;;  %v6606_v2 = vld [vmem:[#allocation15_spill] sm:$0xff]  ;;  %v6334_v14 = vpop.eup %4397 }
 0x323   : > { %v3071_v51 = vmax.f32 %v3039_v4, 0.0  ;;  %v3005_v38 = vsub.f32 %v6152_v34, %v2973_v9  ;;  %v3857_v12 = vpop.f32.mrb[50].mxu0  ;;  %v6332_v57 = vmax.f32 %v6606_v2, 1e-30  ;;  %4405 = vlog2.f32 %v6295_v39 }
 0x324   : > { %v6322_v19 = vmin.f32 %v3072_v15, 1.0  ;;  %v3042_v61 = vmul.f32 %v5981_v60, %v3006_v50  ;;  %v2976_v22 = vmul.f32 %v3857_v12, %v6161_v30  ;;  %v2656_v48 = vpop.f32.mrb[51].mxu0  ;;  %v6607_v15 = vld [vmem:[#allocation16_spill] sm:$0xff]  ;;  %v2855_v30 = vsub.f32 2.0, %v2823_v18 }
 0x325   : > { %v6327_v43 = vmin.f32 %v3071_v51, 1.0  ;;  %v3041_v34 = vmul.f32 %v5981_v60, %v3005_v38  ;;  %v2975_v37 = vmul.f32 %v6165_v59, %v2656_v48  ;;  %v6338_v50 = vmax.f32 %v6607_v15, 1e-30  ;;  %v6344_v48 = vpop.eup %4399 }
 0x326   : > { %v3074_v4 = vmax.f32 %v3042_v61, 0.0  ;;  %v3008_v9 = vsub.f32 %v6155_v35, %v2976_v22  ;;  %v2826_v18 = vmul.f32 %v6316_v36, %v6243_v52  ;;  %4407 = vrcp.f32 %v6332_v57 }
 0x327   : > { %v3073_v12 = vmax.f32 %v3041_v34, 0.0  ;;  %v3007_v51 = vsub.f32 %v6157_v25, %v2975_v37  ;;  %v3860_v38 = vpop.f32.mrb[52].mxu0  ;;  %4409 = vrcp.f32 %v6338_v50  ;;  %v2825_v52 = vmul.f32 %v6334_v14, %v6258_v53 }
 0x328   : > { %v6346_v2 = vmin.f32 %v3074_v4, 1.0  ;;  %v3044_v61 = vmul.f32 %v5981_v60, %v3008_v9  ;;  %v2978_v35 = vmul.f32 %v3860_v38, %v6177_v45  ;;  %v2666_v22 = vpop.f32.mrb[53].mxu0  ;;  %v2888_v9 = vmul.f32 %v6251_v46, %v2856_v44 }
 0x329   : > { %v6352_v34 = vmin.f32 %v3073_v12, 1.0  ;;  %v3043_v25 = vmul.f32 %v5981_v60, %v3007_v51  ;;  %v2977_v37 = vmul.f32 %v6184_v23, %v2666_v22  ;;  %v6367_v22 = vpop.eup %4401  ;;  %4411 = vlog2.f32 %v6304_v32 }
 0x32a   : > { %v3076_v15 = vmax.f32 %v3044_v61, 0.0  ;;  %v3010_v4 = vsub.f32 %v6170_v31, %v2978_v35  ;;  %v2858_v35 = vsub.f32 2.0, %v2826_v18  ;;  %v2857_v12 = vsub.f32 2.0, %v2825_v52 }
 0x32b   : > { %v3075_v45 = vmax.f32 %v3043_v25, 0.0  ;;  %v3009_v38 = vsub.f32 %v6172_v16, %v2977_v37  ;;  %v3863_v59 = vpop.f32.mrb[54].mxu0  ;;  %v2887_v25 = vmul.f32 %v6269_v21, %v2855_v30  ;;  %4413 = vlog2.f32 %v6332_v57 }
 0x32c   : > { %v3108_v23 = vmin.f32 %v3076_v15, 1.0  ;;  %v3046_v51 = vmul.f32 %v5981_v60, %v3010_v4  ;;  %v2980_v61 = vmul.f32 %v3863_v59, %v6208_v62  ;;  %v2676_v31 = vpop.f32.mrb[55].mxu0  ;;  %v6372_v53 = vpop.eup %4403  ;;  %v6376_v4 = vmul.f32 0.6931472, %v4396_v28 }
 0x32d   : > { %v3107_v46 = vmin.f32 %v3075_v45, 1.0  ;;  %v3045_v44 = vmul.f32 %v5981_v60, %v3009_v38  ;;  %v2979_v16 = vmul.f32 %v6218_v11, %v2676_v31  ;;  %v2890_v31 = vmul.f32 %v6316_v36, %v2858_v35  ;;  %v4406_v24 = vpop.eup %4405 }
 0x32e   : > { %v3078_v37 = vmax.f32 %v3046_v51, 0.0  ;;  %v3012_v15 = vsub.f32 %v6191_v41, %v2980_v61  ;;  %4415 = vlog2.f32 %v6338_v50  ;;  %v2948_v27 = vmul.f32 0.6931472, %v6344_v48 }
 0x32f   : > { %v3077_v62 = vmax.f32 %v3045_v44, 0.0  ;;  %v3011_v59 = vsub.f32 %v6193_v7, %v2979_v16  ;;  %v3866_v18 = vpop.f32.mrb[56].mxu0  ;;  %v3911_v45 = vpack.c.bf16 %v3108_v23, %v3107_v46  ;;  %v2828_v7 = vmul.f32 %v6367_v22, %v6295_v39 }
 0x330   : > { %v3110_v38 = vmin.f32 %v3078_v37, 1.0  ;;  %v3048_v11 = vmul.f32 %v5981_v60, %v3012_v15  ;;  %v2982_v21 = vmul.f32 %v3866_v18, %v6267_v54  ;;  %v2686_v30 = vpop.f32.mrb[57].mxu0  ;;  %v2827_v54 = vmul.f32 %v6372_v53, %v6304_v32  ;;  %v6393_v36 = vpop.eup %4407 }
 0x331   : > { %v3109_v51 = vmin.f32 %v3077_v62, 1.0  ;;  %v3047_v41 = vmul.f32 %v5981_v60, %v3011_v59  ;;  %v2981_v28 = vmul.f32 %v6272_v3, %v2686_v30  ;;  %3912 = vmatprep.subr.bf16.mxu1 %v3911_v45  ;;  %v2889_v39 = vmul.f32 %v6334_v14, %v2857_v12  ;;  %v4410_v44 = vpop.eup %4409 }
 0x332   : > { %v3080_v52 = vmax.f32 %v3048_v11, 0.0  ;;  %v3014_v23 = vsub.f32 %v6236_v10, %v2982_v21  ;;  %3914 = vmatpush3.bf16.msra.mxu1 %v3913_v0  ;;  %v2860_v15 = vsub.f32 2.0, %v2828_v7  ;;  %v2859_v14 = vsub.f32 2.0, %v2827_v54 }
 0x333   : > { %v3079_v61 = vmax.f32 %v3047_v41, 0.0  ;;  %v3013_v3 = vsub.f32 %v6246_v17, %v2981_v28  ;;  %v3869_v35 = vpop.f32.mrb[58].mxu0  ;;  %v3915_v46 = vpack.c.bf16 %v3110_v38, %v3109_v51  ;;  %v2830_v12 = vmul.f32 %v6393_v36, %v6332_v57  ;;  %v4412_v38 = vpop.eup %4411 }
 0x334   : > { %v3112_v16 = vmin.f32 %v3080_v52, 1.0  ;;  %v3050_v10 = vmul.f32 %v5981_v60, %v3014_v23  ;;  %v2984_v40 = vmul.f32 %v3869_v35, %v2888_v9  ;;  %v2696_v42 = vpop.f32.mrb[59].mxu0  ;;  %v2892_v57 = vmul.f32 %v6367_v22, %v2860_v15 }
 0x335   : > { %v3111_v0 = vmin.f32 %v3079_v61, 1.0  ;;  %v3049_v32 = vmul.f32 %v5981_v60, %v3013_v3  ;;  %v2983_v37 = vmul.f32 %v2887_v25, %v2696_v42  ;;  %3916 = vmatprep.subr.bf16.mxu1 %v3915_v46  ;;  %v2829_v25 = vmul.f32 %v4410_v44, %v6338_v50  ;;  %v4414_v54 = vpop.eup %4413 }
 0x336   : > { %v3082_v62 = vmax.f32 %v3050_v10, 0.0  ;;  %v3016_v17 = vsub.f32 %v6291_v47, %v2984_v40  ;;  %3918 = vmatpush3.bf16.msra.mxu1 %v3917_v29  ;;  %v2891_v50 = vmul.f32 %v6372_v53, %v2859_v14  ;;  %v2954_v22 = vmul.f32 0.6931472, %v4406_v24 }
 0x337   : > { %v3081_v59 = vmax.f32 %v3049_v32, 0.0  ;;  %v3015_v9 = vsub.f32 %v6314_v26, %v2983_v37  ;;  %v3872_v18 = vpop.f32.mrb[60].mxu0  ;;  %v3919_v45 = vpack.c.bf16 %v3112_v16, %v3111_v0  ;;  %v2861_v23 = vsub.f32 2.0, %v2829_v25 }
 0x338   : > { %v3114_v11 = vmin.f32 %v3082_v62, 1.0  ;;  %v3052_v21 = vmul.f32 %v5981_v60, %v3016_v17  ;;  %v2986_v47 = vmul.f32 %v3872_v18, %v2890_v31  ;;  %v2706_v30 = vpop.f32.mrb[61].mxu0  ;;  %v2862_v31 = vsub.f32 2.0, %v2830_v12 }
 0x339   : > { %v3113_v13 = vmin.f32 %v3081_v59, 1.0  ;;  %v3051_v29 = vmul.f32 %v5981_v60, %v3015_v9  ;;  %v2985_v51 = vmul.f32 %v2889_v39, %v2706_v30  ;;  %3920 = vmatprep.subr.bf16.mxu1 %v3919_v45  ;;  %v2952_v5 = vmul.f32 0.6931472, %v4412_v38 }
 0x33a   : > { %v3084_v26 = vmax.f32 %v3052_v21, 0.0  ;;  %v3018_v41 = vsub.f32 %v6376_v4, %v2986_v47  ;;  %3922 = vmatpush3.bf16.msra.mxu1 %v3921_v20  ;;  %v4416_v20 = vpop.eup %4415  ;;  %v2894_v10 = vmul.f32 %v6393_v36, %v2862_v31  ;;  %v2893_v0 = vmul.f32 %v4410_v44, %v2861_v23 }
 0x33b   : > { %v3083_v28 = vmax.f32 %v3051_v29, 0.0  ;;  %v3017_v7 = vsub.f32 %v2948_v27, %v2985_v51  ;;  %v3875_v48 = vpop.f32.mrb[62].mxu0  ;;  %v3923_v52 = vpack.c.bf16 %v3114_v11, %v3113_v13  ;;  %v2958_v62 = vmul.f32 0.6931472, %v4414_v54 }
 0x33c   : > { %v3116_v61 = vmin.f32 %v3084_v26, 1.0  ;;  %v3054_v3 = vmul.f32 %v5981_v60, %v3018_v41  ;;  %v2988_v35 = vmul.f32 %v3875_v48, %v2892_v57  ;;  %v2716_v46 = vpop.f32.mrb[63].mxu0  ;;  %v2956_v9 = vmul.f32 0.6931472, %v4416_v20  ;;  %v6614_v57 = vld [vmem:[#allocation26_spill] sm:$0xff] }
 0x33d   : > { %v3115_v4 = vmin.f32 %v3083_v28, 1.0  ;;  %v3053_v39 = vmul.f32 %v5981_v60, %v3017_v7  ;;  %v2987_v63 = vmul.f32 %v2891_v50, %v2716_v46  ;;  %3924 = vmatprep.subr.bf16.mxu1 %v3923_v52  ;;  %v6608_v47 = vpack.c.bf16 %v6299_v6, %v6306_v49  ;;  %v372_v49 = vld [vmem:[%s6521_s5] sm:$0xff] }
 0x33e   : > { %v3086_v53 = vmax.f32 %v3054_v3, 0.0  ;;  %v3020_v16 = vsub.f32 %v2954_v22, %v2988_v35  ;;  %3926 = vmatpush3.bf16.msra.mxu1 %v3925_v1  ;;  %v6609_v55 = vpack.c.bf16 %v6322_v19, %v6327_v43  ;;  %v6611_v29 = vmov 1.0   ;;  %v3200_v35 = vld [vmem:[%s4680_s12] sm:$0x3] }
 0x33f   : > { %v3085_v40 = vmax.f32 %v3053_v39, 0.0  ;;  %v3019_v42 = vsub.f32 %v2952_v5, %v2987_v63  ;;  %v3878_v24 = vpop.f32.mrb[64].mxu0  ;;  %v3927_v32 = vpack.c.bf16 %v3116_v61, %v3115_v4  ;;  %v1732_v19 = vmul.f32 %v6614_v57, %v372_v49 }
 0x340   : > { %v3118_v37 = vmin.f32 %v3086_v53, 1.0  ;;  %v3056_v15 = vmul.f32 %v5981_v60, %v3020_v16  ;;  %v2990_v17 = vmul.f32 %v3878_v24, %v2894_v10  ;;  %v2726_v14 = vpop.f32.mrb[65].mxu0 }
 0x341   : > { %v3117_v12 = vmin.f32 %v3085_v40, 1.0  ;;  %v3055_v59 = vmul.f32 %v5981_v60, %v3019_v42  ;;  %v2989_v18 = vmul.f32 %v2893_v0, %v2726_v14  ;;  %3928 = vmatprep.subr.bf16.mxu1 %v3927_v32  ;;  %v1733_v43 = vrot.slane %v1732_v19, 4 }
 0x342   : > { %v3088_v8 = vmax.f32 %v3056_v15, 0.0  ;;  %v3022_v56 = vsub.f32 %v2958_v62, %v2990_v17  ;;  %3930 = vmatpush3.bf16.msra.mxu1 %v3929_v33 }
 0x343   : > { %v3087_v1 = vmax.f32 %v3055_v59, 0.0  ;;  %v3021_v36 = vsub.f32 %v2956_v9, %v2989_v18  ;;  %v3931_v44 = vpack.c.bf16 %v3118_v37, %v3117_v12  ;;  %v1734_v26 = vadd.f32 %v1733_v43, %v1732_v19 }
 0x344   : > { %v3120_v45 = vmin.f32 %v3088_v8, 1.0  ;;  %v3058_v25 = vmul.f32 %v5981_v60, %v3022_v56 }
 0x345   : > { %v3119_v38 = vmin.f32 %v3087_v1, 1.0  ;;  %v3057_v11 = vmul.f32 %v5981_v60, %v3021_v36  ;;  %3932 = vmatprep.subr.bf16.mxu1 %v3931_v44  ;;  %v6610_v60 = vpack.c.bf16 %v6346_v2, %v6352_v34  ;;  %v1735_v34 = vrot.slane %v1734_v26, 2 }
 0x346   : > { %v3090_v21 = vmax.f32 %v3058_v25, 0.0  ;;  %3934 = vmatpush3.bf16.msra.mxu1 %v6608_v47 }
 0x347   : > { %v3089_v30 = vmax.f32 %v3057_v11, 0.0  ;;  %v3935_v27 = vpack.c.bf16 %v3120_v45, %v3119_v38  ;;  %v1736_v7 = vadd.f32 %v1735_v34, %v1734_v26 }
 0x348   : > { %v3122_v13 = vmin.f32 %v3090_v21, 1.0 }
 0x349   : > { %v3121_v58 = vmin.f32 %v3089_v30, 1.0  ;;  %3936 = vmatprep.subr.bf16.mxu1 %v3935_v27  ;;  %v1737_v23 = vrot.slane %v1736_v7, 1 }
 0x34a   : > { %3938 = vmatpush3.bf16.msra.mxu1 %v6609_v55 }
 0x34b   : > { %v3939_v33 = vpack.c.bf16 %v3122_v13, %v3121_v58  ;;  %v1738_v3 = vadd.f32 %v1737_v23, %v1736_v7 }
 0x34d   : > { %3940 = vmatprep.subr.bf16.mxu1 %v3939_v33 }
 0x34e   : > { %3942 = vmatpush3.bf16.msra.mxu1 %v6610_v60 }
 0x351   : > { %3471 = vmatmul.mubr.msk.f32.vlgmr.msra.gmra.mrb[64].mxu1 %vm368_vm3, %v6611_v29 }
 0x424   : > { %v3676_v41 = vpop.f32.mrb[64].mxu1 }
 0x425   : > { %v3677_v50 = vpop.f32.mrb[65].mxu1 }
 0x426   : > { %v3678_v2 = vadd.f32 %v3677_v50, %v3676_v41 }
 0x428   : > { %v3193_v31 = vmul.f32 %v3678_v2, %v372_v49 }
 0x42a   : > { %v3194_v28 = vrot.slane %v3193_v31, 4 }
 0x42c   : > { %v3195_v48 = vadd.f32 %v3194_v28, %v3193_v31 }
 0x42e   : > { %v3196_v52 = vrot.slane %v3195_v48, 2 }
 0x430   : > { %v3197_v54 = vadd.f32 %v3196_v52, %v3195_v48 }
 0x432   : > { %v3198_v61 = vrot.slane %v3197_v54, 1 }
 0x434   : > { %v3199_v22 = vadd.f32 %v3198_v61, %v3197_v54 }
 0x436   : > { %v3202_v46 = vsel %vm3201_vm4, %v1738_v3, %v3199_v22 }
 0x437   : > { %v3203_v4 = vadd.f32 %v3202_v46, %v3200_v35 }
 0x439   : > { %3204 = vst [vmem:[%s4680_s12] sm:$0x3] %v3203_v4 }
 0x43a   : > { %4440 = shalt.err (!%p4437_p11)
}
 0x43b   : > { %s4441_s12 = scalar_lea.hbm %s6454_s8, 32  ;;  %s4445_s15 = scalar_lea.hbm %s6522_s6, 128 }
 0x43c   : > { %p4442_p12 = scmp.ne.s32.totalorder %s6454_s8, %s4441_s12  ;;  %p4446_p1 = scmp.lt.u32.totalorder %s6454_s8, %s6522_s6 }
 0x43d   : > { %p4447_p2 = scmp.lt.u32.totalorder %s4445_s15, %s4441_s12  ;;  %p4449_p4 = scmp.lt.u32.totalorder %s4441_s12, %s6454_s8 }
 0x43e   : > { %p4443_p13 = pnand %p4442_p12, %p4644_p6 }
 0x43f   : > { %p4448_p3 = por %p4447_p2, %p4446_p1 }
 0x440   : > { %p4444_p0 = pneg %p4443_p13 }
 0x441   : > { %p4450_p5 = por %p4449_p4, %p4448_p3 }
 0x443   : > { %p4451_p8 = pnand %p4450_p5, %p4444_p0 }
 0x445   : > { %4454 = shalt.err (!%p4451_p8)
}
 0x446   : > { %3943 = dma.vmem_to_hbm [thread:$0]  (%p4644_p6), %s6456_s24, 32, %s6454_s8, %s3206_s26  }
 0x447 PF: > { %p3949_p9 = scmp.ge.s32.totalorder %s4537_s30, 2  ;;  %s3233_s18 = sand.u32 1, %s4501_s21  }
 0x448   : > { %s3234_s19 = scalar_lea.sflag [#allocation3], %s3233_s18 }
 0x449   : > { %p3946_p10 = pnand %p3949_p9, %p4648_p7 }
 0x44b   : > { %4496 = dma.done.wait (!%p3946_p10), %s3234_s19, 32  }
 0x44c   : > { %4498 = vsyncadd (!%p3946_p10), %s3234_s19, 4294967264  ;;  %s19_s30 = sadd.s32 1, %s4537_s30   ;;  %s6616_s10 = sld [smem:[#allocation5_spill]] }
 0x44d   : > { %p16_p11 = scmp.ge.s32.totalorder %s19_s30, 10   ;;  %s6617_s23 = sld [smem:[#allocation12_spill]] }
 0x44e   : > { %s6618_s24 = sld [smem:[#allocation6_spill]]  ;;  %s6619_s25 = sld [smem:[#allocation7_spill]] }
 0x44f   : > { %s6620_s26 = sld [smem:[#allocation8_spill]]  ;;  %s6621_s27 = sld [smem:[#allocation9_spill]] }
 0x450   : > { %s6622_s28 = sld [smem:[#allocation10_spill]]  ;;  %s6623_s29 = sld [smem:[#allocation11_spill]] }
 0x451   : > { %s6624_s21 = smov %s4505_s22  ;;  %18 = sbr.rel (!%p16_p11) target bundleno = 6 (0x6), region = 86 }
 0x452   : > { %s6625_s22 = smov %s6616_s10 }
 0x458   :  { %3239 = vsyncpa [#allocation3], 1 }
 0x459   :  { %3241 = vsyncpa [#allocation3 + $0x1], 1 }

</bundles_post_ra>
